<compile_context>
chip_gen: v6e
topology: v6e:2x2x1
jax: 0.10.0
libtpu: 0.0.40
codegen_flags: <defaults>
</compile_context>

<pallas_src>
import jax
import jax.numpy as jnp
from jax import lax
from jax.experimental import pallas as pl
from jax.experimental.pallas import tpu as pltpu

EPS = 1e-5  # nn.GroupNorm default eps


def _make_kernel(H, W, Cin, Cmid, dilations):
    HW = H * W
    # lane-aligned zero pad so every tap slice of the padded image stays in range
    PAD = ((max(dilations) * (W + 1) + 127) // 128) * 128

    def gn_relu(t, gw, gb):
        # GroupNorm(1, C): stats over the whole per-sample tensor, one pass, clamped var.
        n = t.size
        s = jnp.sum(t)
        ss = jnp.sum(t * t)
        mean = s / n
        var = jnp.maximum(ss / n - mean * mean, 0.0)
        y = (t - mean) * lax.rsqrt(var + EPS)
        return jnp.maximum(y * gw + gb, 0.0)

    def kernel(xpos_ref, x_ref, wgap_ref, w1_ref, wdil_ref, bbr_ref,
               gnw_ref, gnb_ref, wc0_ref, wcr_ref, bc_ref, gncw_ref, gncb_ref,
               out_ref, xpad_ref, patch_ref, cat_ref):
        x = x_ref[0]                                   # (Cin, HW) f32
        xb = x.astype(jnp.bfloat16)
        xpos = xpos_ref[...]                           # (1, HW) int32: column index of pixel

        # ---- zero-padded image scratch: dilated-conv taps become static slices ----
        zpad = jnp.zeros((Cin, PAD), jnp.float32)
        xpad_ref[:, 0:PAD] = zpad
        xpad_ref[:, PAD + HW:2 * PAD + HW] = zpad
        xpad_ref[:, PAD:PAD + HW] = x

        # ---- branch 0: GAP -> 1x1 conv (no bias) -> GN -> ReLU (kept f32, tiny) ----
        # conv-then-pool == pool-then-conv for a 1x1 conv; avoids N=1 matmuls.
        ag = jnp.dot(wgap_ref[...], x, preferred_element_type=jnp.float32)   # (Cmid, HW)
        g = jnp.mean(ag, axis=1, keepdims=True)                              # (Cmid, 1)
        g = gn_relu(g, gnw_ref[:, 0:1], gnb_ref[:, 0:1])

        # ---- branch 1 (aspp1): 1x1 conv + bias -> GN -> ReLU ----
        a1 = jnp.dot(w1_ref[...], xb, preferred_element_type=jnp.float32) + bbr_ref[:, 0:1]
        cat_ref[0:Cmid, :] = gn_relu(
            a1, gnw_ref[:, 1:2], gnb_ref[:, 1:2]).astype(jnp.bfloat16)

        # ---- branches 2..4 (aspp2..4): dilated 3x3 as one K=9*Cin matmul each ----
        for i, d in enumerate(dilations):
            for ky in range(3):
                for kx in range(3):
                    sy, sx = (ky - 1) * d, (kx - 1) * d
                    t = ky * 3 + kx
                    start = PAD + sy * W + sx
                    win = xpad_ref[:, start:start + HW]          # (Cin, HW) f32
                    if sx > 0:                                    # mask row wrap only
                        win = jnp.where(xpos < (W - sx), win, 0.0)
                    elif sx < 0:
                        win = jnp.where(xpos >= (-sx), win, 0.0)
                    patch_ref[t * Cin:(t + 1) * Cin, :] = win.astype(jnp.bfloat16)
            a = jnp.dot(wdil_ref[i], patch_ref[...], preferred_element_type=jnp.float32)
            a = a + bbr_ref[:, i + 1:i + 2]
            cat_ref[(i + 1) * Cmid:(i + 2) * Cmid, :] = gn_relu(
                a, gnw_ref[:, i + 2:i + 3], gnb_ref[:, i + 2:i + 3]).astype(jnp.bfloat16)

        # ---- concat (free placement in cat scratch) -> 1x1 conv -> GN -> ReLU ----
        # GAP branch folded out of the scratch: its HW-constant contribution is a
        # separate small matmul added like a bias.
        g_b = jnp.broadcast_to(g.astype(jnp.bfloat16), (Cmid, HW))
        o = (jnp.dot(wcr_ref[...], cat_ref[...], preferred_element_type=jnp.float32)
             + jnp.dot(wc0_ref[...], g_b, preferred_element_type=jnp.float32)
             + bc_ref[...])
        o = gn_relu(o, gncw_ref[...], gncb_ref[...])
        # TODO(synk): Dropout2d(p=0.5) is identity at inference; training-mode channel dropout not implemented.
        out_ref[0] = o.astype(out_ref.dtype)

    return kernel, PAD


def scene_understanding_forward(x_nchw, kparams, dilations=(3, 6, 9)):
    """Fused forward. x_nchw: (B, Cin, H, W) like the PyTorch module."""
    (wgap, w1, wdil, bbr, gnw, gnb, wc0, wcr, bc, gncw, gncb) = kparams
    B, Cin, H, W = x_nchw.shape
    Cmid = wgap.shape[0]
    HW = H * W

    x = x_nchw.reshape(B, Cin, HW)                    # channels-major, no HBM transpose
    xpos = jnp.tile(jnp.arange(W, dtype=jnp.int32), H).reshape(1, HW)

    kernel, PAD = _make_kernel(H, W, Cin, Cmid, dilations)
    const2 = lambda b: (0, 0)
    const3 = lambda b: (0, 0, 0)

    out = pl.pallas_call(
        kernel,
        out_shape=jax.ShapeDtypeStruct((B, Cin, HW), x.dtype),
        grid_spec=pltpu.PrefetchScalarGridSpec(
            num_scalar_prefetch=0,
            grid=(B,),
            in_specs=[
                pl.BlockSpec(xpos.shape, const2),                 # pixel column index (1, HW)
                pl.BlockSpec((1, Cin, HW), lambda b: (b, 0, 0)),  # x, one sample per step
                pl.BlockSpec(wgap.shape, const2),                 # GAP 1x1 weight   (Cmid, Cin) f32
                pl.BlockSpec(w1.shape, const2),                   # aspp1 1x1 weight (Cmid, Cin) bf16
                pl.BlockSpec(wdil.shape, const3),                 # dilated taps (3, Cmid, 9*Cin) bf16
                pl.BlockSpec(bbr.shape, const2),                  # conv biases aspp1..4 (Cmid, 4)
                pl.BlockSpec(gnw.shape, const2),                  # branch GN scales (Cmid, 5)
                pl.BlockSpec(gnb.shape, const2),                  # branch GN biases (Cmid, 5)
                pl.BlockSpec(wc0.shape, const2),                  # concat weight, GAP cols (Cin, Cmid)
                pl.BlockSpec(wcr.shape, const2),                  # concat weight, rest (Cin, 4*Cmid)
                pl.BlockSpec(bc.shape, const2),                   # concat conv bias (Cin, 1)
                pl.BlockSpec(gncw.shape, const2),                 # final GN scale (Cin, 1)
                pl.BlockSpec(gncb.shape, const2),                 # final GN bias (Cin, 1)
            ],
            out_specs=pl.BlockSpec((1, Cin, HW), lambda b: (b, 0, 0)),
            scratch_shapes=[
                pltpu.VMEM((Cin, 2 * PAD + HW), jnp.float32),     # zero-padded image
                pltpu.VMEM((9 * Cin, HW), jnp.bfloat16),          # im2col patch (reused per dilation)
                pltpu.VMEM((4 * Cmid, HW), jnp.bfloat16),         # branch concat placement
            ],
        ),
        compiler_params=pltpu.CompilerParams(
            dimension_semantics=("parallel",),
            vmem_limit_bytes=48 * 1024 * 1024,
        ),
    )(xpos, x, wgap, w1, wdil, bbr, gnw, gnb, wc0, wcr, bc, gncw, gncb)

    return out.reshape(B, Cin, H, W)


# ---------------- parameter plumbing (plain JAX glue) ----------------

def prepare_params(pt_params):
    """PyTorch-layout tensors -> channels-major, matmul-ready kernel parameters."""
    (wgap, gngw, gngb, w1, b1, gn1w, gn1b, w2, b2, gn2w, gn2b,
     w3, b3, gn3w, gn3b, w4, b4, gn4w, gn4b, wcat, bcat, gncw, gncb) = pt_params
    Cmid, Cin = wgap.shape[0], wgap.shape[1]
    bf = jnp.bfloat16

    def dil_mat(w):   # (Cmid, Cin, 3, 3) -> (Cmid, 9*Cin), column index = (ky*3+kx)*Cin + ci
        return jnp.transpose(w, (0, 2, 3, 1)).reshape(Cmid, 9 * Cin)

    wgap_m = wgap.reshape(Cmid, Cin)                               # GAP branch kept f32
    w1_m = w1.reshape(Cmid, Cin).astype(bf)
    wdil = jnp.stack([dil_mat(w2), dil_mat(w3), dil_mat(w4)], axis=0).astype(bf)
    bbr = jnp.stack([b1, b2, b3, b4], axis=1)                      # (Cmid, 4)
    gnw = jnp.stack([gngw, gn1w, gn2w, gn3w, gn4w], axis=1)        # (Cmid, 5)
    gnb = jnp.stack([gngb, gn1b, gn2b, gn3b, gn4b], axis=1)        # (Cmid, 5)
    wc = wcat.reshape(Cin, 5 * Cmid)
    wc0 = wc[:, :Cmid].astype(bf)                                  # GAP columns (folded)
    wcr = wc[:, Cmid:].astype(bf)                                  # aspp1..4 columns
    bc = bcat.reshape(Cin, 1)
    return (wgap_m, w1_m, wdil, bbr, gnw, gnb, wc0, wcr, bc,
            gncw.reshape(Cin, 1), gncb.reshape(Cin, 1))


# ---------------- pure-JAX reference for verification ----------------

def ref_forward(x, pt, match_kernel_precision=False):
    """f32 reference; with match_kernel_precision=True the aspp / concat conv
    operands are cast to bf16 (f32 accumulation) to mirror the kernel's MXU use."""
    (wgap, gngw, gngb, w1, b1, gn1w, gn1b, w2, b2, gn2w, gn2b,
     w3, b3, gn3w, gn3b, w4, b4, gn4w, gn4b, wcat, bcat, gncw, gncb) = pt
    B, Cin, H, W = x.shape
    Cmid = wgap.shape[0]
    if match_kernel_precision:
        mcast, prec = (lambda t: t.astype(jnp.bfloat16)), lax.Precision.DEFAULT
    else:
        mcast, prec = (lambda t: t), lax.Precision.HIGHEST

    def gn_relu(t, w, b):
        mean = jnp.mean(t, axis=(1, 2, 3), keepdims=True)
        var = jnp.mean((t - mean) ** 2, axis=(1, 2, 3), keepdims=True)
        y = (t - mean) / jnp.sqrt(var + EPS)
        return jnp.maximum(y * w[None, :, None, None] + b[None, :, None, None], 0.0)

    def conv(t, w, pad, dil):
        return lax.conv_general_dilated(
            mcast(t), mcast(w), (1, 1), ((pad, pad), (pad, pad)),
            rhs_dilation=(dil, dil), dimension_numbers=("NCHW", "OIHW", "NCHW"),
            preferred_element_type=jnp.float32, precision=prec)

    # GAP branch (kept f32 in both the kernel and this reference)
    x0 = jnp.mean(x, axis=(2, 3), keepdims=True)
    x0 = lax.conv_general_dilated(
        x0, wgap, (1, 1), ((0, 0), (0, 0)),
        dimension_numbers=("NCHW", "OIHW", "NCHW"),
        preferred_element_type=jnp.float32, precision=lax.Precision.HIGHEST)
    x0 = gn_relu(x0, gngw, gngb)
    x0 = jnp.broadcast_to(x0, (B, Cmid, H, W))   # bilinear upsample of 1x1 == broadcast

    def branch(w, b, gw, gb, pad, dil):
        return gn_relu(conv(x, w, pad, dil) + b[None, :, None, None], gw, gb)

    x1 = branch(w1, b1, gn1w, gn1b, 0, 1)
    x2 = branch(w2, b2, gn2w, gn2b, 3, 3)
    x3 = branch(w3, b3, gn3w, gn3b, 6, 6)
    x4 = branch(w4, b4, gn4w, gn4b, 9, 9)

    x6 = jnp.concatenate([x0, x1, x2, x3, x4], axis=1)
    out = conv(x6, wcat, 0, 1) + bcat[None, :, None, None]
    out = gn_relu(out, gncw, gncb)
    return out   # Dropout2d is identity in eval mode


if __name__ == "__main__":
    # Module-consistent small shapes: n_channels=32, out_n_channels=64 (fixed by the module),
    # H = W = scale_factor = 16 so the upsampled GAP branch matches x spatially.
    B, Cin, H, W = 2, 32, 16, 16
    Cmid = 64
    dils = (3, 6, 9)   # dilations[1:] of [1, 3, 6, 9]; aspp1 is the 1x1 conv

    key = jax.random.PRNGKey(0)
    ks = jax.random.split(key, 24)
    x = jax.random.normal(ks[0], (B, Cin, H, W), jnp.float32)

    def conv_w(k, co, ci, kh, kw, scale=0.1):
        return scale * jax.random.normal(k, (co, ci, kh, kw), jnp.float32)

    def gn_w(k, n):
        return 1.0 + 0.1 * jax.random.normal(k, (n,), jnp.float32)

    def small(k, n):
        return 0.05 * jax.random.normal(k, (n,), jnp.float32)

    # PyTorch-layout parameters (deterministic stand-ins for the module's weights).
    wgap = conv_w(ks[1], Cmid, Cin, 1, 1)                                 # GAP conv (bias=False)
    gngw, gngb = gn_w(ks[2], Cmid), small(ks[3], Cmid)
    w1, b1 = conv_w(ks[4], Cmid, Cin, 1, 1), small(ks[5], Cmid)           # aspp1
    gn1w, gn1b = gn_w(ks[6], Cmid), small(ks[7], Cmid)
    w2, b2 = conv_w(ks[8], Cmid, Cin, 3, 3), small(ks[9], Cmid)           # aspp2 (dil 3)
    gn2w, gn2b = gn_w(ks[10], Cmid), small(ks[11], Cmid)
    w3, b3 = conv_w(ks[12], Cmid, Cin, 3, 3), small(ks[13], Cmid)         # aspp3 (dil 6)
    gn3w, gn3b = gn_w(ks[14], Cmid), small(ks[15], Cmid)
    w4, b4 = conv_w(ks[16], Cmid, Cin, 3, 3), small(ks[17], Cmid)         # aspp4 (dil 9)
    gn4w, gn4b = gn_w(ks[18], Cmid), small(ks[19], Cmid)
    wcat = conv_w(ks[20], Cin, 5 * Cmid, 1, 1, scale=0.05)                # concat_process conv
    bcat = small(ks[21], Cin)
    gncw, gncb = gn_w(ks[22], Cin), small(ks[23], Cin)

    pt = (wgap, gngw, gngb, w1, b1, gn1w, gn1b, w2, b2, gn2w, gn2b,
          w3, b3, gn3w, gn3b, w4, b4, gn4w, gn4b, wcat, bcat, gncw, gncb)

    out = scene_understanding_forward(x, prepare_params(pt), dilations=dils)
    out = jax.block_until_ready(out)
    assert out.shape == (B, Cin, H, W)

    # Tight check vs a reference that mirrors the kernel's bf16-operand / f32-accumulate matmuls:
    # only accumulation order, im2col layout and GN one-pass stats differ.
    ref_bf = ref_forward(x, pt, match_kernel_precision=True)
    err_max = float(jnp.max(jnp.abs(out - ref_bf)))
    err_mean = float(jnp.mean(jnp.abs(out - ref_bf)))
    assert err_max < 5e-3 and err_mean < 5e-4, \
        f"mismatch vs precision-matched reference: max={err_max} mean={err_mean}"

    # Loose semantics check vs the full-f32 reference (bounds the bf16 MXU error).
    ref32 = ref_forward(x, pt, match_kernel_precision=False)
    f32_max = float(jnp.max(jnp.abs(out - ref32)))
    f32_mean = float(jnp.mean(jnp.abs(out - ref32)))
    assert f32_max < 1.5e-1 and f32_mean < 2e-2, \
        f"mismatch vs f32 reference: max={f32_max} mean={f32_mean}"

    print("KERNEL_OK")
</pallas_src>

<mosaic_0001>
module attributes {stable_mosaic.version = 11 : i64} {
  func.func @kernel(%arg0: i32, %arg1: memref<1x256xi32, #tpu.memory_space<vmem>>, %arg2: memref<1x32x256xf32, #tpu.memory_space<vmem>>, %arg3: memref<64x32xf32, #tpu.memory_space<vmem>>, %arg4: memref<64x32xbf16, #tpu.memory_space<vmem>>, %arg5: memref<3x64x288xbf16, #tpu.memory_space<vmem>>, %arg6: memref<64x4xf32, #tpu.memory_space<vmem>>, %arg7: memref<64x5xf32, #tpu.memory_space<vmem>>, %arg8: memref<64x5xf32, #tpu.memory_space<vmem>>, %arg9: memref<32x64xbf16, #tpu.memory_space<vmem>>, %arg10: memref<32x256xbf16, #tpu.memory_space<vmem>>, %arg11: memref<32x1xf32, #tpu.memory_space<vmem>>, %arg12: memref<32x1xf32, #tpu.memory_space<vmem>>, %arg13: memref<32x1xf32, #tpu.memory_space<vmem>>, %arg14: memref<1x32x256xf32, #tpu.memory_space<vmem>>, %arg15: memref<32x768xf32, #tpu.memory_space<vmem>>, %arg16: memref<288x256xbf16, #tpu.memory_space<vmem>>, %arg17: memref<256x256xbf16, #tpu.memory_space<vmem>>) attributes {dimension_semantics = [#tpu.dimension_semantics<parallel>], iteration_bounds = array<i64: 2>, scalar_prefetch = 0 : i64, scratch_operands = 3 : i64, tpu.core_type = #tpu.core_type<tc>, window_params = [{pipeline_mode = #tpu.pipeline_mode<synchronous>, transform_indices = @transform_0, window_bounds = array<i64: 1, 256>}, {transform_indices = @transform_1, window_bounds = array<i64: 1, 32, 256>}, {pipeline_mode = #tpu.pipeline_mode<synchronous>, transform_indices = @transform_2, window_bounds = array<i64: 64, 32>}, {pipeline_mode = #tpu.pipeline_mode<synchronous>, transform_indices = @transform_3, window_bounds = array<i64: 64, 32>}, {pipeline_mode = #tpu.pipeline_mode<synchronous>, transform_indices = @transform_4, window_bounds = array<i64: 3, 64, 288>}, {pipeline_mode = #tpu.pipeline_mode<synchronous>, transform_indices = @transform_5, window_bounds = array<i64: 64, 4>}, {pipeline_mode = #tpu.pipeline_mode<synchronous>, transform_indices = @transform_6, window_bounds = array<i64: 64, 5>}, {pipeline_mode = #tpu.pipeline_mode<synchronous>, transform_indices = @transform_7, window_bounds = array<i64: 64, 5>}, {pipeline_mode = #tpu.pipeline_mode<synchronous>, transform_indices = @transform_8, window_bounds = array<i64: 32, 64>}, {pipeline_mode = #tpu.pipeline_mode<synchronous>, transform_indices = @transform_9, window_bounds = array<i64: 32, 256>}, {pipeline_mode = #tpu.pipeline_mode<synchronous>, transform_indices = @transform_10, window_bounds = array<i64: 32, 1>}, {pipeline_mode = #tpu.pipeline_mode<synchronous>, transform_indices = @transform_11, window_bounds = array<i64: 32, 1>}, {pipeline_mode = #tpu.pipeline_mode<synchronous>, transform_indices = @transform_12, window_bounds = array<i64: 32, 1>}, {transform_indices = @transform_13, window_bounds = array<i64: 1, 32, 256>}]} {
    %c0 = arith.constant 0 : index
    %c0_0 = arith.constant 0 : index
    %c0_1 = arith.constant 0 : index
    %0 = vector.load %arg2[%c0, %c0_0, %c0_1] : memref<1x32x256xf32, #tpu.memory_space<vmem>>, vector<1x32x256xf32>
    %1 = vector.shape_cast %0 : vector<1x32x256xf32> to vector<32x256xf32>
    %2 = arith.truncf %1 : vector<32x256xf32> to vector<32x256xbf16>
    %c0_2 = arith.constant 0 : index
    %c0_3 = arith.constant 0 : index
    %3 = vector.load %arg1[%c0_2, %c0_3] : memref<1x256xi32, #tpu.memory_space<vmem>>, vector<1x256xi32>
    %cst = arith.constant 0.000000e+00 : f32
    %4 = vector.broadcast %cst : f32 to vector<32x256xf32>
    %c0_4 = arith.constant 0 : index
    %c0_5 = arith.constant 0 : index
    %5 = vector.load %arg15[%c0_4, %c0_5] : memref<32x768xf32, #tpu.memory_space<vmem>>, vector<32x256xf32>
    tpu.vector_store %arg15[%c0_4, %c0_5], %4 {strides = array<i32>} : memref<32x768xf32, #tpu.memory_space<vmem>>, vector<32x256xf32>,
    %c0_6 = arith.constant 0 : index
    %c512 = arith.constant 512 : index
    %6 = vector.load %arg15[%c0_6, %c512] : memref<32x768xf32, #tpu.memory_space<vmem>>, vector<32x256xf32>
    tpu.vector_store %arg15[%c0_6, %c512], %4 {strides = array<i32>} : memref<32x768xf32, #tpu.memory_space<vmem>>, vector<32x256xf32>,
    %c0_7 = arith.constant 0 : index
    %c256 = arith.constant 256 : index
    %7 = vector.load %arg15[%c0_7, %c256] : memref<32x768xf32, #tpu.memory_space<vmem>>, vector<32x256xf32>
    tpu.vector_store %arg15[%c0_7, %c256], %1 {strides = array<i32>} : memref<32x768xf32, #tpu.memory_space<vmem>>, vector<32x256xf32>,
    %c0_8 = arith.constant 0 : index
    %c0_9 = arith.constant 0 : index
    %8 = vector.load %arg3[%c0_8, %c0_9] : memref<64x32xf32, #tpu.memory_space<vmem>>, vector<64x32xf32>
    %cst_10 = arith.constant dense<0.000000e+00> : vector<64x256xf32>
    %9 = tpu.matmul %8, %1, %cst_10 {dimension_numbers = #tpu.dot_dimension_numbers<[1], [0], [0], [1], [0, 0, 1, 1], [], []>} : vector<64x32xf32>, vector<32x256xf32>, vector<64x256xf32> -> vector<64x256xf32>
    %cst_11 = arith.constant dense<0.000000e+00> : vector<64xf32>
    %10 = vector.multi_reduction <add>, %9, %cst_11 [1] : vector<64x256xf32> to vector<64xf32>
    %11 = vector.shape_cast %10 : vector<64xf32> to vector<64x1xf32>
    %cst_12 = arith.constant 2.560000e+02 : f32
    %12 = vector.broadcast %cst_12 : f32 to vector<64x1xf32>
    %13 = arith.divf %11, %12 : vector<64x1xf32>
    %c0_13 = arith.constant 0 : index
    %c0_14 = arith.constant 0 : index
    %14 = vector.load %arg7[%c0_13, %c0_14] : memref<64x5xf32, #tpu.memory_space<vmem>>, vector<64x1xf32>
    %c0_15 = arith.constant 0 : index
    %c0_16 = arith.constant 0 : index
    %15 = vector.load %arg8[%c0_15, %c0_16] : memref<64x5xf32, #tpu.memory_space<vmem>>, vector<64x1xf32>
    %16 = vector.shape_cast %13 : vector<64x1xf32> to vector<1x64x1xf32>
    %cst_17 = arith.constant dense<0.000000e+00> : vector<1xf32>
    %17 = vector.multi_reduction <add>, %16, %cst_17 [1, 2] : vector<1x64x1xf32> to vector<1xf32>
    %18 = vector.shape_cast %17 : vector<1xf32> to vector<1x1x1xf32>
    %19 = vector.extract %18[0, 0, 0] : f32 from vector<1x1x1xf32>
    %20 = arith.mulf %13, %13 : vector<64x1xf32>
    %21 = vector.shape_cast %20 : vector<64x1xf32> to vector<1x64x1xf32>
    %cst_18 = arith.constant dense<0.000000e+00> : vector<1xf32>
    %22 = vector.multi_reduction <add>, %21, %cst_18 [1, 2] : vector<1x64x1xf32> to vector<1xf32>
    %23 = vector.shape_cast %22 : vector<1xf32> to vector<1x1x1xf32>
    %24 = vector.extract %23[0, 0, 0] : f32 from vector<1x1x1xf32>
    %cst_19 = arith.constant 6.400000e+01 : f32
    %25 = arith.divf %19, %cst_19 : f32
    %cst_20 = arith.constant 6.400000e+01 : f32
    %26 = arith.divf %24, %cst_20 : f32
    %27 = arith.mulf %25, %25 : f32
    %28 = arith.subf %26, %27 : f32
    %cst_21 = arith.constant 0.000000e+00 : f32
    %29 = arith.maximumf %28, %cst_21 : f32
    %30 = vector.broadcast %25 : f32 to vector<64x1xf32>
    %31 = arith.subf %13, %30 : vector<64x1xf32>
    %cst_22 = arith.constant 9.99999974E-6 : f32
    %32 = arith.addf %29, %cst_22 : f32
    %33 = math.rsqrt %32 : f32
    %34 = vector.broadcast %33 : f32 to vector<64x1xf32>
    %35 = arith.mulf %31, %34 : vector<64x1xf32>
    %36 = arith.mulf %35, %14 : vector<64x1xf32>
    %37 = arith.addf %36, %15 : vector<64x1xf32>
    %cst_23 = arith.constant 0.000000e+00 : f32
    %38 = vector.broadcast %cst_23 : f32 to vector<64x1xf32>
    %39 = arith.maximumf %37, %38 : vector<64x1xf32>
    %c0_24 = arith.constant 0 : index
    %c0_25 = arith.constant 0 : index
    %40 = vector.load %arg4[%c0_24, %c0_25] : memref<64x32xbf16, #tpu.memory_space<vmem>>, vector<64x32xbf16>
    %cst_26 = arith.constant dense<0.000000e+00> : vector<64x256xf32>
    %41 = tpu.matmul %40, %2, %cst_26 {dimension_numbers = #tpu.dot_dimension_numbers<[1], [0], [0], [1], [0, 0, 1, 1], [], []>} : vector<64x32xbf16>, vector<32x256xbf16>, vector<64x256xf32> -> vector<64x256xf32>
    %c0_27 = arith.constant 0 : index
    %c0_28 = arith.constant 0 : index
    %42 = vector.load %arg6[%c0_27, %c0_28] : memref<64x4xf32, #tpu.memory_space<vmem>>, vector<64x1xf32>
    %43 = vector.broadcast %42 : vector<64x1xf32> to vector<64x256xf32>
    %44 = arith.addf %41, %43 : vector<64x256xf32>
    %c0_29 = arith.constant 0 : index
    %c1 = arith.constant 1 : index
    %45 = vector.load %arg7[%c0_29, %c1] : memref<64x5xf32, #tpu.memory_space<vmem>>, vector<64x1xf32>
    %c0_30 = arith.constant 0 : index
    %c1_31 = arith.constant 1 : index
    %46 = vector.load %arg8[%c0_30, %c1_31] : memref<64x5xf32, #tpu.memory_space<vmem>>, vector<64x1xf32>
    %47 = vector.shape_cast %44 : vector<64x256xf32> to vector<1x64x256xf32>
    %cst_32 = arith.constant dense<0.000000e+00> : vector<1xf32>
    %48 = vector.multi_reduction <add>, %47, %cst_32 [1, 2] : vector<1x64x256xf32> to vector<1xf32>
    %49 = vector.shape_cast %48 : vector<1xf32> to vector<1x1x1xf32>
    %50 = vector.extract %49[0, 0, 0] : f32 from vector<1x1x1xf32>
    %51 = arith.mulf %44, %44 : vector<64x256xf32>
    %52 = vector.shape_cast %51 : vector<64x256xf32> to vector<1x64x256xf32>
    %cst_33 = arith.constant dense<0.000000e+00> : vector<1xf32>
    %53 = vector.multi_reduction <add>, %52, %cst_33 [1, 2] : vector<1x64x256xf32> to vector<1xf32>
    %54 = vector.shape_cast %53 : vector<1xf32> to vector<1x1x1xf32>
    %55 = vector.extract %54[0, 0, 0] : f32 from vector<1x1x1xf32>
    %cst_34 = arith.constant 1.638400e+04 : f32
    %56 = arith.divf %50, %cst_34 : f32
    %cst_35 = arith.constant 1.638400e+04 : f32
    %57 = arith.divf %55, %cst_35 : f32
    %58 = arith.mulf %56, %56 : f32
    %59 = arith.subf %57, %58 : f32
    %cst_36 = arith.constant 0.000000e+00 : f32
    %60 = arith.maximumf %59, %cst_36 : f32
    %61 = vector.broadcast %56 : f32 to vector<64x256xf32>
    %62 = arith.subf %44, %61 : vector<64x256xf32>
    %cst_37 = arith.constant 9.99999974E-6 : f32
    %63 = arith.addf %60, %cst_37 : f32
    %64 = math.rsqrt %63 : f32
    %65 = vector.broadcast %64 : f32 to vector<64x256xf32>
    %66 = arith.mulf %62, %65 : vector<64x256xf32>
    %67 = vector.broadcast %45 : vector<64x1xf32> to vector<64x256xf32>
    %68 = arith.mulf %66, %67 : vector<64x256xf32>
    %69 = vector.broadcast %46 : vector<64x1xf32> to vector<64x256xf32>
    %70 = arith.addf %68, %69 : vector<64x256xf32>
    %cst_38 = arith.constant 0.000000e+00 : f32
    %71 = vector.broadcast %cst_38 : f32 to vector<64x256xf32>
    %72 = arith.maximumf %70, %71 : vector<64x256xf32>
    %73 = arith.truncf %72 : vector<64x256xf32> to vector<64x256xbf16>
    %c0_39 = arith.constant 0 : index
    %c0_40 = arith.constant 0 : index
    %74 = vector.load %arg17[%c0_39, %c0_40] : memref<256x256xbf16, #tpu.memory_space<vmem>>, vector<64x256xbf16>
    tpu.vector_store %arg17[%c0_39, %c0_40], %73 {strides = array<i32>} : memref<256x256xbf16, #tpu.memory_space<vmem>>, vector<64x256xbf16>,
    %c0_41 = arith.constant 0 : index
    %c205 = arith.constant 205 : index
    %75 = vector.load %arg15[%c0_41, %c205] : memref<32x768xf32, #tpu.memory_space<vmem>>, vector<32x256xf32>
    %c3_i32 = arith.constant 3 : i32
    %76 = vector.broadcast %c3_i32 : i32 to vector<1x256xi32>
    %77 = arith.cmpi sge, %3, %76 : vector<1x256xi32>
    %cst_42 = arith.constant 0.000000e+00 : f32
    %78 = vector.shape_cast %77 : vector<1x256xi1> to vector<1x256xi1>
    %79 = vector.broadcast %78 : vector<1x256xi1> to vector<32x256xi1>
    %80 = vector.broadcast %cst_42 : f32 to vector<32x256xf32>
    %81 = arith.select %79, %75, %80 : vector<32x256xi1>, vector<32x256xf32>
    %82 = arith.truncf %81 : vector<32x256xf32> to vector<32x256xbf16>
    %c0_43 = arith.constant 0 : index
    %c0_44 = arith.constant 0 : index
    %83 = vector.load %arg16[%c0_43, %c0_44] : memref<288x256xbf16, #tpu.memory_space<vmem>>, vector<32x256xbf16>
    tpu.vector_store %arg16[%c0_43, %c0_44], %82 {strides = array<i32>} : memref<288x256xbf16, #tpu.memory_space<vmem>>, vector<32x256xbf16>,
    %c0_45 = arith.constant 0 : index
    %c208 = arith.constant 208 : index
    %84 = vector.load %arg15[%c0_45, %c208] : memref<32x768xf32, #tpu.memory_space<vmem>>, vector<32x256xf32>
    %85 = arith.truncf %84 : vector<32x256xf32> to vector<32x256xbf16>
    %c32 = arith.constant 32 : index
    %c0_46 = arith.constant 0 : index
    %86 = vector.load %arg16[%c32, %c0_46] : memref<288x256xbf16, #tpu.memory_space<vmem>>, vector<32x256xbf16>
    tpu.vector_store %arg16[%c32, %c0_46], %85 {strides = array<i32>} : memref<288x256xbf16, #tpu.memory_space<vmem>>, vector<32x256xbf16>,
    %c0_47 = arith.constant 0 : index
    %c211 = arith.constant 211 : index
    %87 = vector.load %arg15[%c0_47, %c211] : memref<32x768xf32, #tpu.memory_space<vmem>>, vector<32x256xf32>
    %c13_i32 = arith.constant 13 : i32
    %88 = vector.broadcast %c13_i32 : i32 to vector<1x256xi32>
    %89 = arith.cmpi slt, %3, %88 : vector<1x256xi32>
    %cst_48 = arith.constant 0.000000e+00 : f32
    %90 = vector.shape_cast %89 : vector<1x256xi1> to vector<1x256xi1>
    %91 = vector.broadcast %90 : vector<1x256xi1> to vector<32x256xi1>
    %92 = vector.broadcast %cst_48 : f32 to vector<32x256xf32>
    %93 = arith.select %91, %87, %92 : vector<32x256xi1>, vector<32x256xf32>
    %94 = arith.truncf %93 : vector<32x256xf32> to vector<32x256xbf16>
    %c64 = arith.constant 64 : index
    %c0_49 = arith.constant 0 : index
    %95 = vector.load %arg16[%c64, %c0_49] : memref<288x256xbf16, #tpu.memory_space<vmem>>, vector<32x256xbf16>
    tpu.vector_store %arg16[%c64, %c0_49], %94 {strides = array<i32>} : memref<288x256xbf16, #tpu.memory_space<vmem>>, vector<32x256xbf16>,
    %c0_50 = arith.constant 0 : index
    %c253 = arith.constant 253 : index
    %96 = vector.load %arg15[%c0_50, %c253] : memref<32x768xf32, #tpu.memory_space<vmem>>, vector<32x256xf32>
    %c3_i32_51 = arith.constant 3 : i32
    %97 = vector.broadcast %c3_i32_51 : i32 to vector<1x256xi32>
    %98 = arith.cmpi sge, %3, %97 : vector<1x256xi32>
    %cst_52 = arith.constant 0.000000e+00 : f32
    %99 = vector.shape_cast %98 : vector<1x256xi1> to vector<1x256xi1>
    %100 = vector.broadcast %99 : vector<1x256xi1> to vector<32x256xi1>
    %101 = vector.broadcast %cst_52 : f32 to vector<32x256xf32>
    %102 = arith.select %100, %96, %101 : vector<32x256xi1>, vector<32x256xf32>
    %103 = arith.truncf %102 : vector<32x256xf32> to vector<32x256xbf16>
    %c96 = arith.constant 96 : index
    %c0_53 = arith.constant 0 : index
    %104 = vector.load %arg16[%c96, %c0_53] : memref<288x256xbf16, #tpu.memory_space<vmem>>, vector<32x256xbf16>
    tpu.vector_store %arg16[%c96, %c0_53], %103 {strides = array<i32>} : memref<288x256xbf16, #tpu.memory_space<vmem>>, vector<32x256xbf16>,
    %c0_54 = arith.constant 0 : index
    %c256_55 = arith.constant 256 : index
    %105 = vector.load %arg15[%c0_54, %c256_55] : memref<32x768xf32, #tpu.memory_space<vmem>>, vector<32x256xf32>
    %106 = arith.truncf %105 : vector<32x256xf32> to vector<32x256xbf16>
    %c128 = arith.constant 128 : index
    %c0_56 = arith.constant 0 : index
    %107 = vector.load %arg16[%c128, %c0_56] : memref<288x256xbf16, #tpu.memory_space<vmem>>, vector<32x256xbf16>
    tpu.vector_store %arg16[%c128, %c0_56], %106 {strides = array<i32>} : memref<288x256xbf16, #tpu.memory_space<vmem>>, vector<32x256xbf16>,
    %c0_57 = arith.constant 0 : index
    %c259 = arith.constant 259 : index
    %108 = vector.load %arg15[%c0_57, %c259] : memref<32x768xf32, #tpu.memory_space<vmem>>, vector<32x256xf32>
    %c13_i32_58 = arith.constant 13 : i32
    %109 = vector.broadcast %c13_i32_58 : i32 to vector<1x256xi32>
    %110 = arith.cmpi slt, %3, %109 : vector<1x256xi32>
    %cst_59 = arith.constant 0.000000e+00 : f32
    %111 = vector.shape_cast %110 : vector<1x256xi1> to vector<1x256xi1>
    %112 = vector.broadcast %111 : vector<1x256xi1> to vector<32x256xi1>
    %113 = vector.broadcast %cst_59 : f32 to vector<32x256xf32>
    %114 = arith.select %112, %108, %113 : vector<32x256xi1>, vector<32x256xf32>
    %115 = arith.truncf %114 : vector<32x256xf32> to vector<32x256xbf16>
    %c160 = arith.constant 160 : index
    %c0_60 = arith.constant 0 : index
    %116 = vector.load %arg16[%c160, %c0_60] : memref<288x256xbf16, #tpu.memory_space<vmem>>, vector<32x256xbf16>
    tpu.vector_store %arg16[%c160, %c0_60], %115 {strides = array<i32>} : memref<288x256xbf16, #tpu.memory_space<vmem>>, vector<32x256xbf16>,
    %c0_61 = arith.constant 0 : index
    %c301 = arith.constant 301 : index
    %117 = vector.load %arg15[%c0_61, %c301] : memref<32x768xf32, #tpu.memory_space<vmem>>, vector<32x256xf32>
    %c3_i32_62 = arith.constant 3 : i32
    %118 = vector.broadcast %c3_i32_62 : i32 to vector<1x256xi32>
    %119 = arith.cmpi sge, %3, %118 : vector<1x256xi32>
    %cst_63 = arith.constant 0.000000e+00 : f32
    %120 = vector.shape_cast %119 : vector<1x256xi1> to vector<1x256xi1>
    %121 = vector.broadcast %120 : vector<1x256xi1> to vector<32x256xi1>
    %122 = vector.broadcast %cst_63 : f32 to vector<32x256xf32>
    %123 = arith.select %121, %117, %122 : vector<32x256xi1>, vector<32x256xf32>
    %124 = arith.truncf %123 : vector<32x256xf32> to vector<32x256xbf16>
    %c192 = arith.constant 192 : index
    %c0_64 = arith.constant 0 : index
    %125 = vector.load %arg16[%c192, %c0_64] : memref<288x256xbf16, #tpu.memory_space<vmem>>, vector<32x256xbf16>
    tpu.vector_store %arg16[%c192, %c0_64], %124 {strides = array<i32>} : memref<288x256xbf16, #tpu.memory_space<vmem>>, vector<32x256xbf16>,
    %c0_65 = arith.constant 0 : index
    %c304 = arith.constant 304 : index
    %126 = vector.load %arg15[%c0_65, %c304] : memref<32x768xf32, #tpu.memory_space<vmem>>, vector<32x256xf32>
    %127 = arith.truncf %126 : vector<32x256xf32> to vector<32x256xbf16>
    %c224 = arith.constant 224 : index
    %c0_66 = arith.constant 0 : index
    %128 = vector.load %arg16[%c224, %c0_66] : memref<288x256xbf16, #tpu.memory_space<vmem>>, vector<32x256xbf16>
    tpu.vector_store %arg16[%c224, %c0_66], %127 {strides = array<i32>} : memref<288x256xbf16, #tpu.memory_space<vmem>>, vector<32x256xbf16>,
    %c0_67 = arith.constant 0 : index
    %c307 = arith.constant 307 : index
    %129 = vector.load %arg15[%c0_67, %c307] : memref<32x768xf32, #tpu.memory_space<vmem>>, vector<32x256xf32>
    %c13_i32_68 = arith.constant 13 : i32
    %130 = vector.broadcast %c13_i32_68 : i32 to vector<1x256xi32>
    %131 = arith.cmpi slt, %3, %130 : vector<1x256xi32>
    %cst_69 = arith.constant 0.000000e+00 : f32
    %132 = vector.shape_cast %131 : vector<1x256xi1> to vector<1x256xi1>
    %133 = vector.broadcast %132 : vector<1x256xi1> to vector<32x256xi1>
    %134 = vector.broadcast %cst_69 : f32 to vector<32x256xf32>
    %135 = arith.select %133, %129, %134 : vector<32x256xi1>, vector<32x256xf32>
    %136 = arith.truncf %135 : vector<32x256xf32> to vector<32x256xbf16>
    %c256_70 = arith.constant 256 : index
    %c0_71 = arith.constant 0 : index
    %137 = vector.load %arg16[%c256_70, %c0_71] : memref<288x256xbf16, #tpu.memory_space<vmem>>, vector<32x256xbf16>
    tpu.vector_store %arg16[%c256_70, %c0_71], %136 {strides = array<i32>} : memref<288x256xbf16, #tpu.memory_space<vmem>>, vector<32x256xbf16>,
    %c0_72 = arith.constant 0 : index
    %c0_73 = arith.constant 0 : index
    %c0_74 = arith.constant 0 : index
    %138 = vector.load %arg5[%c0_72, %c0_73, %c0_74] : memref<3x64x288xbf16, #tpu.memory_space<vmem>>, vector<1x64x288xbf16>
    %139 = vector.shape_cast %138 : vector<1x64x288xbf16> to vector<64x288xbf16>
    %c0_75 = arith.constant 0 : index
    %c0_76 = arith.constant 0 : index
    %140 = vector.load %arg16[%c0_75, %c0_76] : memref<288x256xbf16, #tpu.memory_space<vmem>>, vector<288x256xbf16>
    %cst_77 = arith.constant dense<0.000000e+00> : vector<64x256xf32>
    %141 = tpu.matmul %139, %140, %cst_77 {dimension_numbers = #tpu.dot_dimension_numbers<[1], [0], [0], [1], [0, 0, 1, 1], [], []>} : vector<64x288xbf16>, vector<288x256xbf16>, vector<64x256xf32> -> vector<64x256xf32>
    %c0_78 = arith.constant 0 : index
    %c1_79 = arith.constant 1 : index
    %142 = vector.load %arg6[%c0_78, %c1_79] : memref<64x4xf32, #tpu.memory_space<vmem>>, vector<64x1xf32>
    %143 = vector.broadcast %142 : vector<64x1xf32> to vector<64x256xf32>
    %144 = arith.addf %141, %143 : vector<64x256xf32>
    %c0_80 = arith.constant 0 : index
    %c2 = arith.constant 2 : index
    %145 = vector.load %arg7[%c0_80, %c2] : memref<64x5xf32, #tpu.memory_space<vmem>>, vector<64x1xf32>
    %c0_81 = arith.constant 0 : index
    %c2_82 = arith.constant 2 : index
    %146 = vector.load %arg8[%c0_81, %c2_82] : memref<64x5xf32, #tpu.memory_space<vmem>>, vector<64x1xf32>
    %147 = vector.shape_cast %144 : vector<64x256xf32> to vector<1x64x256xf32>
    %cst_83 = arith.constant dense<0.000000e+00> : vector<1xf32>
    %148 = vector.multi_reduction <add>, %147, %cst_83 [1, 2] : vector<1x64x256xf32> to vector<1xf32>
    %149 = vector.shape_cast %148 : vector<1xf32> to vector<1x1x1xf32>
    %150 = vector.extract %149[0, 0, 0] : f32 from vector<1x1x1xf32>
    %151 = arith.mulf %144, %144 : vector<64x256xf32>
    %152 = vector.shape_cast %151 : vector<64x256xf32> to vector<1x64x256xf32>
    %cst_84 = arith.constant dense<0.000000e+00> : vector<1xf32>
    %153 = vector.multi_reduction <add>, %152, %cst_84 [1, 2] : vector<1x64x256xf32> to vector<1xf32>
    %154 = vector.shape_cast %153 : vector<1xf32> to vector<1x1x1xf32>
    %155 = vector.extract %154[0, 0, 0] : f32 from vector<1x1x1xf32>
    %cst_85 = arith.constant 1.638400e+04 : f32
    %156 = arith.divf %150, %cst_85 : f32
    %cst_86 = arith.constant 1.638400e+04 : f32
    %157 = arith.divf %155, %cst_86 : f32
    %158 = arith.mulf %156, %156 : f32
    %159 = arith.subf %157, %158 : f32
    %cst_87 = arith.constant 0.000000e+00 : f32
    %160 = arith.maximumf %159, %cst_87 : f32
    %161 = vector.broadcast %156 : f32 to vector<64x256xf32>
    %162 = arith.subf %144, %161 : vector<64x256xf32>
    %cst_88 = arith.constant 9.99999974E-6 : f32
    %163 = arith.addf %160, %cst_88 : f32
    %164 = math.rsqrt %163 : f32
    %165 = vector.broadcast %164 : f32 to vector<64x256xf32>
    %166 = arith.mulf %162, %165 : vector<64x256xf32>
    %167 = vector.broadcast %145 : vector<64x1xf32> to vector<64x256xf32>
    %168 = arith.mulf %166, %167 : vector<64x256xf32>
    %169 = vector.broadcast %146 : vector<64x1xf32> to vector<64x256xf32>
    %170 = arith.addf %168, %169 : vector<64x256xf32>
    %cst_89 = arith.constant 0.000000e+00 : f32
    %171 = vector.broadcast %cst_89 : f32 to vector<64x256xf32>
    %172 = arith.maximumf %170, %171 : vector<64x256xf32>
    %173 = arith.truncf %172 : vector<64x256xf32> to vector<64x256xbf16>
    %c64_90 = arith.constant 64 : index
    %c0_91 = arith.constant 0 : index
    %174 = vector.load %arg17[%c64_90, %c0_91] : memref<256x256xbf16, #tpu.memory_space<vmem>>, vector<64x256xbf16>
    tpu.vector_store %arg17[%c64_90, %c0_91], %173 {strides = array<i32>} : memref<256x256xbf16, #tpu.memory_space<vmem>>, vector<64x256xbf16>,
    %c0_92 = arith.constant 0 : index
    %c154 = arith.constant 154 : index
    %175 = vector.load %arg15[%c0_92, %c154] : memref<32x768xf32, #tpu.memory_space<vmem>>, vector<32x256xf32>
    %c6_i32 = arith.constant 6 : i32
    %176 = vector.broadcast %c6_i32 : i32 to vector<1x256xi32>
    %177 = arith.cmpi sge, %3, %176 : vector<1x256xi32>
    %cst_93 = arith.constant 0.000000e+00 : f32
    %178 = vector.shape_cast %177 : vector<1x256xi1> to vector<1x256xi1>
    %179 = vector.broadcast %178 : vector<1x256xi1> to vector<32x256xi1>
    %180 = vector.broadcast %cst_93 : f32 to vector<32x256xf32>
    %181 = arith.select %179, %175, %180 : vector<32x256xi1>, vector<32x256xf32>
    %182 = arith.truncf %181 : vector<32x256xf32> to vector<32x256xbf16>
    %c0_94 = arith.constant 0 : index
    %c0_95 = arith.constant 0 : index
    %183 = vector.load %arg16[%c0_94, %c0_95] : memref<288x256xbf16, #tpu.memory_space<vmem>>, vector<32x256xbf16>
    tpu.vector_store %arg16[%c0_94, %c0_95], %182 {strides = array<i32>} : memref<288x256xbf16, #tpu.memory_space<vmem>>, vector<32x256xbf16>,
    %c0_96 = arith.constant 0 : index
    %c160_97 = arith.constant 160 : index
    %184 = vector.load %arg15[%c0_96, %c160_97] : memref<32x768xf32, #tpu.memory_space<vmem>>, vector<32x256xf32>
    %185 = arith.truncf %184 : vector<32x256xf32> to vector<32x256xbf16>
    %c32_98 = arith.constant 32 : index
    %c0_99 = arith.constant 0 : index
    %186 = vector.load %arg16[%c32_98, %c0_99] : memref<288x256xbf16, #tpu.memory_space<vmem>>, vector<32x256xbf16>
    tpu.vector_store %arg16[%c32_98, %c0_99], %185 {strides = array<i32>} : memref<288x256xbf16, #tpu.memory_space<vmem>>, vector<32x256xbf16>,
    %c0_100 = arith.constant 0 : index
    %c166 = arith.constant 166 : index
    %187 = vector.load %arg15[%c0_100, %c166] : memref<32x768xf32, #tpu.memory_space<vmem>>, vector<32x256xf32>
    %c10_i32 = arith.constant 10 : i32
    %188 = vector.broadcast %c10_i32 : i32 to vector<1x256xi32>
    %189 = arith.cmpi slt, %3, %188 : vector<1x256xi32>
    %cst_101 = arith.constant 0.000000e+00 : f32
    %190 = vector.shape_cast %189 : vector<1x256xi1> to vector<1x256xi1>
    %191 = vector.broadcast %190 : vector<1x256xi1> to vector<32x256xi1>
    %192 = vector.broadcast %cst_101 : f32 to vector<32x256xf32>
    %193 = arith.select %191, %187, %192 : vector<32x256xi1>, vector<32x256xf32>
    %194 = arith.truncf %193 : vector<32x256xf32> to vector<32x256xbf16>
    %c64_102 = arith.constant 64 : index
    %c0_103 = arith.constant 0 : index
    %195 = vector.load %arg16[%c64_102, %c0_103] : memref<288x256xbf16, #tpu.memory_space<vmem>>, vector<32x256xbf16>
    tpu.vector_store %arg16[%c64_102, %c0_103], %194 {strides = array<i32>} : memref<288x256xbf16, #tpu.memory_space<vmem>>, vector<32x256xbf16>,
    %c0_104 = arith.constant 0 : index
    %c250 = arith.constant 250 : index
    %196 = vector.load %arg15[%c0_104, %c250] : memref<32x768xf32, #tpu.memory_space<vmem>>, vector<32x256xf32>
    %c6_i32_105 = arith.constant 6 : i32
    %197 = vector.broadcast %c6_i32_105 : i32 to vector<1x256xi32>
    %198 = arith.cmpi sge, %3, %197 : vector<1x256xi32>
    %cst_106 = arith.constant 0.000000e+00 : f32
    %199 = vector.shape_cast %198 : vector<1x256xi1> to vector<1x256xi1>
    %200 = vector.broadcast %199 : vector<1x256xi1> to vector<32x256xi1>
    %201 = vector.broadcast %cst_106 : f32 to vector<32x256xf32>
    %202 = arith.select %200, %196, %201 : vector<32x256xi1>, vector<32x256xf32>
    %203 = arith.truncf %202 : vector<32x256xf32> to vector<32x256xbf16>
    %c96_107 = arith.constant 96 : index
    %c0_108 = arith.constant 0 : index
    %204 = vector.load %arg16[%c96_107, %c0_108] : memref<288x256xbf16, #tpu.memory_space<vmem>>, vector<32x256xbf16>
    tpu.vector_store %arg16[%c96_107, %c0_108], %203 {strides = array<i32>} : memref<288x256xbf16, #tpu.memory_space<vmem>>, vector<32x256xbf16>,
    %c0_109 = arith.constant 0 : index
    %c256_110 = arith.constant 256 : index
    %205 = vector.load %arg15[%c0_109, %c256_110] : memref<32x768xf32, #tpu.memory_space<vmem>>, vector<32x256xf32>
    %206 = arith.truncf %205 : vector<32x256xf32> to vector<32x256xbf16>
    %c128_111 = arith.constant 128 : index
    %c0_112 = arith.constant 0 : index
    %207 = vector.load %arg16[%c128_111, %c0_112] : memref<288x256xbf16, #tpu.memory_space<vmem>>, vector<32x256xbf16>
    tpu.vector_store %arg16[%c128_111, %c0_112], %206 {strides = array<i32>} : memref<288x256xbf16, #tpu.memory_space<vmem>>, vector<32x256xbf16>,
    %c0_113 = arith.constant 0 : index
    %c262 = arith.constant 262 : index
    %208 = vector.load %arg15[%c0_113, %c262] : memref<32x768xf32, #tpu.memory_space<vmem>>, vector<32x256xf32>
    %c10_i32_114 = arith.constant 10 : i32
    %209 = vector.broadcast %c10_i32_114 : i32 to vector<1x256xi32>
    %210 = arith.cmpi slt, %3, %209 : vector<1x256xi32>
    %cst_115 = arith.constant 0.000000e+00 : f32
    %211 = vector.shape_cast %210 : vector<1x256xi1> to vector<1x256xi1>
    %212 = vector.broadcast %211 : vector<1x256xi1> to vector<32x256xi1>
    %213 = vector.broadcast %cst_115 : f32 to vector<32x256xf32>
    %214 = arith.select %212, %208, %213 : vector<32x256xi1>, vector<32x256xf32>
    %215 = arith.truncf %214 : vector<32x256xf32> to vector<32x256xbf16>
    %c160_116 = arith.constant 160 : index
    %c0_117 = arith.constant 0 : index
    %216 = vector.load %arg16[%c160_116, %c0_117] : memref<288x256xbf16, #tpu.memory_space<vmem>>, vector<32x256xbf16>
    tpu.vector_store %arg16[%c160_116, %c0_117], %215 {strides = array<i32>} : memref<288x256xbf16, #tpu.memory_space<vmem>>, vector<32x256xbf16>,
    %c0_118 = arith.constant 0 : index
    %c346 = arith.constant 346 : index
    %217 = vector.load %arg15[%c0_118, %c346] : memref<32x768xf32, #tpu.memory_space<vmem>>, vector<32x256xf32>
    %c6_i32_119 = arith.constant 6 : i32
    %218 = vector.broadcast %c6_i32_119 : i32 to vector<1x256xi32>
    %219 = arith.cmpi sge, %3, %218 : vector<1x256xi32>
    %cst_120 = arith.constant 0.000000e+00 : f32
    %220 = vector.shape_cast %219 : vector<1x256xi1> to vector<1x256xi1>
    %221 = vector.broadcast %220 : vector<1x256xi1> to vector<32x256xi1>
    %222 = vector.broadcast %cst_120 : f32 to vector<32x256xf32>
    %223 = arith.select %221, %217, %222 : vector<32x256xi1>, vector<32x256xf32>
    %224 = arith.truncf %223 : vector<32x256xf32> to vector<32x256xbf16>
    %c192_121 = arith.constant 192 : index
    %c0_122 = arith.constant 0 : index
    %225 = vector.load %arg16[%c192_121, %c0_122] : memref<288x256xbf16, #tpu.memory_space<vmem>>, vector<32x256xbf16>
    tpu.vector_store %arg16[%c192_121, %c0_122], %224 {strides = array<i32>} : memref<288x256xbf16, #tpu.memory_space<vmem>>, vector<32x256xbf16>,
    %c0_123 = arith.constant 0 : index
    %c352 = arith.constant 352 : index
    %226 = vector.load %arg15[%c0_123, %c352] : memref<32x768xf32, #tpu.memory_space<vmem>>, vector<32x256xf32>
    %227 = arith.truncf %226 : vector<32x256xf32> to vector<32x256xbf16>
    %c224_124 = arith.constant 224 : index
    %c0_125 = arith.constant 0 : index
    %228 = vector.load %arg16[%c224_124, %c0_125] : memref<288x256xbf16, #tpu.memory_space<vmem>>, vector<32x256xbf16>
    tpu.vector_store %arg16[%c224_124, %c0_125], %227 {strides = array<i32>} : memref<288x256xbf16, #tpu.memory_space<vmem>>, vector<32x256xbf16>,
    %c0_126 = arith.constant 0 : index
    %c358 = arith.constant 358 : index
    %229 = vector.load %arg15[%c0_126, %c358] : memref<32x768xf32, #tpu.memory_space<vmem>>, vector<32x256xf32>
    %c10_i32_127 = arith.constant 10 : i32
    %230 = vector.broadcast %c10_i32_127 : i32 to vector<1x256xi32>
    %231 = arith.cmpi slt, %3, %230 : vector<1x256xi32>
    %cst_128 = arith.constant 0.000000e+00 : f32
    %232 = vector.shape_cast %231 : vector<1x256xi1> to vector<1x256xi1>
    %233 = vector.broadcast %232 : vector<1x256xi1> to vector<32x256xi1>
    %234 = vector.broadcast %cst_128 : f32 to vector<32x256xf32>
    %235 = arith.select %233, %229, %234 : vector<32x256xi1>, vector<32x256xf32>
    %236 = arith.truncf %235 : vector<32x256xf32> to vector<32x256xbf16>
    %c256_129 = arith.constant 256 : index
    %c0_130 = arith.constant 0 : index
    %237 = vector.load %arg16[%c256_129, %c0_130] : memref<288x256xbf16, #tpu.memory_space<vmem>>, vector<32x256xbf16>
    tpu.vector_store %arg16[%c256_129, %c0_130], %236 {strides = array<i32>} : memref<288x256xbf16, #tpu.memory_space<vmem>>, vector<32x256xbf16>,
    %c1_131 = arith.constant 1 : index
    %c0_132 = arith.constant 0 : index
    %c0_133 = arith.constant 0 : index
    %238 = vector.load %arg5[%c1_131, %c0_132, %c0_133] : memref<3x64x288xbf16, #tpu.memory_space<vmem>>, vector<1x64x288xbf16>
    %239 = vector.shape_cast %238 : vector<1x64x288xbf16> to vector<64x288xbf16>
    %c0_134 = arith.constant 0 : index
    %c0_135 = arith.constant 0 : index
    %240 = vector.load %arg16[%c0_134, %c0_135] : memref<288x256xbf16, #tpu.memory_space<vmem>>, vector<288x256xbf16>
    %cst_136 = arith.constant dense<0.000000e+00> : vector<64x256xf32>
    %241 = tpu.matmul %239, %240, %cst_136 {dimension_numbers = #tpu.dot_dimension_numbers<[1], [0], [0], [1], [0, 0, 1, 1], [], []>} : vector<64x288xbf16>, vector<288x256xbf16>, vector<64x256xf32> -> vector<64x256xf32>
    %c0_137 = arith.constant 0 : index
    %c2_138 = arith.constant 2 : index
    %242 = vector.load %arg6[%c0_137, %c2_138] : memref<64x4xf32, #tpu.memory_space<vmem>>, vector<64x1xf32>
    %243 = vector.broadcast %242 : vector<64x1xf32> to vector<64x256xf32>
    %244 = arith.addf %241, %243 : vector<64x256xf32>
    %c0_139 = arith.constant 0 : index
    %c3 = arith.constant 3 : index
    %245 = vector.load %arg7[%c0_139, %c3] : memref<64x5xf32, #tpu.memory_space<vmem>>, vector<64x1xf32>
    %c0_140 = arith.constant 0 : index
    %c3_141 = arith.constant 3 : index
    %246 = vector.load %arg8[%c0_140, %c3_141] : memref<64x5xf32, #tpu.memory_space<vmem>>, vector<64x1xf32>
    %247 = vector.shape_cast %244 : vector<64x256xf32> to vector<1x64x256xf32>
    %cst_142 = arith.constant dense<0.000000e+00> : vector<1xf32>
    %248 = vector.multi_reduction <add>, %247, %cst_142 [1, 2] : vector<1x64x256xf32> to vector<1xf32>
    %249 = vector.shape_cast %248 : vector<1xf32> to vector<1x1x1xf32>
    %250 = vector.extract %249[0, 0, 0] : f32 from vector<1x1x1xf32>
    %251 = arith.mulf %244, %244 : vector<64x256xf32>
    %252 = vector.shape_cast %251 : vector<64x256xf32> to vector<1x64x256xf32>
    %cst_143 = arith.constant dense<0.000000e+00> : vector<1xf32>
    %253 = vector.multi_reduction <add>, %252, %cst_143 [1, 2] : vector<1x64x256xf32> to vector<1xf32>
    %254 = vector.shape_cast %253 : vector<1xf32> to vector<1x1x1xf32>
    %255 = vector.extract %254[0, 0, 0] : f32 from vector<1x1x1xf32>
    %cst_144 = arith.constant 1.638400e+04 : f32
    %256 = arith.divf %250, %cst_144 : f32
    %cst_145 = arith.constant 1.638400e+04 : f32
    %257 = arith.divf %255, %cst_145 : f32
    %258 = arith.mulf %256, %256 : f32
    %259 = arith.subf %257, %258 : f32
    %cst_146 = arith.constant 0.000000e+00 : f32
    %260 = arith.maximumf %259, %cst_146 : f32
    %261 = vector.broadcast %256 : f32 to vector<64x256xf32>
    %262 = arith.subf %244, %261 : vector<64x256xf32>
    %cst_147 = arith.constant 9.99999974E-6 : f32
    %263 = arith.addf %260, %cst_147 : f32
    %264 = math.rsqrt %263 : f32
    %265 = vector.broadcast %264 : f32 to vector<64x256xf32>
    %266 = arith.mulf %262, %265 : vector<64x256xf32>
    %267 = vector.broadcast %245 : vector<64x1xf32> to vector<64x256xf32>
    %268 = arith.mulf %266, %267 : vector<64x256xf32>
    %269 = vector.broadcast %246 : vector<64x1xf32> to vector<64x256xf32>
    %270 = arith.addf %268, %269 : vector<64x256xf32>
    %cst_148 = arith.constant 0.000000e+00 : f32
    %271 = vector.broadcast %cst_148 : f32 to vector<64x256xf32>
    %272 = arith.maximumf %270, %271 : vector<64x256xf32>
    %273 = arith.truncf %272 : vector<64x256xf32> to vector<64x256xbf16>
    %c128_149 = arith.constant 128 : index
    %c0_150 = arith.constant 0 : index
    %274 = vector.load %arg17[%c128_149, %c0_150] : memref<256x256xbf16, #tpu.memory_space<vmem>>, vector<64x256xbf16>
    tpu.vector_store %arg17[%c128_149, %c0_150], %273 {strides = array<i32>} : memref<256x256xbf16, #tpu.memory_space<vmem>>, vector<64x256xbf16>,
    %c0_151 = arith.constant 0 : index
    %c103 = arith.constant 103 : index
    %275 = vector.load %arg15[%c0_151, %c103] : memref<32x768xf32, #tpu.memory_space<vmem>>, vector<32x256xf32>
    %c9_i32 = arith.constant 9 : i32
    %276 = vector.broadcast %c9_i32 : i32 to vector<1x256xi32>
    %277 = arith.cmpi sge, %3, %276 : vector<1x256xi32>
    %cst_152 = arith.constant 0.000000e+00 : f32
    %278 = vector.shape_cast %277 : vector<1x256xi1> to vector<1x256xi1>
    %279 = vector.broadcast %278 : vector<1x256xi1> to vector<32x256xi1>
    %280 = vector.broadcast %cst_152 : f32 to vector<32x256xf32>
    %281 = arith.select %279, %275, %280 : vector<32x256xi1>, vector<32x256xf32>
    %282 = arith.truncf %281 : vector<32x256xf32> to vector<32x256xbf16>
    %c0_153 = arith.constant 0 : index
    %c0_154 = arith.constant 0 : index
    %283 = vector.load %arg16[%c0_153, %c0_154] : memref<288x256xbf16, #tpu.memory_space<vmem>>, vector<32x256xbf16>
    tpu.vector_store %arg16[%c0_153, %c0_154], %282 {strides = array<i32>} : memref<288x256xbf16, #tpu.memory_space<vmem>>, vector<32x256xbf16>,
    %c0_155 = arith.constant 0 : index
    %c112 = arith.constant 112 : index
    %284 = vector.load %arg15[%c0_155, %c112] : memref<32x768xf32, #tpu.memory_space<vmem>>, vector<32x256xf32>
    %285 = arith.truncf %284 : vector<32x256xf32> to vector<32x256xbf16>
    %c32_156 = arith.constant 32 : index
    %c0_157 = arith.constant 0 : index
    %286 = vector.load %arg16[%c32_156, %c0_157] : memref<288x256xbf16, #tpu.memory_space<vmem>>, vector<32x256xbf16>
    tpu.vector_store %arg16[%c32_156, %c0_157], %285 {strides = array<i32>} : memref<288x256xbf16, #tpu.memory_space<vmem>>, vector<32x256xbf16>,
    %c0_158 = arith.constant 0 : index
    %c121 = arith.constant 121 : index
    %287 = vector.load %arg15[%c0_158, %c121] : memref<32x768xf32, #tpu.memory_space<vmem>>, vector<32x256xf32>
    %c7_i32 = arith.constant 7 : i32
    %288 = vector.broadcast %c7_i32 : i32 to vector<1x256xi32>
    %289 = arith.cmpi slt, %3, %288 : vector<1x256xi32>
    %cst_159 = arith.constant 0.000000e+00 : f32
    %290 = vector.shape_cast %289 : vector<1x256xi1> to vector<1x256xi1>
    %291 = vector.broadcast %290 : vector<1x256xi1> to vector<32x256xi1>
    %292 = vector.broadcast %cst_159 : f32 to vector<32x256xf32>
    %293 = arith.select %291, %287, %292 : vector<32x256xi1>, vector<32x256xf32>
    %294 = arith.truncf %293 : vector<32x256xf32> to vector<32x256xbf16>
    %c64_160 = arith.constant 64 : index
    %c0_161 = arith.constant 0 : index
    %295 = vector.load %arg16[%c64_160, %c0_161] : memref<288x256xbf16, #tpu.memory_space<vmem>>, vector<32x256xbf16>
    tpu.vector_store %arg16[%c64_160, %c0_161], %294 {strides = array<i32>} : memref<288x256xbf16, #tpu.memory_space<vmem>>, vector<32x256xbf16>,
    %c0_162 = arith.constant 0 : index
    %c247 = arith.constant 247 : index
    %296 = vector.load %arg15[%c0_162, %c247] : memref<32x768xf32, #tpu.memory_space<vmem>>, vector<32x256xf32>
    %c9_i32_163 = arith.constant 9 : i32
    %297 = vector.broadcast %c9_i32_163 : i32 to vector<1x256xi32>
    %298 = arith.cmpi sge, %3, %297 : vector<1x256xi32>
    %cst_164 = arith.constant 0.000000e+00 : f32
    %299 = vector.shape_cast %298 : vector<1x256xi1> to vector<1x256xi1>
    %300 = vector.broadcast %299 : vector<1x256xi1> to vector<32x256xi1>
    %301 = vector.broadcast %cst_164 : f32 to vector<32x256xf32>
    %302 = arith.select %300, %296, %301 : vector<32x256xi1>, vector<32x256xf32>
    %303 = arith.truncf %302 : vector<32x256xf32> to vector<32x256xbf16>
    %c96_165 = arith.constant 96 : index
    %c0_166 = arith.constant 0 : index
    %304 = vector.load %arg16[%c96_165, %c0_166] : memref<288x256xbf16, #tpu.memory_space<vmem>>, vector<32x256xbf16>
    tpu.vector_store %arg16[%c96_165, %c0_166], %303 {strides = array<i32>} : memref<288x256xbf16, #tpu.memory_space<vmem>>, vector<32x256xbf16>,
    %c0_167 = arith.constant 0 : index
    %c256_168 = arith.constant 256 : index
    %305 = vector.load %arg15[%c0_167, %c256_168] : memref<32x768xf32, #tpu.memory_space<vmem>>, vector<32x256xf32>
    %306 = arith.truncf %305 : vector<32x256xf32> to vector<32x256xbf16>
    %c128_169 = arith.constant 128 : index
    %c0_170 = arith.constant 0 : index
    %307 = vector.load %arg16[%c128_169, %c0_170] : memref<288x256xbf16, #tpu.memory_space<vmem>>, vector<32x256xbf16>
    tpu.vector_store %arg16[%c128_169, %c0_170], %306 {strides = array<i32>} : memref<288x256xbf16, #tpu.memory_space<vmem>>, vector<32x256xbf16>,
    %c0_171 = arith.constant 0 : index
    %c265 = arith.constant 265 : index
    %308 = vector.load %arg15[%c0_171, %c265] : memref<32x768xf32, #tpu.memory_space<vmem>>, vector<32x256xf32>
    %c7_i32_172 = arith.constant 7 : i32
    %309 = vector.broadcast %c7_i32_172 : i32 to vector<1x256xi32>
    %310 = arith.cmpi slt, %3, %309 : vector<1x256xi32>
    %cst_173 = arith.constant 0.000000e+00 : f32
    %311 = vector.shape_cast %310 : vector<1x256xi1> to vector<1x256xi1>
    %312 = vector.broadcast %311 : vector<1x256xi1> to vector<32x256xi1>
    %313 = vector.broadcast %cst_173 : f32 to vector<32x256xf32>
    %314 = arith.select %312, %308, %313 : vector<32x256xi1>, vector<32x256xf32>
    %315 = arith.truncf %314 : vector<32x256xf32> to vector<32x256xbf16>
    %c160_174 = arith.constant 160 : index
    %c0_175 = arith.constant 0 : index
    %316 = vector.load %arg16[%c160_174, %c0_175] : memref<288x256xbf16, #tpu.memory_space<vmem>>, vector<32x256xbf16>
    tpu.vector_store %arg16[%c160_174, %c0_175], %315 {strides = array<i32>} : memref<288x256xbf16, #tpu.memory_space<vmem>>, vector<32x256xbf16>,
    %c0_176 = arith.constant 0 : index
    %c391 = arith.constant 391 : index
    %317 = vector.load %arg15[%c0_176, %c391] : memref<32x768xf32, #tpu.memory_space<vmem>>, vector<32x256xf32>
    %c9_i32_177 = arith.constant 9 : i32
    %318 = vector.broadcast %c9_i32_177 : i32 to vector<1x256xi32>
    %319 = arith.cmpi sge, %3, %318 : vector<1x256xi32>
    %cst_178 = arith.constant 0.000000e+00 : f32
    %320 = vector.shape_cast %319 : vector<1x256xi1> to vector<1x256xi1>
    %321 = vector.broadcast %320 : vector<1x256xi1> to vector<32x256xi1>
    %322 = vector.broadcast %cst_178 : f32 to vector<32x256xf32>
    %323 = arith.select %321, %317, %322 : vector<32x256xi1>, vector<32x256xf32>
    %324 = arith.truncf %323 : vector<32x256xf32> to vector<32x256xbf16>
    %c192_179 = arith.constant 192 : index
    %c0_180 = arith.constant 0 : index
    %325 = vector.load %arg16[%c192_179, %c0_180] : memref<288x256xbf16, #tpu.memory_space<vmem>>, vector<32x256xbf16>
    tpu.vector_store %arg16[%c192_179, %c0_180], %324 {strides = array<i32>} : memref<288x256xbf16, #tpu.memory_space<vmem>>, vector<32x256xbf16>,
    %c0_181 = arith.constant 0 : index
    %c400 = arith.constant 400 : index
    %326 = vector.load %arg15[%c0_181, %c400] : memref<32x768xf32, #tpu.memory_space<vmem>>, vector<32x256xf32>
    %327 = arith.truncf %326 : vector<32x256xf32> to vector<32x256xbf16>
    %c224_182 = arith.constant 224 : index
    %c0_183 = arith.constant 0 : index
    %328 = vector.load %arg16[%c224_182, %c0_183] : memref<288x256xbf16, #tpu.memory_space<vmem>>, vector<32x256xbf16>
    tpu.vector_store %arg16[%c224_182, %c0_183], %327 {strides = array<i32>} : memref<288x256xbf16, #tpu.memory_space<vmem>>, vector<32x256xbf16>,
    %c0_184 = arith.constant 0 : index
    %c409 = arith.constant 409 : index
    %329 = vector.load %arg15[%c0_184, %c409] : memref<32x768xf32, #tpu.memory_space<vmem>>, vector<32x256xf32>
    %c7_i32_185 = arith.constant 7 : i32
    %330 = vector.broadcast %c7_i32_185 : i32 to vector<1x256xi32>
    %331 = arith.cmpi slt, %3, %330 : vector<1x256xi32>
    %cst_186 = arith.constant 0.000000e+00 : f32
    %332 = vector.shape_cast %331 : vector<1x256xi1> to vector<1x256xi1>
    %333 = vector.broadcast %332 : vector<1x256xi1> to vector<32x256xi1>
    %334 = vector.broadcast %cst_186 : f32 to vector<32x256xf32>
    %335 = arith.select %333, %329, %334 : vector<32x256xi1>, vector<32x256xf32>
    %336 = arith.truncf %335 : vector<32x256xf32> to vector<32x256xbf16>
    %c256_187 = arith.constant 256 : index
    %c0_188 = arith.constant 0 : index
    %337 = vector.load %arg16[%c256_187, %c0_188] : memref<288x256xbf16, #tpu.memory_space<vmem>>, vector<32x256xbf16>
    tpu.vector_store %arg16[%c256_187, %c0_188], %336 {strides = array<i32>} : memref<288x256xbf16, #tpu.memory_space<vmem>>, vector<32x256xbf16>,
    %c2_189 = arith.constant 2 : index
    %c0_190 = arith.constant 0 : index
    %c0_191 = arith.constant 0 : index
    %338 = vector.load %arg5[%c2_189, %c0_190, %c0_191] : memref<3x64x288xbf16, #tpu.memory_space<vmem>>, vector<1x64x288xbf16>
    %339 = vector.shape_cast %338 : vector<1x64x288xbf16> to vector<64x288xbf16>
    %c0_192 = arith.constant 0 : index
    %c0_193 = arith.constant 0 : index
    %340 = vector.load %arg16[%c0_192, %c0_193] : memref<288x256xbf16, #tpu.memory_space<vmem>>, vector<288x256xbf16>
    %cst_194 = arith.constant dense<0.000000e+00> : vector<64x256xf32>
    %341 = tpu.matmul %339, %340, %cst_194 {dimension_numbers = #tpu.dot_dimension_numbers<[1], [0], [0], [1], [0, 0, 1, 1], [], []>} : vector<64x288xbf16>, vector<288x256xbf16>, vector<64x256xf32> -> vector<64x256xf32>
    %c0_195 = arith.constant 0 : index
    %c3_196 = arith.constant 3 : index
    %342 = vector.load %arg6[%c0_195, %c3_196] : memref<64x4xf32, #tpu.memory_space<vmem>>, vector<64x1xf32>
    %343 = vector.broadcast %342 : vector<64x1xf32> to vector<64x256xf32>
    %344 = arith.addf %341, %343 : vector<64x256xf32>
    %c0_197 = arith.constant 0 : index
    %c4 = arith.constant 4 : index
    %345 = vector.load %arg7[%c0_197, %c4] : memref<64x5xf32, #tpu.memory_space<vmem>>, vector<64x1xf32>
    %c0_198 = arith.constant 0 : index
    %c4_199 = arith.constant 4 : index
    %346 = vector.load %arg8[%c0_198, %c4_199] : memref<64x5xf32, #tpu.memory_space<vmem>>, vector<64x1xf32>
    %347 = vector.shape_cast %344 : vector<64x256xf32> to vector<1x64x256xf32>
    %cst_200 = arith.constant dense<0.000000e+00> : vector<1xf32>
    %348 = vector.multi_reduction <add>, %347, %cst_200 [1, 2] : vector<1x64x256xf32> to vector<1xf32>
    %349 = vector.shape_cast %348 : vector<1xf32> to vector<1x1x1xf32>
    %350 = vector.extract %349[0, 0, 0] : f32 from vector<1x1x1xf32>
    %351 = arith.mulf %344, %344 : vector<64x256xf32>
    %352 = vector.shape_cast %351 : vector<64x256xf32> to vector<1x64x256xf32>
    %cst_201 = arith.constant dense<0.000000e+00> : vector<1xf32>
    %353 = vector.multi_reduction <add>, %352, %cst_201 [1, 2] : vector<1x64x256xf32> to vector<1xf32>
    %354 = vector.shape_cast %353 : vector<1xf32> to vector<1x1x1xf32>
    %355 = vector.extract %354[0, 0, 0] : f32 from vector<1x1x1xf32>
    %cst_202 = arith.constant 1.638400e+04 : f32
    %356 = arith.divf %350, %cst_202 : f32
    %cst_203 = arith.constant 1.638400e+04 : f32
    %357 = arith.divf %355, %cst_203 : f32
    %358 = arith.mulf %356, %356 : f32
    %359 = arith.subf %357, %358 : f32
    %cst_204 = arith.constant 0.000000e+00 : f32
    %360 = arith.maximumf %359, %cst_204 : f32
    %361 = vector.broadcast %356 : f32 to vector<64x256xf32>
    %362 = arith.subf %344, %361 : vector<64x256xf32>
    %cst_205 = arith.constant 9.99999974E-6 : f32
    %363 = arith.addf %360, %cst_205 : f32
    %364 = math.rsqrt %363 : f32
    %365 = vector.broadcast %364 : f32 to vector<64x256xf32>
    %366 = arith.mulf %362, %365 : vector<64x256xf32>
    %367 = vector.broadcast %345 : vector<64x1xf32> to vector<64x256xf32>
    %368 = arith.mulf %366, %367 : vector<64x256xf32>
    %369 = vector.broadcast %346 : vector<64x1xf32> to vector<64x256xf32>
    %370 = arith.addf %368, %369 : vector<64x256xf32>
    %cst_206 = arith.constant 0.000000e+00 : f32
    %371 = vector.broadcast %cst_206 : f32 to vector<64x256xf32>
    %372 = arith.maximumf %370, %371 : vector<64x256xf32>
    %373 = arith.truncf %372 : vector<64x256xf32> to vector<64x256xbf16>
    %c192_207 = arith.constant 192 : index
    %c0_208 = arith.constant 0 : index
    %374 = vector.load %arg17[%c192_207, %c0_208] : memref<256x256xbf16, #tpu.memory_space<vmem>>, vector<64x256xbf16>
    tpu.vector_store %arg17[%c192_207, %c0_208], %373 {strides = array<i32>} : memref<256x256xbf16, #tpu.memory_space<vmem>>, vector<64x256xbf16>,
    %375 = arith.truncf %39 : vector<64x1xf32> to vector<64x1xbf16>
    %376 = vector.shape_cast %375 : vector<64x1xbf16> to vector<64x1xbf16>
    %377 = vector.broadcast %376 : vector<64x1xbf16> to vector<64x256xbf16>
    %c0_209 = arith.constant 0 : index
    %c0_210 = arith.constant 0 : index
    %378 = vector.load %arg10[%c0_209, %c0_210] : memref<32x256xbf16, #tpu.memory_space<vmem>>, vector<32x256xbf16>
    %c0_211 = arith.constant 0 : index
    %c0_212 = arith.constant 0 : index
    %379 = vector.load %arg17[%c0_211, %c0_212] : memref<256x256xbf16, #tpu.memory_space<vmem>>, vector<256x256xbf16>
    %cst_213 = arith.constant dense<0.000000e+00> : vector<32x256xf32>
    %380 = tpu.matmul %378, %379, %cst_213 {dimension_numbers = #tpu.dot_dimension_numbers<[1], [0], [0], [1], [0, 0, 1, 1], [], []>} : vector<32x256xbf16>, vector<256x256xbf16>, vector<32x256xf32> -> vector<32x256xf32>
    %c0_214 = arith.constant 0 : index
    %c0_215 = arith.constant 0 : index
    %381 = vector.load %arg9[%c0_214, %c0_215] : memref<32x64xbf16, #tpu.memory_space<vmem>>, vector<32x64xbf16>
    %cst_216 = arith.constant dense<0.000000e+00> : vector<32x256xf32>
    %382 = tpu.matmul %381, %377, %cst_216 {dimension_numbers = #tpu.dot_dimension_numbers<[1], [0], [0], [1], [0, 0, 1, 1], [], []>} : vector<32x64xbf16>, vector<64x256xbf16>, vector<32x256xf32> -> vector<32x256xf32>
    %383 = arith.addf %380, %382 : vector<32x256xf32>
    %c0_217 = arith.constant 0 : index
    %c0_218 = arith.constant 0 : index
    %384 = vector.load %arg11[%c0_217, %c0_218] : memref<32x1xf32, #tpu.memory_space<vmem>>, vector<32x1xf32>
    %385 = vector.broadcast %384 : vector<32x1xf32> to vector<32x256xf32>
    %386 = arith.addf %383, %385 : vector<32x256xf32>
    %c0_219 = arith.constant 0 : index
    %c0_220 = arith.constant 0 : index
    %387 = vector.load %arg12[%c0_219, %c0_220] : memref<32x1xf32, #tpu.memory_space<vmem>>, vector<32x1xf32>
    %c0_221 = arith.constant 0 : index
    %c0_222 = arith.constant 0 : index
    %388 = vector.load %arg13[%c0_221, %c0_222] : memref<32x1xf32, #tpu.memory_space<vmem>>, vector<32x1xf32>
    %389 = vector.shape_cast %386 : vector<32x256xf32> to vector<1x32x256xf32>
    %cst_223 = arith.constant dense<0.000000e+00> : vector<1xf32>
    %390 = vector.multi_reduction <add>, %389, %cst_223 [1, 2] : vector<1x32x256xf32> to vector<1xf32>
    %391 = vector.shape_cast %390 : vector<1xf32> to vector<1x1x1xf32>
    %392 = vector.extract %391[0, 0, 0] : f32 from vector<1x1x1xf32>
    %393 = arith.mulf %386, %386 : vector<32x256xf32>
    %394 = vector.shape_cast %393 : vector<32x256xf32> to vector<1x32x256xf32>
    %cst_224 = arith.constant dense<0.000000e+00> : vector<1xf32>
    %395 = vector.multi_reduction <add>, %394, %cst_224 [1, 2] : vector<1x32x256xf32> to vector<1xf32>
    %396 = vector.shape_cast %395 : vector<1xf32> to vector<1x1x1xf32>
    %397 = vector.extract %396[0, 0, 0] : f32 from vector<1x1x1xf32>
    %cst_225 = arith.constant 8.192000e+03 : f32
    %398 = arith.divf %392, %cst_225 : f32
    %cst_226 = arith.constant 8.192000e+03 : f32
    %399 = arith.divf %397, %cst_226 : f32
    %400 = arith.mulf %398, %398 : f32
    %401 = arith.subf %399, %400 : f32
    %cst_227 = arith.constant 0.000000e+00 : f32
    %402 = arith.maximumf %401, %cst_227 : f32
    %403 = vector.broadcast %398 : f32 to vector<32x256xf32>
    %404 = arith.subf %386, %403 : vector<32x256xf32>
    %cst_228 = arith.constant 9.99999974E-6 : f32
    %405 = arith.addf %402, %cst_228 : f32
    %406 = math.rsqrt %405 : f32
    %407 = vector.broadcast %406 : f32 to vector<32x256xf32>
    %408 = arith.mulf %404, %407 : vector<32x256xf32>
    %409 = vector.broadcast %387 : vector<32x1xf32> to vector<32x256xf32>
    %410 = arith.mulf %408, %409 : vector<32x256xf32>
    %411 = vector.broadcast %388 : vector<32x1xf32> to vector<32x256xf32>
    %412 = arith.addf %410, %411 : vector<32x256xf32>
    %cst_229 = arith.constant 0.000000e+00 : f32
    %413 = vector.broadcast %cst_229 : f32 to vector<32x256xf32>
    %414 = arith.maximumf %412, %413 : vector<32x256xf32>
    %c0_230 = arith.constant 0 : index
    %c0_231 = arith.constant 0 : index
    %c0_232 = arith.constant 0 : index
    %415 = vector.load %arg14[%c0_230, %c0_231, %c0_232] : memref<1x32x256xf32, #tpu.memory_space<vmem>>, vector<1x32x256xf32>
    %416 = vector.shape_cast %415 : vector<1x32x256xf32> to vector<32x256xf32>
    %417 = vector.shape_cast %414 : vector<32x256xf32> to vector<1x32x256xf32>
    tpu.vector_store %arg14[%c0_230, %c0_231, %c0_232], %417 {strides = array<i32>} : memref<1x32x256xf32, #tpu.memory_space<vmem>>, vector<1x32x256xf32>,
    return
  }
  func.func @transform_0(%arg0: i32) -> (i32, i32) {
    %c0_i32 = arith.constant 0 : i32
    %c0_i32_0 = arith.constant 0 : i32
    %c0_i32_1 = arith.constant 0 : i32
    return %c0_i32, %c0_i32_0 : i32, i32
  }
  func.func @transform_1(%arg0: i32) -> (i32, i32, i32) {
    %c0_i32 = arith.constant 0 : i32
    %c0_i32_0 = arith.constant 0 : i32
    %c0_i32_1 = arith.constant 0 : i32
    return %arg0, %c0_i32, %c0_i32_0 : i32, i32, i32
  }
  func.func @transform_2(%arg0: i32) -> (i32, i32) {
    %c0_i32 = arith.constant 0 : i32
    %c0_i32_0 = arith.constant 0 : i32
    %c0_i32_1 = arith.constant 0 : i32
    return %c0_i32, %c0_i32_0 : i32, i32
  }
  func.func @transform_3(%arg0: i32) -> (i32, i32) {
    %c0_i32 = arith.constant 0 : i32
    %c0_i32_0 = arith.constant 0 : i32
    %c0_i32_1 = arith.constant 0 : i32
    return %c0_i32, %c0_i32_0 : i32, i32
  }
  func.func @transform_4(%arg0: i32) -> (i32, i32, i32) {
    %c0_i32 = arith.constant 0 : i32
    %c0_i32_0 = arith.constant 0 : i32
    %c0_i32_1 = arith.constant 0 : i32
    %c0_i32_2 = arith.constant 0 : i32
    return %c0_i32, %c0_i32_0, %c0_i32_1 : i32, i32, i32
  }
  func.func @transform_5(%arg0: i32) -> (i32, i32) {
    %c0_i32 = arith.constant 0 : i32
    %c0_i32_0 = arith.constant 0 : i32
    %c0_i32_1 = arith.constant 0 : i32
    return %c0_i32, %c0_i32_0 : i32, i32
  }
  func.func @transform_6(%arg0: i32) -> (i32, i32) {
    %c0_i32 = arith.constant 0 : i32
    %c0_i32_0 = arith.constant 0 : i32
    %c0_i32_1 = arith.constant 0 : i32
    return %c0_i32, %c0_i32_0 : i32, i32
  }
  func.func @transform_7(%arg0: i32) -> (i32, i32) {
    %c0_i32 = arith.constant 0 : i32
    %c0_i32_0 = arith.constant 0 : i32
    %c0_i32_1 = arith.constant 0 : i32
    return %c0_i32, %c0_i32_0 : i32, i32
  }
  func.func @transform_8(%arg0: i32) -> (i32, i32) {
    %c0_i32 = arith.constant 0 : i32
    %c0_i32_0 = arith.constant 0 : i32
    %c0_i32_1 = arith.constant 0 : i32
    return %c0_i32, %c0_i32_0 : i32, i32
  }
  func.func @transform_9(%arg0: i32) -> (i32, i32) {
    %c0_i32 = arith.constant 0 : i32
    %c0_i32_0 = arith.constant 0 : i32
    %c0_i32_1 = arith.constant 0 : i32
    return %c0_i32, %c0_i32_0 : i32, i32
  }
  func.func @transform_10(%arg0: i32) -> (i32, i32) {
    %c0_i32 = arith.constant 0 : i32
    %c0_i32_0 = arith.constant 0 : i32
    %c0_i32_1 = arith.constant 0 : i32
    return %c0_i32, %c0_i32_0 : i32, i32
  }
  func.func @transform_11(%arg0: i32) -> (i32, i32) {
    %c0_i32 = arith.constant 0 : i32
    %c0_i32_0 = arith.constant 0 : i32
    %c0_i32_1 = arith.constant 0 : i32
    return %c0_i32, %c0_i32_0 : i32, i32
  }
  func.func @transform_12(%arg0: i32) -> (i32, i32) {
    %c0_i32 = arith.constant 0 : i32
    %c0_i32_0 = arith.constant 0 : i32
    %c0_i32_1 = arith.constant 0 : i32
    return %c0_i32, %c0_i32_0 : i32, i32
  }
  func.func @transform_13(%arg0: i32) -> (i32, i32, i32) {
    %c0_i32 = arith.constant 0 : i32
    %c0_i32_0 = arith.constant 0 : i32
    %c0_i32_1 = arith.constant 0 : i32
    return %arg0, %c0_i32, %c0_i32_0 : i32, i32, i32
  }
}

</mosaic_0001>

<bundles_post_ra>
// kernel: tpu_custom_call.1
= control target key start
LH: loop header
LB: loop body
LE: loop exit
PB: predicated region body
PF: predicated region fallthrough
CT: control target
= control target key end

     0   :  { %s11404_s0 = inlined_call_operand.hbm [shape: s32[1,256], index: 0, kind: input, shape index: {}]   ;;  %s11405_s1 = inlined_call_operand.vmem [shape: f32[2,32,256], index: 1, kind: input, shape index: {}]   ;;  %s11406_s2 = inlined_call_operand.vmem [shape: f32[64,32], index: 2, kind: input, shape index: {}]   ;;  %s11407_s3 = inlined_call_operand.vmem [shape: bf16[64,32], index: 3, kind: input, shape index: {}]   ;;  %s11408_s4 = inlined_call_operand.vmem [shape: bf16[3,64,288], index: 4, kind: input, shape index: {}]   ;;  %s11409_s5 = inlined_call_operand.vmem [shape: f32[64,4], index: 5, kind: input, shape index: {}]   ;;  %s11410_s6 = inlined_call_operand.vmem [shape: f32[64,5], index: 6, kind: input, shape index: {}]   ;;  %s11411_s7 = inlined_call_operand.vmem [shape: f32[64,5], index: 7, kind: input, shape index: {}]   ;;  %s11412_s8 = inlined_call_operand.vmem [shape: bf16[32,64], index: 8, kind: input, shape index: {}]   ;;  %s11413_s9 = inlined_call_operand.vmem [shape: bf16[32,256], index: 9, kind: input, shape index: {}]   ;;  %s11414_s10 = inlined_call_operand.vmem [shape: f32[32,1], index: 10, kind: input, shape index: {}]   ;;  %s11415_s11 = inlined_call_operand.vmem [shape: f32[32,1], index: 11, kind: input, shape index: {}]   ;;  %s11416_s12 = inlined_call_operand.vmem [shape: f32[32,1], index: 12, kind: input, shape index: {}]   ;;  %s11417_s13 = inlined_call_operand.hbm [shape: f32[2,32,256], index: 13, kind: output, shape index: {}]  }
   0x1   :  { %11483 = sst [smem:[#allocation51_spill]] %s11404_s0 }
   0x2   :  { %11484 = sst [smem:[#allocation52_spill]] %s11405_s1 }
   0x3   :  { %11485 = sst [smem:[#allocation53_spill]] %s11406_s2 }
   0x4   :  { %18 = vsyncpa [#allocation6], 0 }
   0x5   :  { %19 = vsyncpa [#allocation7], 0 }
   0x6   :  { %21 = vsyncpa [#allocation7 + $0x1], 0  ;;  %s8712_s25 = smov 0   ;;  %s8714_s26 = smov 0  }
   0x7   :  { %s8716_s27 = smov 0   ;;  %s8718_s28 = smov 0  }
   0x8 LB: > { %s8733_s29 = sadd.s32 4294967295, %s8605_s28   ;;  %s6829_s30 = sadd.s32 4294967294, %s8605_s28   ;;  %s8605_s28 = sphi %s8718_s28, %s11641_s28   ;;  %s8601_s27 = sphi %s8716_s27, %s11640_s27   ;;  %s8597_s26 = sphi %s8714_s26, %s11639_s26   ;;  %s8593_s25 = sphi %s8712_s25, %s11638_s25  }
   0x9   : > { %s8737_s14 = sadd.s32 1, %s8605_s28   ;;  %s312_s15 = sadd.s32 1, %s8601_s27 }
   0xa   : > { %s309_s16 = ssub.s32 %s8605_s28, %s8737_s14  ;;  %p322_p0 = scmp.ne.s32.totalorder %s8601_s27, %s8597_s26 }
   0xb   : > { %p310_p1 = scmp.eq.s32.totalorder %s309_s16, 0  ;;  %p323_p2 = scmp.eq.s32.totalorder %s8733_s29, 1 }
   0xc   : > { %p328_p3 = scmp.ne.s32.totalorder %s8597_s26, %s8593_s25  ;;  %p329_p4 = scmp.eq.s32.totalorder %s6829_s30, 1 }
   0xd   : > { %s8748_s17 = scalar_select %p310_p1, %s8601_s27, %s312_s15  }
   0xe   : > { %p8750_p5 = por %p323_p2, %p322_p0  ;;  %p8754_p6 = por %p329_p4, %p328_p3 }
   0xf   : > { %p6830_p7 = scmp.ge.s32.totalorder %s8605_s28, 1  ;;  %p336_p8 = scmp.lt.s32.totalorder %s8605_s28, 3 }
  0x10   : > { %s11487_s19 = scalar_select %p8754_p6, 1, 0 }
  0x11   : > { %p7791_p9 = scmp.eq.s32.totalorder %s8733_s29, 0  ;;  %p8761_p10 = pnand %p6830_p7, %p336_p8 }
  0x12   : > { %s8607_s21 = smov [#allocation5]  }
  0x13   : > { %s349_s22 = sshll.u32 %s8607_s21, 4  ;;  %p7783_p11 = pneg %p8761_p10  ;;  %s350_s22 = int_to_ptr.vmem [resolvable:$true] %s349_s22 }
  0x14   : > { %s8526_s23 = scalar_lea.vmem %s350_s22, 32  ;;  %p8534_p3 = scmp.lt.s32.totalorder %s350_s22, %s350_s22 }
  0x15   : > { %p7784_p12 = pnand %p7791_p9, %p7783_p11  ;;  %p8527_p0 = scmp.ne.s32.totalorder %s350_s22, %s8526_s23 }
  0x16   : > { %p8535_p4 = scmp.lt.s32.totalorder %s8526_s23, %s8526_s23 }
  0x17   : > { %p8517_p13 = pneg %p7784_p12 }
  0x18   : > { %p8536_p6 = por %p8535_p4, %p8534_p3 }
  0x19   : > { %p8529_p1 = pnand %p8527_p0, %p8517_p13 }
  0x1b   : > { %p8530_p2 = pneg %p8529_p1 }
  0x1d   : > { %p8537_p7 = pnand %p8536_p6, %p8530_p2 }
  0x1f   : > { %8540 = shalt.err (!%p8537_p7)
}
  0x20   : > { %s11489_s0 = sld [smem:[#allocation51_spill]] }
  0x22   : > { %403 = sbr.rel (%p8761_p10) target bundleno = 1902 (0x76e), region = 72 }
  0x26   : > { %7786 = dma.hbm_to_vmem [thread:$0]  (!%p7784_p12), %s11489_s0, 32, %s350_s22, [#allocation6]  }
  0x27   : > { %8584 = dma.done.wait (%p7791_p9), [#allocation6], 32  }
  0x28   : > { %8586 = vsyncadd (%p7791_p9), [#allocation6], 4294967264  ;;  %p447_p8 = scmp.lt.s32.totalorder %s8733_s29, 1  ;;  %v8608_v0 = vmov 0.0   ;;  %v11425_v1 = vmov 0   ;;  %s11490_s1 = sld [smem:[#allocation52_spill]]  ;;  %v1267_v49 = vlaneseq }
  0x29   : > { %587 = vmatprep.mubr.f32.mxu0 %v8608_v0  ;;  %917 = vmatprep.mubr.bf16.mxu1 %v11425_v1  ;;  %s8610_s23 = smov 3   ;;  %s11491_s2 = sld [smem:[#allocation53_spill]]  ;;  %vm498_vm0 = vcmask 261120   ;;  %v8614_v30 = vmov 0.0|0.0   ;;  %v8421_v37 = vld [vmem:[%s11407_s3] sm:$0xff]   ;;  %v8422_v42 = vld [vmem:[%s11407_s3 + $0x8] sm:$0xff]  }
  0x2a   : > { %s448_s15 = scalar_select %p447_p8, %s8733_s29, 1  ;;  %8311 = vset.pattern.permute.xlu1 %v11425_v1  ;;  %8310 = vset.pattern.permute.xlu0 %v11425_v1  ;;  %v8423_v45 = vld [vmem:[%s11407_s3 + $0x10] sm:$0xff]   ;;  %v8424_v47 = vld [vmem:[%s11407_s3 + $0x18] sm:$0xff]   ;;  %v9064_v50 = vld [vmem:[#allocation5] sm:$0x3]  ;;  %v1268_v51 = vshrl.u32 %v1267_v49, 7 }
  0x2b   : > { %s8611_s20 = smov 45   ;;  %s8613_s24 = smov 51   ;;  %vm1265_vm1 = vcmp.ge.s32.totalorder %v9064_v50, 3  ;;  %vm1613_vm2 = vcmask 23552   ;;  %vm1464_vm6 = vcmp.lt.s32.totalorder %v9064_v50, 13  ;;  %vm1512_vm8 = vcmask 367616  }
  0x2c   : > { %s7251_s16 = sshll.u32 %s448_s15, 6  ;;  %s8615_s30 = smov 80   ;;  %v9071_v52 = vsub.s32 1, %v1268_v51  ;;  %v1266_v53 = vsel %vm1265_vm1, 1, %v11425_v1  ;;  %v9078_v55 = vsub.s32 0, %v1268_v51  ;;  %vm1434_vm13 = vcmask 1043456  }
  0x2d   : > { %s8618_s21 = smov 6   ;;  %s8622_s15 = smov 102   ;;  %vm1436_vm14 = vcmask 392192   ;;  %vm1313_vm15 = vcmask 416768   ;;  %vm1973_vm1 = vcmask 654336  }
  0x2e   : > { %s8786_s22 = scalar_lea.vmem %s11490_s1, %s7251_s16  ;;  %s8612_s16 = smov 48   ;;  %v1274_v54 = vrot.slane %v1266_v53, %v9071_v52  ;;  %v1270_v60 = vrot.slane %v1266_v53, %v9078_v55 }
  0x2f   : > { %v8790_v2 = vld [vmem:[%s8786_s22 + $0x30] sm:$0xff]  ;;  %v8793_v3 = vld [vmem:[%s8786_s22 + $0x38] sm:$0xff]  ;;  %v8796_v4 = vld [vmem:[%s8786_s22 + $0x20] sm:$0xff] }
  0x30   : > { %v8800_v5 = vpack.i.bf16 %v8793_v3, %v8790_v2  ;;  %v8803_v6 = vld [vmem:[%s8786_s22 + $0x28] sm:$0xff]  ;;  %547 = vmatprep.subr.mxu0 %v8793_v3  ;;  %v8812_v8 = vld [vmem:[%s8786_s22 + $0x18] sm:$0xff]  ;;  %v8817_v9 = vld [vmem:[%s8786_s22 + $0x10] sm:$0xff]  ;;  %v8859_v17 = vpack.c.bf16 %v8796_v4, %v8608_v0  ;;  %v8871_v19 = vpack.c.bf16 %v8790_v2, %v8608_v0  ;;  %v8912_v26 = vpack.c.bf16 %v8793_v3, %v8793_v3 }
  0x31   : > { %v8808_v7 = vpack.i.bf16 %v8803_v6, %v8796_v4  ;;  %548 = vmatpush1.msra.mxu0 %v8790_v2  ;;  %v8822_v10 = vld [vmem:[%s8786_s22 + $0x8] sm:$0xff]  ;;  %v8826_v11 = vld [vmem:[%s8786_s22] sm:$0xff]  ;;  %v8849_v15 = vpack.i.bf16 %v8812_v8, %v8817_v9  ;;  %v492_v16 = vld [vmem:[%s11491_s2 + $0x10] sm:$0xff]  ;;  %v8895_v23 = vpack.c.bf16 %v8803_v6, %v8803_v6  ;;  %v8906_v25 = vpack.c.bf16 %v8812_v8, %v8812_v8 }
  0x32   : > { %7866 = vrot.lane.b32.xlu0 %v8800_v5, %s8610_s23  ;;  %549 = vmatprep.subr.mxu0 %v8803_v6  ;;  %v490_v12 = vld [vmem:[%s11491_s2] sm:$0xff]  ;;  %v8837_v13 = vpack.i.bf16 %v8822_v10, %v8826_v11  ;;  %v491_v14 = vld [vmem:[%s11491_s2 + $0x8] sm:$0xff]  ;;  %v493_v18 = vld [vmem:[%s11491_s2 + $0x18] sm:$0xff]  ;;  %v8890_v22 = vpack.c.bf16 %v8822_v10, %v8822_v10  ;;  %v8925_v28 = vpack.c.bf16 %v8826_v11, %v8608_v0  ;;  %vm1276_vm3 = vcmp.eq.s32.totalorder %v1274_v54, 1 }
  0x33   : > { %7861 = vrot.lane.b32.xlu1 %v8808_v7, %s8610_s23  ;;  %550 = vmatpush1.msra.mxu0 %v8796_v4  ;;  %v494_v20 = vld [vmem:[%s11491_s2 + $0x20] sm:$0xff]  ;;  %v495_v21 = vld [vmem:[%s11491_s2 + $0x28] sm:$0xff]  ;;  %v496_v24 = vld [vmem:[%s11491_s2 + $0x30] sm:$0xff]  ;;  %v8933_v29 = vpack.c.bf16 %v8817_v9, %v8608_v0  ;;  %v8945_v31 = vpack.c.bf16 %v8793_v3, %v8803_v6  ;;  %v8951_v32 = vpack.c.bf16 %v8790_v2, %v8796_v4  ;;  %vm1275_vm5 = vcmp.eq.s32.totalorder %v1270_v60, 1 }
  0x34   : > { %551 = vmatprep.subr.mxu0 %v8812_v8  ;;  %v497_v27 = vld [vmem:[%s11491_s2 + $0x38] sm:$0xff]  ;;  %v8956_v33 = vpack.c.bf16 %v8803_v6, %v8796_v4  ;;  %v8962_v34 = vpack.c.bf16 %v8812_v8, %v8822_v10  ;;  %v8968_v35 = vpack.c.bf16 %v8817_v9, %v8826_v11  ;;  %v8974_v36 = vpack.c.bf16 %v8793_v3, %v8790_v2  ;;  %vm9090_vm4 = vmpackc.low %vm1276_vm3, %vm1276_vm3 }
  0x35   : > { %552 = vmatpush1.msra.mxu0 %v8817_v9  ;;  %897 = vmatprep.subr.bf16.mxu1 %v8945_v31  ;;  %v8985_v38 = vpack.i.bf16 %v8608_v0, %v8793_v3  ;;  %v8991_v39 = vpack.c.bf16 %v8822_v10, %v8826_v11  ;;  %v8999_v40 = vpack.i.bf16 %v8608_v0, %v8803_v6  ;;  %vm9103_vm7 = vmpackc.low %vm1275_vm5, %vm1275_vm5  ;;  %vm1851_vm3 = vcmask 678912  }
  0x36   : > { %7886 = vrot.lane.b32.xlu0 %v8608_v0, %s8610_s23  ;;  %553 = vmatprep.subr.mxu0 %v8822_v10  ;;  %v9005_v41 = vpack.c.bf16 %v8812_v8, %v8817_v9  ;;  %v9013_v43 = vpack.i.bf16 %v8608_v0, %v8822_v10  ;;  %v9023_v44 = vpack.i.bf16 %v8790_v2, %v8796_v4  ;;  %vm2911_vm5 = vcmp.ge.s32.totalorder %v9064_v50, 6 }
  0x37   : > { %7871 = vrot.lane.b32.xlu1 %v8608_v0, %s8610_s23  ;;  %554 = vmatpush1.msra.mxu0 %v8826_v11  ;;  %v9039_v46 = vpack.i.bf16 %v8608_v0, %v8812_v8  ;;  %v9047_v48 = vpack.i.bf16 %v8817_v9, %v8826_v11 }
  0x38   : > { %6838 = vmatmul.mubr.msk.f32.vlgmr.msra.gmra.mxu0 %vm498_vm0, %v490_v12  ;;  %898 = vmatpush1.bf16.msra.mxu1 %v8951_v32 }
  0x39   : > { %593 = vmatprep.mubr.f32.mxu0 %v8608_v0  ;;  %899 = vmatprep.subr.bf16.mxu1 %v8962_v34 }
  0x3a   : > { %7896 = vrot.lane.b32.xlu0 %v8800_v5, %s8611_s20 }
  0x3b   : > { %7876 = vrot.lane.b32.xlu1 %v8837_v13, %s8610_s23 }
  0x3c   : > { %6839 = vmatmul.mubr.msk.f32.gmra.mxu0 %vm498_vm0, %v491_v14  ;;  %900 = vmatpush1.bf16.msra.mxu1 %v8968_v35 }
  0x3d   : > { %599 = vmatprep.mubr.f32.mxu0 %v8608_v0 }
  0x3e   : > { %7906 = vrot.lane.b32.xlu0 %v8837_v13, %s8611_s20 }
  0x3f   : > { %7881 = vrot.lane.b32.xlu1 %v8849_v15, %s8610_s23  ;;  %6850 = vmatmul.mubr.msk.bf16.vlgmr.msra.gmra.mxu1 %vm498_vm0, %v8421_v37  ;;  %s8616_s23 = smov 77  }
  0x40   : > { %6840 = vmatmul.mubr.msk.f32.gmra.mxu0 %vm498_vm0, %v492_v16  ;;  %927 = vmatprep.mubr.bf16.mxu1 %v11425_v1 }
  0x41   : > { %605 = vmatprep.mubr.f32.mxu0 %v8608_v0 }
  0x42   : > { %1418 = vrot.lane.b32.xlu0 %v8859_v17, %s8612_s16 }
  0x43   : > { %7891 = vrot.lane.b32.xlu1 %v8808_v7, %s8611_s20 }
  0x44   : > { %6841 = vmatmul.mubr.msk.f32.gmra.mxu0 %vm498_vm0, %v493_v18 }
  0x45   : > { %611 = vmatprep.mubr.f32.mxu0 %v8608_v0 }
  0x46   : > { %1422 = vrot.lane.b32.xlu0 %v8871_v19, %s8612_s16 }
  0x47   : > { %7901 = vrot.lane.b32.xlu1 %v8608_v0, %s8611_s20  ;;  %6851 = vmatmul.mubr.msk.bf16.gmra.mxu1 %vm498_vm0, %v8422_v42 }
  0x48   : > { %6842 = vmatmul.mubr.msk.f32.gmra.mxu0 %vm498_vm0, %v494_v20  ;;  %937 = vmatprep.mubr.bf16.mxu1 %v11425_v1 }
  0x49   : > { %617 = vmatprep.mubr.f32.mxu0 %v8608_v0 }
  0x4a   : > { %7916 = vrot.lane.b32.xlu0 %v8608_v0, %s8611_s20 }
  0x4b   : > { %7911 = vrot.lane.b32.xlu1 %v8849_v15, %s8611_s20  ;;  %s8624_s20 = smov 38  }
  0x4c   : > { %6843 = vmatmul.mubr.msk.f32.gmra.mxu0 %vm498_vm0, %v495_v21 }
  0x4d   : > { %623 = vmatprep.mubr.f32.mxu0 %v8608_v0 }
  0x4e   : > { %1412 = vrot.lane.b32.xlu0 %v8890_v22, %s8612_s16 }
  0x4f   : > { %1420 = vrot.lane.b32.xlu1 %v8895_v23, %s8612_s16  ;;  %6852 = vmatmul.mubr.msk.bf16.gmra.mxu1 %vm498_vm0, %v8423_v45 }
  0x50   : > { %6844 = vmatmul.mubr.msk.f32.gmra.mxu0 %vm498_vm0, %v496_v24  ;;  %947 = vmatprep.mubr.bf16.mxu1 %v11425_v1 }
  0x51   : > { %629 = vmatprep.mubr.f32.mxu0 %v8608_v0 }
  0x52   : > { %1416 = vrot.lane.b32.xlu0 %v8906_v25, %s8612_s16 }
  0x53   : > { %1424 = vrot.lane.b32.xlu1 %v8912_v26, %s8612_s16 }
  0x54   : > { %6845 = vmatmul.mubr.msk.f32.gmra.mxu0 %vm498_vm0, %v497_v27 }
  0x56   : > { %7926 = vrot.lane.b32.xlu0 %v8800_v5, %s8613_s24 }
  0x57   : > { %1410 = vrot.lane.b32.xlu1 %v8925_v28, %s8612_s16  ;;  %6853 = vmatmul.mubr.msk.bf16.gmra.mxu1 %vm498_vm0, %v8424_v47 }
  0x58   : > { %2547 = vmatprep.mubr.bf16.mxu1 %v11425_v1 }
  0x5a   : > { %7936 = vrot.lane.b32.xlu0 %v8837_v13, %s8613_s24 }
  0x5b   : > { %1414 = vrot.lane.b32.xlu1 %v8933_v29, %s8612_s16  ;;  %s8619_s16 = smov 125  }
  0x5e   : > { %7946 = vrot.lane.b32.xlu0 %v8608_v0, %s8613_s24 }
  0x5f   : > { %7921 = vrot.lane.b32.xlu1 %v8808_v7, %s8613_s24 }
  0x62   : > { %1958 = vrot.lane.b32.xlu0 %v8614_v30, %s8615_s30 }
  0x63   : > { %7931 = vrot.lane.b32.xlu1 %v8608_v0, %s8613_s24 }
  0x66   : > { %1962 = vrot.lane.b32.xlu0 %v8614_v30, %s8615_s30 }
  0x67   : > { %7941 = vrot.lane.b32.xlu1 %v8849_v15, %s8613_s24  ;;  %s8617_s24 = smov 83  }
  0x6a   : > { %1950 = vrot.lane.b32.xlu0 %v8614_v30, %s8615_s30 }
  0x6b   : > { %1956 = vrot.lane.b32.xlu1 %v8956_v33, %s8615_s30 }
  0x6e   : > { %1954 = vrot.lane.b32.xlu0 %v8614_v30, %s8615_s30 }
  0x6f   : > { %1960 = vrot.lane.b32.xlu1 %v8974_v36, %s8615_s30 }
  0x72   : > { %7956 = vrot.lane.b32.xlu0 %v8985_v38, %s8616_s23 }
  0x73   : > { %1948 = vrot.lane.b32.xlu1 %v8991_v39, %s8615_s30 }
  0x76   : > { %7966 = vrot.lane.b32.xlu0 %v8999_v40, %s8617_s24 }
  0x77   : > { %1952 = vrot.lane.b32.xlu1 %v9005_v41, %s8615_s30  ;;  %s8623_s30 = smov 32  }
  0x7a   : > { %7976 = vrot.lane.b32.xlu0 %v9013_v43, %s8616_s23 }
  0x7b   : > { %7951 = vrot.lane.b32.xlu1 %v8999_v40, %s8616_s23 }
  0x7e   : > { %7986 = vrot.lane.b32.xlu0 %v9023_v44, %s8617_s24 }
  0x7f   : > { %7961 = vrot.lane.b32.xlu1 %v9023_v44, %s8616_s23 }
  0x82   : > { %7996 = vrot.lane.b32.xlu0 %v9013_v43, %s8617_s24 }
  0x83   : > { %7971 = vrot.lane.b32.xlu1 %v8985_v38, %s8617_s24 }
  0x86   : > { %8006 = vrot.lane.b32.xlu0 %v8808_v7, %s8618_s21 }
  0x87   : > { %7981 = vrot.lane.b32.xlu1 %v9039_v46, %s8616_s23 }
  0x8a   : > { %8016 = vrot.lane.b32.xlu0 %v9047_v48, %s8617_s24 }
  0x8b   : > { %7991 = vrot.lane.b32.xlu1 %v9047_v48, %s8616_s23  ;;  %s8620_s23 = smov 90  }
  0x8e   : > { %8026 = vrot.lane.b32.xlu0 %v8999_v40, %s8619_s16 }
  0x8f   : > { %8001 = vrot.lane.b32.xlu1 %v9039_v46, %s8617_s24  ;;  %s8621_s24 = smov 96  }
  0x92   : > { %8036 = vrot.lane.b32.xlu0 %v8837_v13, %s8618_s21 }
  0x93   : > { %8011 = vrot.lane.b32.xlu1 %v8800_v5, %s8618_s21 }
  0x96   : > { %8046 = vrot.lane.b32.xlu0 %v9023_v44, %s8619_s16 }
  0x97   : > { %8021 = vrot.lane.b32.xlu1 %v8608_v0, %s8618_s21 }
  0x9a   : > { %8056 = vrot.lane.b32.xlu0 %v9013_v43, %s8619_s16 }
  0x9b   : > { %8031 = vrot.lane.b32.xlu1 %v8985_v38, %s8619_s16 }
  0x9e   : > { %8066 = vrot.lane.b32.xlu0 %v8808_v7, %s8620_s23 }
  0x9f   : > { %8041 = vrot.lane.b32.xlu1 %v8849_v15, %s8618_s21 }
  0xa2   : > { %8076 = vrot.lane.b32.xlu0 %v9047_v48, %s8619_s16 }
  0xa3   : > { %8051 = vrot.lane.b32.xlu1 %v8608_v0, %s8618_s21  ;;  %s8625_s21 = smov 122  }
  0xa4   : > { %v7867_v56 = vpop.permute.xlu0 %7866 }
  0xa5   : > { %v7869_v57 = vunpack.i.h.bf16 %v7867_v56  ;;  %v7868_v58 = vunpack.i.l.bf16 %v7867_v56  ;;  %v7862_v59 = vpop.permute.xlu1 %7861 }
  0xa6   : > { %v7864_v61 = vunpack.i.h.bf16 %v7862_v59  ;;  %v7863_v62 = vunpack.i.l.bf16 %v7862_v59  ;;  %8086 = vrot.lane.b32.xlu0 %v8837_v13, %s8620_s23 }
  0xa7   : > { %v1621_v63 = vsel %vm1613_vm2, %v7868_v58, %v7869_v57  ;;  %8061 = vrot.lane.b32.xlu1 %v9039_v46, %s8619_s16  ;;  %s11418_s16 = smov 25  }
  0xa8   : > { %v1619_v2 = vsel %vm1613_vm2, %v7863_v62, %v7864_v61  ;;  %v7887_v3 = vpop.permute.xlu0 %7886 }
  0xa9   : > { %v7872_v8 = vpop.permute.xlu1 %7871  ;;  %v7446_v9 = vpack.c.bf16 %v1621_v63, %v1619_v2  ;;  %v7888_v24 = vunpack.i.l.bf16 %v7887_v3  ;;  %v7889_v49 = vunpack.i.h.bf16 %v7887_v3 }
  0xaa   : > { %v7874_v10 = vunpack.i.h.bf16 %v7872_v8  ;;  %v7873_v11 = vunpack.i.l.bf16 %v7872_v8  ;;  %3064 = vrot.lane.b32.xlu0 %v8859_v17, %s8621_s24  ;;  %v1465_v17 = vsel %vm1464_vm6, 1, %v11425_v1  ;;  %vm3258_vm6 = vcmask 48128  }
  0xab   : > { %8071 = vrot.lane.b32.xlu1 %v8800_v5, %s8620_s23  ;;  %7447 = vmatprep.subr.msk.bf16.mxu0 %vm9090_vm4, %v7446_v9  ;;  %v1473_v47 = vrot.slane %v1465_v17, %v9071_v52  ;;  %v1469_v2 = vrot.slane %v1465_v17, %v9078_v55 }
  0xac   : > { %v1620_v12 = vsel %vm1613_vm2, %v7874_v10, %v7868_v58  ;;  %v1618_v14 = vsel %vm1613_vm2, %v7873_v11, %v7863_v62  ;;  %v7897_v16 = vpop.permute.xlu0 %7896 }
  0xad   : > { %v7449_v20 = vpack.c.bf16 %v1620_v12, %v1618_v14  ;;  %v7877_v21 = vpop.permute.xlu1 %7876  ;;  %v7898_v54 = vunpack.i.l.bf16 %v7897_v16  ;;  %vm1475_vm9 = vcmp.eq.s32.totalorder %v1473_v47, 1  ;;  %vm1474_vm11 = vcmp.eq.s32.totalorder %v1469_v2, 1 }
  0xae   : > { %3068 = vrot.lane.b32.xlu0 %v8871_v19, %s8621_s24  ;;  %v7879_v27 = vunpack.i.h.bf16 %v7877_v21  ;;  %v7878_v37 = vunpack.i.l.bf16 %v7877_v21  ;;  %v7899_v19 = vunpack.i.h.bf16 %v7897_v16  ;;  %vm9136_vm10 = vmpackc.low %vm1475_vm9, %vm1475_vm9 }
  0xaf   : > { %8081 = vrot.lane.b32.xlu1 %v8608_v0, %s8620_s23  ;;  %7450 = vmatpush1.bf16.msk.msra.mxu0 %vm9103_vm7, %v7449_v20  ;;  %vm9148_vm12 = vmpackc.low %vm1474_vm11, %vm1474_vm11 }
  0xb0   : > { %v7907_v42 = vpop.permute.xlu0 %7906  ;;  %v1614_v56 = vsel %vm1613_vm2, %v7888_v24, %v7878_v37  ;;  %v1615_v57 = vsel %vm1613_vm2, %v7878_v37, %v7879_v27  ;;  %v1520_v9 = vsel %vm1512_vm8, %v7898_v54, %v7899_v19 }
  0xb1   : > { %v7882_v45 = vpop.permute.xlu1 %7881  ;;  %v7909_v20 = vunpack.i.h.bf16 %v7907_v42  ;;  %v7908_v21 = vunpack.i.l.bf16 %v7907_v42 }
  0xb2   : > { %v7884_v51 = vunpack.i.h.bf16 %v7882_v45  ;;  %v7883_v53 = vunpack.i.l.bf16 %v7882_v45  ;;  %8096 = vrot.lane.b32.xlu0 %v8608_v0, %s8620_s23 }
  0xb3   : > { %8091 = vrot.lane.b32.xlu1 %v8849_v15, %s8620_s23  ;;  %s8626_s23 = smov 26  }
  0xb4   : > { %v1616_v58 = vsel %vm1613_vm2, %v7889_v49, %v7883_v53  ;;  %v1617_v59 = vsel %vm1613_vm2, %v7883_v53, %v7884_v51  ;;  %v9123_v60 = vpop.permute.xlu0 %1418  ;;  %v1514_v53 = vsel %vm1512_vm8, %v7908_v21, %v7909_v20  ;;  %vm2037_vm2 = vcmask 629760  }
  0xb5   : > { %v7455_v61 = vpack.c.bf16 %v1616_v58, %v1614_v56  ;;  %v7892_v62 = vpop.permute.xlu1 %7891  ;;  %v7452_v63 = vpack.c.bf16 %v1617_v59, %v1615_v57 }
  0xb6   : > { %v7894_v3 = vunpack.i.h.bf16 %v7892_v62  ;;  %v7893_v8 = vunpack.i.l.bf16 %v7892_v62  ;;  %3058 = vrot.lane.b32.xlu0 %v8890_v22, %s8621_s24 }
  0xb7   : > { %3066 = vrot.lane.b32.xlu1 %v8895_v23, %s8621_s24  ;;  %7453 = vmatprep.subr.msk.bf16.mxu0 %vm9090_vm4, %v7452_v63 }
  0xb8   : > { %v1518_v10 = vsel %vm1512_vm8, %v7893_v8, %v7894_v3  ;;  %7456 = vmatpush1.bf16.msk.msra.mxu0 %vm9103_vm7, %v7455_v61  ;;  %v1423_v11 = vpop.permute.xlu0 %1422 }
  0xb9   : > { %v7902_v14 = vpop.permute.xlu1 %7901  ;;  %v7458_v22 = vpack.c.bf16 %v1520_v9, %v1518_v10  ;;  %v1432_v63 = vrot.slane %v1423_v11, 4 }
  0xba   : > { %v7904_v16 = vunpack.i.h.bf16 %v7902_v14  ;;  %v7903_v23 = vunpack.i.l.bf16 %v7902_v14  ;;  %3062 = vrot.lane.b32.xlu0 %v8906_v25, %s8621_s24 }
  0xbb   : > { %3070 = vrot.lane.b32.xlu1 %v8912_v26, %s8621_s24  ;;  %7459 = vmatprep.subr.msk.bf16.mxu0 %vm9136_vm10, %v7458_v22 }
  0xbc   : > { %v1519_v17 = vsel %vm1512_vm8, %v7904_v16, %v7898_v54  ;;  %v1517_v24 = vsel %vm1512_vm8, %v7903_v23, %v7893_v8  ;;  %v7917_v27 = vpop.permute.xlu0 %7916 }
  0xbd   : > { %v7461_v45 = vpack.c.bf16 %v1519_v17, %v1517_v24  ;;  %v7919_v47 = vunpack.i.h.bf16 %v7917_v27  ;;  %v7918_v25 = vunpack.i.l.bf16 %v7917_v27  ;;  %v7912_v49 = vpop.permute.xlu1 %7911 }
  0xbe   : > { %v7914_v51 = vunpack.i.h.bf16 %v7912_v49  ;;  %v7913_v26 = vunpack.i.l.bf16 %v7912_v49  ;;  %8106 = vrot.lane.b32.xlu0 %v8800_v5, %s8622_s15  ;;  %v1430_v5 = vrot.slane %v9123_v60, 4 }
  0xbf   : > { %v1513_v42 = vsel %vm1512_vm8, %v7918_v25, %v7908_v21  ;;  %3056 = vrot.lane.b32.xlu1 %v8925_v28, %s8621_s24  ;;  %7462 = vmatpush1.bf16.msk.msra.mxu0 %vm9148_vm12, %v7461_v45 }
  0xc0   : > { %v1515_v19 = vsel %vm1512_vm8, %v7919_v47, %v7913_v26  ;;  %v1516_v54 = vsel %vm1512_vm8, %v7913_v26, %v7914_v51  ;;  %v1413_v56 = vpop.permute.xlu0 %1412 }
  0xc1   : > { %v7467_v57 = vpack.c.bf16 %v1515_v19, %v1513_v42  ;;  %v1421_v58 = vpop.permute.xlu1 %1420  ;;  %v7464_v59 = vpack.c.bf16 %v1516_v54, %v1514_v53 }
  0xc2   : > { %v1431_v61 = vrot.slane %v1421_v58, 4  ;;  %8116 = vrot.lane.b32.xlu0 %v8837_v13, %s8622_s15 }
  0xc3   : > { %3060 = vrot.lane.b32.xlu1 %v8933_v29, %s8621_s24  ;;  %7465 = vmatprep.subr.msk.bf16.mxu0 %vm9136_vm10, %v7464_v59 }
  0xc4   : > { %7468 = vmatpush1.bf16.msk.msra.mxu0 %vm9148_vm12, %v7467_v57  ;;  %v1417_v28 = vpop.permute.xlu0 %1416  ;;  %v1440_v2 = vsel %vm1434_vm13, %v1430_v5, %v1431_v61 }
  0xc5   : > { %v1425_v62 = vpop.permute.xlu1 %1424  ;;  %v1441_v9 = vsel %vm1436_vm14, %v9123_v60, %v1440_v2  ;;  %v1429_v21 = vrot.slane %v1417_v28, 4 }
  0xc6   : > { %v1433_v3 = vrot.slane %v1425_v62, 4  ;;  %8126 = vrot.lane.b32.xlu0 %v8608_v0, %s8622_s15 }
  0xc7   : > { %8101 = vrot.lane.b32.xlu1 %v8808_v7, %s8622_s15  ;;  %v1427_v7 = vrot.slane %v1413_v56, 4 }
  0xc8   : > { %v1442_v13 = vsel %vm1434_vm13, %v1432_v63, %v1433_v3  ;;  %v7927_v29 = vpop.permute.xlu0 %7926 }
  0xc9   : > { %v1411_v8 = vpop.permute.xlu1 %1410  ;;  %v1443_v10 = vsel %vm1436_vm14, %v1423_v11, %v1442_v13  ;;  %v7929_v11 = vunpack.i.h.bf16 %v7927_v29  ;;  %v7928_v24 = vunpack.i.l.bf16 %v7927_v29 }
  0xca   : > { %v1426_v14 = vrot.slane %v1411_v8, 4  ;;  %3603 = vrot.lane.b32.xlu0 %v8614_v30, %s8623_s30  ;;  %v6924_v22 = vcombine.low %v1441_v9, %v1443_v10  ;;  %v6925_v16 = vcombine.high %v1441_v9, %v1443_v10 }
  0xcb   : > { %8111 = vrot.lane.b32.xlu1 %v8608_v0, %s8622_s15 }
  0xcc   : > { %2450 = vmatprep.subr.bf16.mxu0 %v6925_v16  ;;  %v7937_v23 = vpop.permute.xlu0 %7936  ;;  %v1435_v60 = vsel %vm1434_vm13, %v1426_v14, %v1427_v7 }
  0xcd   : > { %v1415_v20 = vpop.permute.xlu1 %1414  ;;  %2451 = vmatpush1.bf16.msra.mxu0 %v6924_v22  ;;  %v1437_v47 = vsel %vm1436_vm14, %v1411_v8, %v1435_v60  ;;  %v7939_v61 = vunpack.i.h.bf16 %v7937_v23 }
  0xce   : > { %v1428_v17 = vrot.slane %v1415_v20, 4  ;;  %3607 = vrot.lane.b32.xlu0 %v8614_v30, %s8623_s30 }
  0xcf   : > { %8121 = vrot.lane.b32.xlu1 %v8849_v15, %s8622_s15  ;;  %v1321_v15 = vsel %vm1313_vm15, %v7928_v24, %v7929_v11  ;;  %s11510_s15 = smov 25  }
  0xd0   : > { %v1438_v27 = vsel %vm1434_vm13, %v1428_v17, %v1429_v21  ;;  %v7947_v45 = vpop.permute.xlu0 %7946 }
  0xd1   : > { %v1439_v25 = vsel %vm1436_vm14, %v1415_v20, %v1438_v27  ;;  %v7922_v49 = vpop.permute.xlu1 %7921  ;;  %v7948_v5 = vunpack.i.l.bf16 %v7947_v45  ;;  %v7949_v13 = vunpack.i.h.bf16 %v7947_v45  ;;  %vm3109_vm14 = vcmp.lt.s32.totalorder %v9064_v50, 10 }
  0xd2   : > { %v6922_v51 = vcombine.low %v1437_v47, %v1439_v25  ;;  %v7924_v26 = vunpack.i.h.bf16 %v7922_v49  ;;  %v7923_v42 = vunpack.i.l.bf16 %v7922_v49  ;;  %3595 = vrot.lane.b32.xlu0 %v8614_v30, %s8623_s30  ;;  %v6923_v53 = vcombine.high %v1437_v47, %v1439_v25 }
  0xd3   : > { %3601 = vrot.lane.b32.xlu1 %v8956_v33, %s8623_s30  ;;  %v7938_v33 = vunpack.i.l.bf16 %v7937_v23 }
  0xd4   : > { %v1319_v19 = vsel %vm1313_vm15, %v7923_v42, %v7924_v26  ;;  %2452 = vmatprep.subr.bf16.mxu0 %v6923_v53  ;;  %v1959_v54 = vpop.permute.xlu0 %1958 }
  0xd5   : > { %v7932_v56 = vpop.permute.xlu1 %7931  ;;  %2453 = vmatpush1.bf16.msra.mxu0 %v6922_v51  ;;  %v7470_v57 = vpack.c.bf16 %v1321_v15, %v1319_v19  ;;  %v1314_v9 = vsel %vm1313_vm15, %v7948_v5, %v7938_v33 }
  0xd6   : > { %v7934_v58 = vunpack.i.h.bf16 %v7932_v56  ;;  %v7933_v59 = vunpack.i.l.bf16 %v7932_v56  ;;  %3599 = vrot.lane.b32.xlu0 %v8614_v30, %s8623_s30 }
  0xd7   : > { %3605 = vrot.lane.b32.xlu1 %v8974_v36, %s8623_s30  ;;  %7471 = vmatprep.subr.msk.bf16.mxu0 %vm9090_vm4, %v7470_v57  ;;  %v1315_v36 = vsel %vm1313_vm15, %v7938_v33, %v7939_v61 }
  0xd8   : > { %v1320_v28 = vsel %vm1313_vm15, %v7934_v58, %v7928_v24  ;;  %v1318_v62 = vsel %vm1313_vm15, %v7933_v59, %v7923_v42  ;;  %v1963_v63 = vpop.permute.xlu0 %1962 }
  0xd9   : > { %v7473_v2 = vpack.c.bf16 %v1320_v28, %v1318_v62  ;;  %v7942_v3 = vpop.permute.xlu1 %7941  ;;  %v1971_v17 = vrot.slane %v1963_v63, 4 }
  0xda   : > { %v7944_v29 = vunpack.i.h.bf16 %v7942_v3  ;;  %v7943_v8 = vunpack.i.l.bf16 %v7942_v3  ;;  %8136 = vrot.lane.b32.xlu0 %v8985_v38, %s8624_s20 }
  0xdb   : > { %3593 = vrot.lane.b32.xlu1 %v8991_v39, %s8623_s30  ;;  %7474 = vmatpush1.bf16.msk.msra.mxu0 %vm9103_vm7, %v7473_v2  ;;  %v1969_v39 = vrot.slane %v1959_v54, 4 }
  0xdc   : > { %v1316_v10 = vsel %vm1313_vm15, %v7949_v13, %v7943_v8  ;;  %v1317_v14 = vsel %vm1313_vm15, %v7943_v8, %v7944_v29  ;;  %v1951_v22 = vpop.permute.xlu0 %1950  ;;  %vm3157_vm15 = vcmask 736256  }
  0xdd   : > { %v7479_v16 = vpack.c.bf16 %v1316_v10, %v1314_v9  ;;  %v1957_v7 = vpop.permute.xlu1 %1956  ;;  %v7476_v23 = vpack.c.bf16 %v1317_v14, %v1315_v36  ;;  %v1965_v42 = vrot.slane %v1951_v22, 4 }
  0xde   : > { %v1968_v20 = vrot.slane %v1957_v7, 4  ;;  %8146 = vrot.lane.b32.xlu0 %v9013_v43, %s8624_s20 }
  0xdf   : > { %3597 = vrot.lane.b32.xlu1 %v9005_v41, %s8623_s30  ;;  %7477 = vmatprep.subr.msk.bf16.mxu0 %vm9090_vm4, %v7476_v23  ;;  %s8627_s30 = smov 9  }
  0xe0   : > { %7480 = vmatpush1.bf16.msk.msra.mxu0 %vm9103_vm7, %v7479_v16  ;;  %v1955_v21 = vpop.permute.xlu0 %1954  ;;  %v1977_v11 = vsel %vm1434_vm13, %v1968_v20, %v1969_v39 }
  0xe1   : > { %v1961_v60 = vpop.permute.xlu1 %1960  ;;  %v1978_v45 = vsel %vm1973_vm1, %v1957_v7, %v1977_v11  ;;  %v1967_v19 = vrot.slane %v1955_v21, 4 }
  0xe2   : > { %v1970_v24 = vrot.slane %v1961_v60, 4  ;;  %8156 = vrot.lane.b32.xlu0 %v9047_v48, %s8624_s20 }
  0xe3   : > { %8131 = vrot.lane.b32.xlu1 %v8999_v40, %s8624_s20 }
  0xe4   : > { %v1979_v41 = vsel %vm1434_vm13, %v1970_v24, %v1971_v17  ;;  %v7957_v27 = vpop.permute.xlu0 %7956 }
  0xe5   : > { %v1980_v47 = vsel %vm1973_vm1, %v1961_v60, %v1979_v41  ;;  %v1949_v25 = vpop.permute.xlu1 %1948  ;;  %v7958_v57 = vunpack.i.l.bf16 %v7957_v27 }
  0xe6   : > { %v6948_v49 = vcombine.low %v1978_v45, %v1980_v47  ;;  %v1964_v51 = vrot.slane %v1949_v25, 4  ;;  %8166 = vrot.lane.b32.xlu0 %v8985_v38, %s8625_s21  ;;  %v6949_v26 = vcombine.high %v1978_v45, %v1980_v47  ;;  %v7959_v38 = vunpack.i.h.bf16 %v7957_v27 }
  0xe7   : > { %8141 = vrot.lane.b32.xlu1 %v9023_v44, %s8624_s20 }
  0xe8   : > { %2458 = vmatprep.subr.bf16.mxu0 %v6949_v26  ;;  %v7967_v53 = vpop.permute.xlu0 %7966  ;;  %v1972_v54 = vsel %vm1434_vm13, %v1964_v51, %v1965_v42  ;;  %v2045_v2 = vsel %vm2037_vm2, %v7958_v57, %v7959_v38 }
  0xe9   : > { %v1953_v15 = vpop.permute.xlu1 %1952  ;;  %2459 = vmatpush2.bf16.msra.mxu0 %v6948_v49  ;;  %v1974_v59 = vsel %vm1973_vm1, %v1949_v25, %v1972_v54  ;;  %v7969_v9 = vunpack.i.h.bf16 %v7967_v53 }
  0xea   : > { %v1966_v56 = vrot.slane %v1953_v15, 4  ;;  %8176 = vrot.lane.b32.xlu0 %v9013_v43, %s8625_s21 }
  0xeb   : > { %8151 = vrot.lane.b32.xlu1 %v9039_v46, %s8624_s20  ;;  %v9251_v46 = vld [vmem:[%s8786_s22 + $0x30] sm:$0xff]  ;;  %s8628_s20 = smov 7  }
  0xec   : > { %v1975_v44 = vsel %vm1434_vm13, %v1966_v56, %v1967_v19  ;;  %v9242_v58 = vpop.permute.xlu0 %7976  ;;  %v8170_v63 = vpack.i.bf16 %v9251_v46, %v8796_v4  ;;  %v9261_v4 = vld [vmem:[%s8786_s22 + $0x18] sm:$0xff] }
  0xed   : > { %v1976_v61 = vsel %vm1973_vm1, %v1953_v15, %v1975_v44  ;;  %v7952_v33 = vpop.permute.xlu1 %7951  ;;  %v9265_v10 = vpack.i.bf16 %v8608_v0, %v9261_v4  ;;  %v7979_v11 = vunpack.i.h.bf16 %v9242_v58  ;;  %v7978_v24 = vunpack.i.l.bf16 %v9242_v58 }
  0xee   : > { %v6946_v5 = vcombine.low %v1974_v59, %v1976_v61  ;;  %v7954_v28 = vunpack.i.h.bf16 %v7952_v33  ;;  %v7953_v62 = vunpack.i.l.bf16 %v7952_v33  ;;  %8186 = vrot.lane.b32.xlu0 %v9047_v48, %s8625_s21  ;;  %v6947_v43 = vcombine.high %v1974_v59, %v1976_v61 }
  0xef   : > { %8161 = vrot.lane.b32.xlu1 %v8999_v40, %s8625_s21  ;;  %v7968_v40 = vunpack.i.l.bf16 %v7967_v53  ;;  %v2039_v19 = vsel %vm2037_vm2, %v7978_v24, %v7979_v11  ;;  %v2912_v33 = vsel %vm2911_vm5, 1, %v11425_v1  ;;  %vm2959_vm5 = vcmask 834560  }
  0xf0   : > { %v2043_v3 = vsel %vm2037_vm2, %v7953_v62, %v7954_v28  ;;  %2460 = vmatprep.subr.bf16.mxu0 %v6947_v43  ;;  %v7987_v13 = vpop.permute.xlu0 %7986 }
  0xf1   : > { %v7962_v29 = vpop.permute.xlu1 %7961  ;;  %2461 = vmatpush2.bf16.msra.mxu0 %v6946_v5  ;;  %v7506_v8 = vpack.c.bf16 %v2045_v2, %v2043_v3  ;;  %v7989_v14 = vunpack.i.h.bf16 %v7987_v13  ;;  %v7988_v22 = vunpack.i.l.bf16 %v7987_v13  ;;  %v1857_v17 = vsel %vm1851_vm3, %v7968_v40, %v7969_v9 }
  0xf2   : > { %v7964_v48 = vunpack.i.h.bf16 %v7962_v29  ;;  %v7963_v36 = vunpack.i.l.bf16 %v7962_v29 }
  0xf3   : > { %8171 = vrot.lane.b32.xlu1 %v8170_v63, %s8625_s21  ;;  %7507 = vmatprep.subr.msk.bf16.mxu1 %vm9136_vm10, %v7506_v8  ;;  %v1856_v41 = vsel %vm1851_vm3, %v7988_v22, %v7968_v40 }
  0xf4   : > { %v2044_v16 = vsel %vm2037_vm2, %v7964_v48, %v7958_v57  ;;  %v2042_v7 = vsel %vm2037_vm2, %v7963_v36, %v7953_v62  ;;  %v7997_v23 = vpop.permute.xlu0 %7996  ;;  %v2920_v48 = vrot.slane %v2912_v33, %v9071_v52 }
  0xf5   : > { %v7509_v20 = vpack.c.bf16 %v2044_v16, %v2042_v7  ;;  %v7972_v39 = vpop.permute.xlu1 %7971  ;;  %v7999_v5 = vunpack.i.h.bf16 %v7997_v23  ;;  %v7998_v28 = vunpack.i.l.bf16 %v7997_v23 }
  0xf6   : > { %v7974_v21 = vunpack.i.h.bf16 %v7972_v39  ;;  %v7973_v60 = vunpack.i.l.bf16 %v7972_v39  ;;  %vm2922_vm8 = vcmp.eq.s32.totalorder %v2920_v48, 1 }
  0xf7   : > { %8181 = vrot.lane.b32.xlu1 %v9265_v10, %s8625_s21  ;;  %7510 = vmatpush1.bf16.msk.msra.mxu1 %vm9148_vm12, %v7509_v20  ;;  %v1853_v22 = vsel %vm1851_vm3, %v7998_v28, %v7999_v5  ;;  %vm9334_vm9 = vmpackc.low %vm2922_vm8, %vm2922_vm8  ;;  %s11420_s21 = smov 16   ;;  %vm3395_vm8 = vcmask 998400  }
  0xf8   : > { %v1858_v27 = vsel %vm1851_vm3, %v7989_v14, %v7973_v60  ;;  %v1859_v45 = vsel %vm1851_vm3, %v7973_v60, %v7974_v21  ;;  %v9279_v47 = vpop.permute.xlu0 %8006  ;;  %v9281_v25 = vpop.f32.mrf.mxu0  ;;  %v8425_v14 = vld [vmem:[%s11408_s4 + $0x8] ss:$12 sps:$4 sm:$0xff]  }
  0xf9   : > { %v7485_v49 = vpack.c.bf16 %v1858_v27, %v1856_v41  ;;  %v7982_v51 = vpop.permute.xlu1 %7981  ;;  %v7482_v26 = vpack.c.bf16 %v1859_v45, %v1857_v17  ;;  %v8009_v16 = vunpack.i.h.bf16 %v9279_v47  ;;  %v8008_v7 = vunpack.i.l.bf16 %v9279_v47 }
  0xfa   : > { %v7984_v42 = vunpack.i.h.bf16 %v7982_v51  ;;  %v7983_v53 = vunpack.i.l.bf16 %v7982_v51  ;;  %v9283_v15 = vpop.f32.mrf.mxu0  ;;  %v2916_v41 = vrot.slane %v2912_v33, %v9078_v55 }
  0xfb   : > { %7483 = vmatprep.subr.msk.bf16.mxu0 %vm9090_vm4, %v7482_v26  ;;  %v3264_v47 = vsel %vm3258_vm6, %v8008_v7, %v8009_v16 }
  0xfc   : > { %v2041_v54 = vsel %vm2037_vm2, %v7983_v53, %v7984_v42  ;;  %7486 = vmatpush2.bf16.msk.msra.mxu0 %vm9103_vm7, %v7485_v49  ;;  %v8017_v56 = vpop.permute.xlu0 %8016  ;;  %v9292_v38 = vpop.f32.mrf.mxu0  ;;  %vm2921_vm11 = vcmp.eq.s32.totalorder %v2916_v41, 1  ;;  %v8437_v42 = vld [vmem:[%s11408_s4 + $0x18] ss:$12 sps:$4 sm:$0xff]  }
  0xfd   : > { %v7992_v57 = vpop.permute.xlu1 %7991  ;;  %v7512_v44 = vpack.c.bf16 %v2041_v54, %v2039_v19  ;;  %v8019_v62 = vunpack.i.h.bf16 %v8017_v56  ;;  %v8018_v43 = vunpack.i.l.bf16 %v8017_v56 }
  0xfe   : > { %v7994_v58 = vunpack.i.h.bf16 %v7992_v57  ;;  %v7993_v59 = vunpack.i.l.bf16 %v7992_v57  ;;  %v9294_v61 = vpop.f32.mrf.mxu0 }
  0xff   : > { %7513 = vmatprep.subr.msk.bf16.mxu1 %vm9136_vm10, %v7512_v44  ;;  %v1852_v23 = vsel %vm1851_vm3, %v8018_v43, %v7998_v28  ;;  %v636_v44 = vadd.f32 %v9283_v15, %v9281_v25  ;;  %v639_v48 = vadd.f32 %v9294_v61, %v9292_v38 }
 0x100   : > { %v2038_v63 = vsel %vm2037_vm2, %v7993_v59, %v7978_v24  ;;  %v2040_v2 = vsel %vm2037_vm2, %v7994_v58, %v7983_v53  ;;  %v9301_v3 = vpop.permute.xlu0 %8026  ;;  %v9303_v13 = vpop.f32.mrf.mxu0 }
 0x101   : > { %v7515_v29 = vpack.c.bf16 %v2040_v2, %v2038_v63  ;;  %v8002_v8 = vpop.permute.xlu1 %8001  ;;  %v8029_v58 = vunpack.i.h.bf16 %v9301_v3  ;;  %v8028_v18 = vunpack.i.l.bf16 %v9301_v3 }
 0x102   : > { %v8004_v36 = vunpack.i.h.bf16 %v8002_v8  ;;  %v8003_v9 = vunpack.i.l.bf16 %v8002_v8  ;;  %v9306_v40 = vpop.f32.mrf.mxu0 }
 0x103   : > { %7516 = vmatpush1.bf16.msk.msra.mxu1 %vm9148_vm12, %v7515_v29 }
 0x104   : > { %v1854_v20 = vsel %vm1851_vm3, %v8019_v62, %v8003_v9  ;;  %v1855_v39 = vsel %vm1851_vm3, %v8003_v9, %v8004_v36  ;;  %v9319_v21 = vpop.permute.xlu0 %8036  ;;  %v9321_v60 = vpop.f32.mrf.mxu0  ;;  %vm3081_vm3 = vcmask 785408  }
 0x105   : > { %v7491_v17 = vpack.c.bf16 %v1854_v20, %v1852_v23  ;;  %v8012_v11 = vpop.permute.xlu1 %8011  ;;  %v7488_v24 = vpack.c.bf16 %v1855_v39, %v1853_v22  ;;  %v8039_v36 = vunpack.i.h.bf16 %v9319_v21  ;;  %v8038_v9 = vunpack.i.l.bf16 %v9319_v21 }
 0x106   : > { %v8014_v27 = vunpack.i.h.bf16 %v8012_v11  ;;  %v8013_v45 = vunpack.i.l.bf16 %v8012_v11  ;;  %v9324_v49 = vpop.f32.mrf.mxu0  ;;  %6954 = vmatmul.mubr.msk.bf16.vlgmr.msra.gmra.mxu1 %vm498_vm0, %v8425_v14 }
 0x107   : > { %7489 = vmatprep.subr.msk.bf16.mxu0 %vm9090_vm4, %v7488_v24  ;;  %2557 = vmatprep.mubr.bf16.mxu1 %v11425_v1  ;;  %vm1750_vm4 = vcmask 1022976   ;;  %v3260_v21 = vsel %vm3258_vm6, %v8038_v9, %v8039_v36 }
 0x108   : > { %v3266_v51 = vsel %vm3258_vm6, %v8013_v45, %v8014_v27  ;;  %7492 = vmatpush2.bf16.msk.msra.mxu0 %vm9103_vm7, %v7491_v17  ;;  %v8047_v26 = vpop.permute.xlu0 %8046  ;;  %v613_v53 = vpop.f32.mrf.mxu0  ;;  %vm9348_vm7 = vmpackc.low %vm2921_vm11, %vm2921_vm11  ;;  %v1756_v8 = vsel %vm1750_vm4, %v8028_v18, %v8029_v58  ;;  %vm3682_vm11 = vcmask 211968  }
 0x109   : > { %v8022_v19 = vpop.permute.xlu1 %8021  ;;  %v7542_v54 = vpack.c.bf16 %v3266_v51, %v3264_v47  ;;  %v8049_v59 = vunpack.i.h.bf16 %v8047_v26  ;;  %v8048_v33 = vunpack.i.l.bf16 %v8047_v26 }
 0x10a   : > { %v8024_v6 = vunpack.i.h.bf16 %v8022_v19  ;;  %v8023_v56 = vunpack.i.l.bf16 %v8022_v19  ;;  %v615_v57 = vpop.f32.mrf.mxu0 }
 0x10b   : > { %7543 = vmatprep.subr.msk.bf16.mxu1 %vm9334_vm9, %v7542_v54  ;;  %v1755_v14 = vsel %vm1750_vm4, %v8048_v33, %v8028_v18  ;;  %v648_v24 = vadd.f32 %v615_v57, %v613_v53 }
 0x10c   : > { %v3263_v5 = vsel %vm3258_vm6, %v8023_v56, %v8008_v7  ;;  %v3265_v28 = vsel %vm3258_vm6, %v8024_v6, %v8013_v45  ;;  %v9346_v62 = vpop.permute.xlu0 %8056  ;;  %v9352_v25 = vpop.f32.mrf.mxu0  ;;  %v3110_v45 = vsel %vm3109_vm14, 1, %v11425_v1  ;;  %vm4904_vm14 = vcmask 72704  }
 0x10d   : > { %v7545_v15 = vpack.c.bf16 %v3265_v28, %v3263_v5  ;;  %v8032_v63 = vpop.permute.xlu1 %8031  ;;  %637 = vadd.xlane.f32.xlu0 %v636_v44  ;;  %v8059_v53 = vunpack.i.h.bf16 %v9346_v62  ;;  %v8058_v54 = vunpack.i.l.bf16 %v9346_v62  ;;  %v3118_v6 = vrot.slane %v3110_v45, %v9071_v52 }
 0x10e   : > { %v8034_v2 = vunpack.i.h.bf16 %v8032_v63  ;;  %v8033_v3 = vunpack.i.l.bf16 %v8032_v63  ;;  %v9354_v29 = vpop.f32.mrf.mxu0 }
 0x10f   : > { %7546 = vmatpush1.bf16.msk.msra.mxu1 %vm9348_vm7, %v7545_v15  ;;  %v1752_v15 = vsel %vm1750_vm4, %v8058_v54, %v8059_v53  ;;  %vm9391_vm1 = vcmp.eq.s32.totalorder %v3118_v6, 1  ;;  %v651_v12 = vadd.f32 %v9354_v29, %v9352_v25 }
 0x110   : > { %v1757_v22 = vsel %vm1750_vm4, %v8049_v59, %v8033_v3  ;;  %v1758_v16 = vsel %vm1750_vm4, %v8033_v3, %v8034_v2  ;;  %v9366_v7 = vpop.permute.xlu0 %8066  ;;  %v625_v23 = vpop.f32.mrf.mxu0  ;;  %v642_v59 = vadd.f32 %v9306_v40, %v9303_v13  ;;  %v8426_v13 = vld [vmem:[%s11408_s4 + $0x20] ss:$12 sps:$4 sm:$0xff]   ;;  %vm9420_vm2 = vmpackc.low %vm9391_vm1, %vm9391_vm1  ;;  %v8428_v2 = vld [vmem:[%s11408_s4 + $0x50] ss:$12 sps:$4 sm:$0xff]  }
 0x111   : > { %v7497_v20 = vpack.c.bf16 %v1757_v22, %v1755_v14  ;;  %v8042_v39 = vpop.permute.xlu1 %8041  ;;  %640 = vadd.xlane.f32.xlu0 %v639_v48  ;;  %v7494_v38 = vpack.c.bf16 %v1758_v16, %v1756_v8  ;;  %v8069_v63 = vunpack.i.h.bf16 %v9366_v7  ;;  %v8068_v40 = vunpack.i.l.bf16 %v9366_v7  ;;  %6955 = vmatmul.mubr.msk.bf16.gmra.mxu1 %vm498_vm0, %v8426_v13 }
 0x112   : > { %v8044_v61 = vunpack.i.h.bf16 %v8042_v39  ;;  %v8043_v17 = vunpack.i.l.bf16 %v8042_v39  ;;  %v627_v11 = vpop.f32.mrf.mxu0  ;;  %2567 = vmatprep.mubr.bf16.mxu1 %v11425_v1 }
 0x113   : > { %7495 = vmatprep.subr.msk.bf16.mxu0 %vm9136_vm10, %v7494_v38  ;;  %v654_v50 = vadd.f32 %v627_v11, %v625_v23  ;;  %v3114_v23 = vrot.slane %v3110_v45, %v9078_v55  ;;  %v3163_v38 = vsel %vm3157_vm15, %v8068_v40, %v8069_v63 }
 0x114   : > { %v3262_v41 = vsel %vm3258_vm6, %v8043_v17, %v8044_v61  ;;  %7498 = vmatpush2.bf16.msk.msra.mxu0 %vm9148_vm12, %v7497_v20  ;;  %v8077_v27 = vpop.permute.xlu0 %8076  ;;  %v631_v39 = vpop.f32.mrf.mxu0  ;;  %v8452_v61 = vld [vmem:[%s11408_s4 + $0xa8] ss:$12 sps:$4 sm:$0xff]  }
 0x115   : > { %v8052_v47 = vpop.permute.xlu1 %8051  ;;  %649 = vadd.xlane.f32.xlu0 %v648_v24  ;;  %v7548_v51 = vpack.c.bf16 %v3262_v41, %v3260_v21  ;;  %v8079_v56 = vunpack.i.h.bf16 %v8077_v27  ;;  %v8078_v57 = vunpack.i.l.bf16 %v8077_v27  ;;  %v8427_v41 = vld [vmem:[%s11408_s4 + $0x38] ss:$12 sps:$4 sm:$0xff]  }
 0x116   : > { %v8054_v26 = vunpack.i.h.bf16 %v8052_v47  ;;  %v8053_v19 = vunpack.i.l.bf16 %v8052_v47  ;;  %v633_v21 = vpop.f32.mrf.mxu0 }
 0x117   : > { %7549 = vmatprep.subr.msk.bf16.mxu1 %vm9334_vm9, %v7548_v51  ;;  %v1751_v3 = vsel %vm1750_vm4, %v8078_v57, %v8058_v54 }
 0x118   : > { %v3259_v44 = vsel %vm3258_vm6, %v8053_v19, %v8038_v9  ;;  %v3261_v58 = vsel %vm3258_vm6, %v8054_v26, %v8043_v17  ;;  %v9383_v18 = vpop.permute.xlu0 %8086  ;;  %v645_v9 = vadd.f32 %v9324_v49, %v9321_v60  ;;  %v657_v26 = vadd.f32 %v633_v21, %v631_v39  ;;  %v9499_v21 = vld [vmem:[%s8786_s22] sm:$0xff] }
 0x119   : > { %v7551_v33 = vpack.c.bf16 %v3261_v58, %v3259_v44  ;;  %v8062_v5 = vpop.permute.xlu1 %8061  ;;  %655 = vadd.xlane.f32.xlu0 %v654_v50  ;;  %v8089_v27 = vunpack.i.h.bf16 %v9383_v18  ;;  %v8088_v25 = vunpack.i.l.bf16 %v9383_v18  ;;  %6956 = vmatmul.mubr.msk.bf16.gmra.mxu1 %vm498_vm0, %v8427_v41  ;;  %vm3496_vm6 = vcmask 310272  }
 0x11a   : > { %v8064_v28 = vunpack.i.h.bf16 %v8062_v5  ;;  %v8063_v62 = vunpack.i.l.bf16 %v8062_v5  ;;  %2577 = vmatprep.mubr.bf16.mxu1 %v11425_v1 }
 0x11b   : > { %643 = vadd.xlane.f32.xlu1 %v642_v59  ;;  %7552 = vmatpush1.bf16.msk.msra.mxu1 %vm9348_vm7, %v7551_v33  ;;  %v3159_v44 = vsel %vm3157_vm15, %v8088_v25, %v8089_v27 }
 0x11c   : > { %v1753_v8 = vsel %vm1750_vm4, %v8079_v56, %v8063_v62  ;;  %v1754_v48 = vsel %vm1750_vm4, %v8063_v62, %v8064_v28  ;;  %v9402_v36 = vpop.permute.xlu0 %3064 }
 0x11d   : > { %v7503_v14 = vpack.c.bf16 %v1753_v8, %v1751_v3  ;;  %v8072_v22 = vpop.permute.xlu1 %8071  ;;  %v7500_v16 = vpack.c.bf16 %v1754_v48, %v1752_v15  ;;  %v9454_v15 = vld [vmem:[%s8786_s22 + $0x28] sm:$0xff]  ;;  %v3076_v13 = vrot.slane %v9402_v36, 4 }
 0x11e   : > { %v8074_v20 = vunpack.i.h.bf16 %v8072_v22  ;;  %v8073_v7 = vunpack.i.l.bf16 %v8072_v22  ;;  %v9458_v63 = vpack.i.bf16 %v8608_v0, %v9454_v15 }
 0x11f   : > { %7501 = vmatprep.subr.msk.bf16.mxu0 %vm9136_vm10, %v7500_v16  ;;  %646 = vadd.xlane.f32.xlu1 %v645_v9  ;;  %vm3119_vm10 = vcmp.eq.s32.totalorder %v3114_v23, 1 }
 0x120   : > { %v3165_v60 = vsel %vm3157_vm15, %v8073_v7, %v8074_v20  ;;  %7504 = vmatpush2.bf16.msk.msra.mxu0 %vm9148_vm12, %v7503_v14  ;;  %v9415_v49 = vpop.permute.xlu0 %3068  ;;  %vm9436_vm12 = vmpackc.low %vm3119_vm10, %vm3119_vm10  ;;  %v9472_v14 = vld [vmem:[%s8786_s22 + $0x38] sm:$0xff] }
 0x121   : > { %v8082_v17 = vpop.permute.xlu1 %8081  ;;  %v7554_v11 = vpack.c.bf16 %v3165_v60, %v3163_v38  ;;  %2470 = vmatprep.subr.bf16.mxu0 %v8945_v31  ;;  %6957 = vmatmul.mubr.msk.bf16.gmra.mxu1 %vm498_vm0, %v8428_v2  ;;  %v3078_v8 = vrot.slane %v9415_v49, 4  ;;  %v9476_v22 = vpack.i.bf16 %v8608_v0, %v9472_v14 }
 0x122   : > { %v8084_v24 = vunpack.i.h.bf16 %v8082_v17  ;;  %v8083_v37 = vunpack.i.l.bf16 %v8082_v17  ;;  %v8431_v17 = vld [vmem:[%s11408_s4 + $0x64] ss:$12 sps:$4 sm:$0xff]  }
 0x123   : > { %652 = vadd.xlane.f32.xlu1 %v651_v12  ;;  %7555 = vmatprep.subr.msk.bf16.mxu1 %vm9420_vm2, %v7554_v11  ;;  %v9489_v11 = vld [vmem:[%s8786_s22 + $0x20] sm:$0xff] }
 0x124   : > { %v3162_v29 = vsel %vm3157_vm15, %v8083_v37, %v8068_v40  ;;  %v3164_v45 = vsel %vm3157_vm15, %v8084_v24, %v8073_v7  ;;  %v8097_v47 = vpop.permute.xlu0 %8096  ;;  %2471 = vmatpush2.bf16.msra.mxu0 %v8951_v32  ;;  %v9493_v24 = vpack.i.bf16 %v9251_v46, %v9489_v11  ;;  %4120 = vmatprep.mubr.bf16.mxu1 %v8431_v17 }
 0x125   : > { %v7557_v51 = vpack.c.bf16 %v3164_v45, %v3162_v29  ;;  %v8099_v19 = vunpack.i.h.bf16 %v8097_v47  ;;  %v8098_v53 = vunpack.i.l.bf16 %v8097_v47  ;;  %v8092_v54 = vpop.permute.xlu1 %8091  ;;  %2472 = vmatprep.subr.bf16.mxu0 %v8962_v34  ;;  %v8220_v17 = vpack.i.bf16 %v9454_v15, %v9489_v11 }
 0x126   : > { %v8094_v6 = vunpack.i.h.bf16 %v8092_v54  ;;  %v8093_v56 = vunpack.i.l.bf16 %v8092_v54  ;;  %v9514_v54 = vpack.i.bf16 %v9499_v21, %v8608_v0  ;;  %v7373_v43 = vpack.c.bf16 %v9489_v11, %v9489_v11 }
 0x127   : > { %v3158_v57 = vsel %vm3157_vm15, %v8098_v53, %v8088_v25  ;;  %658 = vadd.xlane.f32.xlu1 %v657_v26  ;;  %7558 = vmatpush1.bf16.msk.msra.mxu1 %vm9436_vm12, %v7557_v51 }
 0x128   : > { %v3160_v58 = vsel %vm3157_vm15, %v8099_v19, %v8093_v56  ;;  %v3161_v18 = vsel %vm3157_vm15, %v8093_v56, %v8094_v6  ;;  %v3059_v59 = vpop.permute.xlu0 %3058  ;;  %2473 = vmatpush2.bf16.msra.mxu0 %v8968_v35 }
 0x129   : > { %v7563_v33 = vpack.c.bf16 %v3160_v58, %v3158_v57  ;;  %v3067_v5 = vpop.permute.xlu1 %3066  ;;  %v7560_v28 = vpack.c.bf16 %v3161_v18, %v3159_v44 }
 0x12a   : > { %v3077_v62 = vrot.slane %v3067_v5, 4 }
 0x12b   : > { %7561 = vmatprep.subr.msk.bf16.mxu1 %vm9420_vm2, %v7560_v28 }
 0x12c   : > { %7564 = vmatpush1.bf16.msk.msra.mxu1 %vm9436_vm12, %v7563_v33  ;;  %v3063_v40 = vpop.permute.xlu0 %3062  ;;  %v3085_v48 = vsel %vm1434_vm13, %v3076_v13, %v3077_v62 }
 0x12d   : > { %v3071_v3 = vpop.permute.xlu1 %3070  ;;  %v3086_v7 = vsel %vm3081_vm3, %v9402_v36, %v3085_v48  ;;  %v3073_v36 = vrot.slane %v3059_v59, 4  ;;  %v3075_v25 = vrot.slane %v3063_v40, 4 }
 0x12e   : > { %v3079_v9 = vrot.slane %v3071_v3, 4 }
 0x12f   : > { %8191 = vrot.lane.b32.xlu0 %v9458_v63, %s8626_s23 }
 0x130   : > { %v3087_v16 = vsel %vm1434_vm13, %v3078_v8, %v3079_v9  ;;  %v8107_v23 = vpop.permute.xlu0 %8106  ;;  %v9529_v8 = vld [vmem:[%s8786_s22 + $0x10] sm:$0xff] }
 0x131   : > { %v3057_v20 = vpop.permute.xlu1 %3056  ;;  %v3088_v39 = vsel %vm3081_vm3, %v9415_v49, %v3087_v16  ;;  %v9496_v49 = vld [vmem:[%s8786_s22 + $0x8] sm:$0xff]  ;;  %v8109_v51 = vunpack.i.h.bf16 %v8107_v23  ;;  %v8108_v26 = vunpack.i.l.bf16 %v8107_v23  ;;  %v9533_v48 = vpack.i.bf16 %v9529_v8, %v9499_v21 }
 0x132   : > { %v3072_v38 = vrot.slane %v3057_v20, 4  ;;  %v7044_v60 = vcombine.low %v3086_v7, %v3088_v39  ;;  %v7045_v12 = vcombine.high %v3086_v7, %v3088_v39  ;;  %v8235_v41 = vpack.i.bf16 %v9496_v49, %v9499_v21 }
 0x133   : > { %8196 = vrot.lane.b32.xlu0 %v9476_v22, %s8626_s23  ;;  %v9508_v47 = vpack.i.bf16 %v8608_v0, %v9496_v49  ;;  %v2967_v33 = vsel %vm2959_vm5, %v8108_v26, %v8109_v51 }
 0x134   : > { %4096 = vmatprep.subr.bf16.mxu1 %v7045_v12  ;;  %v8117_v37 = vpop.permute.xlu0 %8116  ;;  %v3080_v29 = vsel %vm1434_vm13, %v3072_v38, %v3073_v36 }
 0x135   : > { %v3061_v27 = vpop.permute.xlu1 %3060  ;;  %4097 = vmatpush1.bf16.msra.mxu1 %v7044_v60  ;;  %v3082_v6 = vsel %vm3081_vm3, %v3057_v20, %v3080_v29  ;;  %v8119_v3 = vunpack.i.h.bf16 %v8117_v37  ;;  %v8118_v9 = vunpack.i.l.bf16 %v8117_v37 }
 0x136   : > { %v3074_v45 = vrot.slane %v3061_v27, 4 }
 0x137   : > { %8201 = vrot.lane.b32.xlu0 %v9493_v24, %s8626_s23  ;;  %v2961_v36 = vsel %vm2959_vm5, %v8118_v9, %v8119_v3 }
 0x138   : > { %v3083_v19 = vsel %vm1434_vm13, %v3074_v45, %v3075_v25  ;;  %v8127_v53 = vpop.permute.xlu0 %8126  ;;  %8236 = vrot.lane.b32.xlu1 %v8235_v41, %s8627_s30 }
 0x139   : > { %v3084_v56 = vsel %vm3081_vm3, %v3061_v27, %v3083_v19  ;;  %v8102_v57 = vpop.permute.xlu1 %8101  ;;  %v8128_v16 = vunpack.i.l.bf16 %v8127_v53  ;;  %v8225_v19 = vpack.i.bf16 %v9472_v14, %v9251_v46  ;;  %vm4803_vm3 = vcmask 56320  }
 0x13a   : > { %v7042_v44 = vcombine.low %v3082_v6, %v3084_v56  ;;  %v8104_v58 = vunpack.i.h.bf16 %v8102_v57  ;;  %v8103_v18 = vunpack.i.l.bf16 %v8102_v57  ;;  %v7043_v59 = vcombine.high %v3082_v6, %v3084_v56 }
 0x13b   : > { %8206 = vrot.lane.b32.xlu0 %v9508_v47, %s8626_s23  ;;  %v2960_v37 = vsel %vm2959_vm5, %v8128_v16, %v8118_v9  ;;  %v7369_v56 = vpack.c.bf16 %v9499_v21, %v9499_v21  ;;  %v7371_v21 = vpack.c.bf16 %v9529_v8, %v9529_v8  ;;  %v8240_v16 = vpack.i.bf16 %v9261_v4, %v9529_v8 }
 0x13c   : > { %v2965_v5 = vsel %vm2959_vm5, %v8103_v18, %v8104_v58  ;;  %4098 = vmatprep.subr.bf16.mxu1 %v7043_v59  ;;  %v3604_v28 = vpop.permute.xlu0 %3603  ;;  %8266 = vrot.lane.b32.xlu1 %v9514_v54, %s8628_s20  ;;  %v8434_v59 = vld [vmem:[%s11408_s4 + $0x4] ss:$12 sps:$4 sm:$0xff]  }
 0x13d   : > { %v8112_v62 = vpop.permute.xlu1 %8111  ;;  %4099 = vmatpush1.bf16.msra.mxu1 %v7042_v44  ;;  %v7566_v2 = vpack.c.bf16 %v2967_v33, %v2965_v5  ;;  %v8432_v33 = vld [vmem:[%s11408_s4] ss:$12 sps:$4 sm:$0xff]   ;;  %2474 = vmatprep.mubr.bf16.mxu0 %v8434_v59 }
 0x13e   : > { %v8114_v13 = vunpack.i.h.bf16 %v8112_v62  ;;  %v8113_v40 = vunpack.i.l.bf16 %v8112_v62  ;;  %2475 = vmatmul.mubr.bf16.vlgmr.msra.gmra.mxu0 %v8432_v33 }
 0x13f   : > { %7567 = vmatprep.subr.msk.bf16.mxu1 %vm9334_vm9, %v7566_v2  ;;  %8211 = vrot.lane.b32.xlu0 %v9265_v10, %s8626_s23  ;;  %v8129_v10 = vunpack.i.h.bf16 %v8127_v53  ;;  %v3614_v53 = vrot.slane %v3604_v28, 4 }
 0x140   : > { %v2966_v23 = vsel %vm2959_vm5, %v8114_v13, %v8108_v26  ;;  %v2964_v20 = vsel %vm2959_vm5, %v8113_v40, %v8103_v18  ;;  %v3608_v7 = vpop.permute.xlu0 %3607  ;;  %4710 = vrot.lane.b32.xlu1 %v8614_v30, %s11420_s21 }
 0x141   : > { %v7569_v39 = vpack.c.bf16 %v2966_v23, %v2964_v20  ;;  %v8122_v38 = vpop.permute.xlu1 %8121  ;;  %v3616_v44 = vrot.slane %v3608_v7, 4  ;;  %v8285_v7 = vpack.i.bf16 %v9251_v46, %v8608_v0 }
 0x142   : > { %v8124_v60 = vunpack.i.h.bf16 %v8122_v38  ;;  %v8123_v12 = vunpack.i.l.bf16 %v8122_v38 }
 0x143   : > { %7570 = vmatpush1.bf16.msk.msra.mxu1 %vm9348_vm7, %v7569_v39  ;;  %8216 = vrot.lane.b32.xlu0 %v9533_v48, %s8626_s23 }
 0x144   : > { %v2962_v41 = vsel %vm2959_vm5, %v8129_v10, %v8123_v12  ;;  %v2963_v27 = vsel %vm2959_vm5, %v8123_v12, %v8124_v60  ;;  %v3596_v25 = vpop.permute.xlu0 %3595  ;;  %4714 = vrot.lane.b32.xlu1 %v8614_v30, %s11420_s21 }
 0x145   : > { %v7575_v29 = vpack.c.bf16 %v2962_v41, %v2960_v37  ;;  %v3602_v45 = vpop.permute.xlu1 %3601  ;;  %v7572_v51 = vpack.c.bf16 %v2963_v27, %v2961_v36  ;;  %v3610_v23 = vrot.slane %v3596_v25, 4 }
 0x146   : > { %v3613_v26 = vrot.slane %v3602_v45, 4 }
 0x147   : > { %7573 = vmatprep.subr.msk.bf16.mxu1 %vm9334_vm9, %v7572_v51  ;;  %8221 = vrot.lane.b32.xlu0 %v8220_v17, %s8627_s30 }
 0x148   : > { %7576 = vmatpush1.bf16.msk.msra.mxu1 %vm9348_vm7, %v7575_v29  ;;  %v3600_v6 = vpop.permute.xlu0 %3599  ;;  %8276 = vrot.lane.b32.xlu1 %v8608_v0, %s8628_s20  ;;  %v3622_v58 = vsel %vm1434_vm13, %v3613_v26, %v3614_v53 }
 0x149   : > { %v3606_v57 = vpop.permute.xlu1 %3605  ;;  %v3623_v62 = vsel %vm498_vm0, %v3602_v45, %v3622_v58  ;;  %v3612_v38 = vrot.slane %v3600_v6, 4 }
 0x14a   : > { %v3615_v18 = vrot.slane %v3606_v57, 4 }
 0x14b   : > { %8226 = vrot.lane.b32.xlu0 %v8225_v19, %s8627_s30  ;;  %v9593_v19 = vpack.i.bf16 %v9489_v11, %v8608_v0  ;;  %v7375_v11 = vpack.c.bf16 %v9251_v46, %v9251_v46 }
 0x14c   : > { %v3624_v5 = vsel %vm1434_vm13, %v3615_v18, %v3616_v44  ;;  %v8137_v28 = vpop.permute.xlu0 %8136  ;;  %4704 = vrot.lane.b32.xlu1 %v7369_v56, %s11420_s21 }
 0x14d   : > { %v3625_v2 = vsel %vm498_vm0, %v3606_v57, %v3624_v5  ;;  %v3594_v13 = vpop.permute.xlu1 %3593  ;;  %v8139_v12 = vunpack.i.h.bf16 %v8137_v28  ;;  %v8138_v17 = vunpack.i.l.bf16 %v8137_v28 }
 0x14e   : > { %v7068_v40 = vcombine.low %v3623_v62, %v3625_v2  ;;  %v3609_v3 = vrot.slane %v3594_v13, 4  ;;  %v7069_v9 = vcombine.high %v3623_v62, %v3625_v2 }
 0x14f   : > { %8231 = vrot.lane.b32.xlu0 %v8608_v0, %s8627_s30  ;;  %v3504_v53 = vsel %vm3496_vm6, %v8138_v17, %v8139_v12 }
 0x150   : > { %4104 = vmatprep.subr.bf16.mxu1 %v7069_v9  ;;  %v8147_v20 = vpop.permute.xlu0 %8146  ;;  %4708 = vrot.lane.b32.xlu1 %v7371_v21, %s11420_s21  ;;  %v3617_v10 = vsel %vm1434_vm13, %v3609_v3, %v3610_v23 }
 0x151   : > { %v3598_v39 = vpop.permute.xlu1 %3597  ;;  %4105 = vmatpush2.bf16.msra.mxu1 %v7068_v40  ;;  %v3619_v41 = vsel %vm498_vm0, %v3594_v13, %v3617_v10  ;;  %v8149_v59 = vunpack.i.h.bf16 %v8147_v20  ;;  %v8148_v33 = vunpack.i.l.bf16 %v8147_v20 }
 0x152   : > { %v3611_v60 = vrot.slane %v3598_v39, 4 }
 0x153   : > { %8241 = vrot.lane.b32.xlu0 %v8240_v16, %s8627_s30  ;;  %v3498_v3 = vsel %vm3496_vm6, %v8148_v33, %v8149_v59 }
 0x154   : > { %v3620_v36 = vsel %vm1434_vm13, %v3611_v60, %v3612_v38  ;;  %v8157_v37 = vpop.permute.xlu0 %8156  ;;  %8286 = vrot.lane.b32.xlu1 %v8285_v7, %s11418_s16 }
 0x155   : > { %v3621_v27 = vsel %vm498_vm0, %v3598_v39, %v3620_v36  ;;  %v8132_v25 = vpop.permute.xlu1 %8131  ;;  %v8158_v5 = vunpack.i.l.bf16 %v8157_v37  ;;  %v8159_v2 = vunpack.i.h.bf16 %v8157_v37  ;;  %v8435_v37 = vld [vmem:[%s11408_s4 + $0x1c] ss:$12 sps:$4 sm:$0xff]  }
 0x156   : > { %v7066_v29 = vcombine.low %v3619_v41, %v3621_v27  ;;  %v8134_v45 = vunpack.i.h.bf16 %v8132_v25  ;;  %v8133_v51 = vunpack.i.l.bf16 %v8132_v25  ;;  %v7067_v26 = vcombine.high %v3619_v41, %v3621_v27  ;;  %2484 = vmatprep.mubr.bf16.mxu0 %v8435_v37 }
 0x157   : > { %8246 = vrot.lane.b32.xlu0 %v8608_v0, %s8627_s30  ;;  %v3497_v9 = vsel %vm3496_vm6, %v8158_v5, %v8148_v33  ;;  %s8631_s30 = smov 112   ;;  %2485 = vmatmul.mubr.bf16.gmra.mxu0 %v8437_v42  ;;  %v8438_v5 = vld [vmem:[%s11408_s4 + $0x34] ss:$12 sps:$4 sm:$0xff]  }
 0x158   : > { %v3502_v6 = vsel %vm3496_vm6, %v8133_v51, %v8134_v45  ;;  %4106 = vmatprep.subr.bf16.mxu1 %v7067_v26  ;;  %8296 = vrot.lane.b32.xlu1 %v9514_v54, %s11418_s16  ;;  %v8167_v56 = vpop.permute.xlu0 %8166 }
 0x159   : > { %v8142_v57 = vpop.permute.xlu1 %8141  ;;  %4107 = vmatpush2.bf16.msra.mxu1 %v7066_v29  ;;  %v7578_v44 = vpack.c.bf16 %v3504_v53, %v3502_v6  ;;  %v8169_v23 = vunpack.i.h.bf16 %v8167_v56  ;;  %v8168_v20 = vunpack.i.l.bf16 %v8167_v56  ;;  %2494 = vmatprep.mubr.bf16.mxu0 %v8438_v5 }
 0x15a   : > { %v8144_v58 = vunpack.i.h.bf16 %v8142_v57  ;;  %v8143_v18 = vunpack.i.l.bf16 %v8142_v57 }
 0x15b   : > { %7579 = vmatprep.subr.msk.bf16.mxu1 %vm9334_vm9, %v7578_v44  ;;  %8251 = vrot.lane.b32.xlu0 %v9593_v19, %s8628_s20  ;;  %v3403_v41 = vsel %vm3395_vm8, %v8168_v20, %v8169_v23  ;;  %v7396_v23 = vpack.c.bf16 %v8608_v0, %v9496_v49 }
 0x15c   : > { %v3503_v28 = vsel %vm3496_vm6, %v8144_v58, %v8138_v17  ;;  %v3501_v21 = vsel %vm3496_vm6, %v8143_v18, %v8133_v51  ;;  %8306 = vrot.lane.b32.xlu1 %v8608_v0, %s11418_s16  ;;  %v8177_v16 = vpop.permute.xlu0 %8176  ;;  %s11421_s16 = smov 121  }
 0x15d   : > { %v7581_v54 = vpack.c.bf16 %v3503_v28, %v3501_v21  ;;  %v8152_v62 = vpop.permute.xlu1 %8151  ;;  %v8179_v26 = vunpack.i.h.bf16 %v8177_v16  ;;  %v8178_v53 = vunpack.i.l.bf16 %v8177_v16  ;;  %v8337_v16 = vpack.i.bf16 %v9261_v4, %v9496_v49 }
 0x15e   : > { %v8154_v13 = vunpack.i.h.bf16 %v8152_v62  ;;  %v8153_v40 = vunpack.i.l.bf16 %v8152_v62 }
 0x15f   : > { %7582 = vmatpush2.bf16.msk.msra.mxu1 %vm9348_vm7, %v7581_v54  ;;  %8256 = vrot.lane.b32.xlu0 %v8285_v7, %s8628_s20  ;;  %v9622_v7 = vpack.i.bf16 %v9529_v8, %v8608_v0  ;;  %v3397_v28 = vsel %vm3395_vm8, %v8178_v53, %v8179_v26 }
 0x160   : > { %v3499_v39 = vsel %vm3496_vm6, %v8159_v2, %v8153_v40  ;;  %v3500_v38 = vsel %vm3496_vm6, %v8153_v40, %v8154_v13  ;;  %5249 = vrot.lane.b32.xlu1 %v8614_v30, %s8631_s30  ;;  %v8187_v8 = vpop.permute.xlu0 %8186  ;;  %v8440_v2 = vld [vmem:[%s11408_s4 + $0x30] ss:$12 sps:$4 sm:$0xff]   ;;  %v9666_v40 = vld [vmem:[%s11409_s5 + $0x8] sm:$0xff] }
 0x161   : > { %v7587_v10 = vpack.c.bf16 %v3499_v39, %v3497_v9  ;;  %v8162_v60 = vpop.permute.xlu1 %8161  ;;  %v7584_v12 = vpack.c.bf16 %v3500_v38, %v3498_v3  ;;  %v8188_v6 = vunpack.i.l.bf16 %v8187_v8  ;;  %v8189_v18 = vunpack.i.h.bf16 %v8187_v8  ;;  %2495 = vmatmul.mubr.bf16.gmra.mxu0 %v8440_v2  ;;  %v8429_v9 = vld [vmem:[%s11408_s4 + $0x60] ss:$12 sps:$4 sm:$0xff]  }
 0x162   : > { %v8164_v17 = vunpack.i.h.bf16 %v8162_v60  ;;  %v8163_v36 = vunpack.i.l.bf16 %v8162_v60  ;;  %v9681_v3 = vpack.i.bf16 %v9472_v14, %v9454_v15 }
 0x163   : > { %7585 = vmatprep.subr.msk.bf16.mxu1 %vm9334_vm9, %v7584_v12  ;;  %8261 = vrot.lane.b32.xlu0 %v8608_v0, %s8628_s20  ;;  %v3396_v21 = vsel %vm3395_vm8, %v8188_v6, %v8178_v53  ;;  %vm685_vm9 = vcmask 7168   ;;  %v9753_v12 = vld [vmem:[%s11409_s5 + $0x18] sm:$0xff] }
 0x164   : > { %v3401_v27 = vsel %vm3395_vm8, %v8163_v36, %v8164_v17  ;;  %7588 = vmatpush2.bf16.msk.msra.mxu1 %vm9348_vm7, %v7587_v10  ;;  %5253 = vrot.lane.b32.xlu1 %v8614_v30, %s8631_s30 }
 0x165   : > { %v8172_v25 = vpop.permute.xlu1 %8171  ;;  %v7590_v29 = vpack.c.bf16 %v3403_v41, %v3401_v27 }
 0x166   : > { %v8174_v45 = vunpack.i.h.bf16 %v8172_v25  ;;  %v8173_v51 = vunpack.i.l.bf16 %v8172_v25 }
 0x167   : > { %7591 = vmatprep.subr.msk.bf16.mxu1 %vm9420_vm2, %v7590_v29  ;;  %8271 = vrot.lane.b32.xlu0 %v9622_v7, %s8628_s20  ;;  %s11423_s20 = smov 119  }
 0x168   : > { %v3402_v56 = vsel %vm3395_vm8, %v8174_v45, %v8168_v20  ;;  %v3400_v57 = vsel %vm3395_vm8, %v8173_v51, %v8163_v36  ;;  %5241 = vrot.lane.b32.xlu1 %v8614_v30, %s8631_s30 }
 0x169   : > { %v7593_v44 = vpack.c.bf16 %v3402_v56, %v3400_v57  ;;  %v8182_v58 = vpop.permute.xlu1 %8181 }
 0x16a   : > { %v8184_v59 = vunpack.i.h.bf16 %v8182_v58  ;;  %v8183_v33 = vunpack.i.l.bf16 %v8182_v58  ;;  %v9777_v58 = vld [vmem:[%s11409_s5 + $0x20] sm:$0xff] }
 0x16b   : > { %7594 = vmatpush2.bf16.msk.msra.mxu1 %vm9436_vm12, %v7593_v44  ;;  %4712 = vrot.lane.b32.xlu0 %v7373_v43, %s11420_s21 }
 0x16c   : > { %v3398_v54 = vsel %vm3395_vm8, %v8189_v18, %v8183_v33  ;;  %v3399_v62 = vsel %vm3395_vm8, %v8183_v33, %v8184_v59  ;;  %5245 = vrot.lane.b32.xlu1 %v8614_v30, %s8631_s30 }
 0x16d   : > { %v7599_v46 = vpack.c.bf16 %v3398_v54, %v3396_v21  ;;  %v7596_v13 = vpack.c.bf16 %v3399_v62, %v3397_v28  ;;  %v8444_v21 = vld [vmem:[%s11408_s4 + $0x7c] ss:$12 sps:$4 sm:$0xff]  }
 0x16f   : > { %7597 = vmatprep.subr.msk.bf16.mxu1 %vm9420_vm2, %v7596_v13  ;;  %4716 = vrot.lane.b32.xlu0 %v7375_v11, %s11420_s21 }
 0x170   : > { %7600 = vmatpush2.bf16.msk.msra.mxu1 %vm9436_vm12, %v7599_v46  ;;  %820 = vperm.xlu1 %8311, %v9666_v40   ;;  %v9792_v46 = vld [vmem:[%s8786_s22 + $0x18] sm:$0xff] }
 0x171   : > { %4116 = vmatprep.subr.bf16.mxu1 %v8945_v31  ;;  %v8362_v13 = vpack.i.bf16 %v8608_v0, %v9792_v46 }
 0x173   : > { %4702 = vrot.lane.b32.xlu0 %v8614_v30, %s11420_s21 }
 0x174   : > { %8313 = vrot.lane.b32.xlu1 %v8608_v0, %s11421_s16  ;;  %4117 = vmatpush2.bf16.msra.mxu1 %v8951_v32 }
 0x175   : > { %4118 = vmatprep.subr.bf16.mxu1 %v8962_v34 }
 0x177   : > { %4706 = vrot.lane.b32.xlu0 %v8614_v30, %s11420_s21  ;;  %v7400_v30 = vpack.c.bf16 %v8608_v0, %v9454_v15  ;;  %v7398_v15 = vpack.c.bf16 %v8608_v0, %v9261_v4  ;;  %v8443_v4 = vld [vmem:[%s11408_s4 + $0x48] ss:$12 sps:$4 sm:$0xff]  }
 0x178   : > { %8323 = vrot.lane.b32.xlu1 %v9681_v3, %s11421_s16  ;;  %4119 = vmatpush2.bf16.msra.mxu1 %v8968_v35 }
 0x17b   : > { %8281 = vrot.lane.b32.xlu0 %v9593_v19, %s11510_s15  ;;  %4121 = vmatmul.mubr.bf16.vlgmr.msra.gmra.mxu1 %v8429_v9  ;;  %v7402_v19 = vpack.c.bf16 %v8608_v0, %v9472_v14  ;;  %v8446_v9 = vld [vmem:[%s11408_s4 + $0x78] ss:$12 sps:$4 sm:$0xff]  }
 0x17c   : > { %8328 = vrot.lane.b32.xlu1 %v8608_v0, %s11421_s16  ;;  %4130 = vmatprep.mubr.bf16.mxu1 %v8444_v21 }
 0x17f   : > { %8291 = vrot.lane.b32.xlu0 %v8608_v0, %s11510_s15 }
 0x180   : > { %8338 = vrot.lane.b32.xlu1 %v8337_v16, %s11421_s16  ;;  %s11512_s16 = smov 119  }
 0x183   : > { %8301 = vrot.lane.b32.xlu0 %v9622_v7, %s11510_s15  ;;  %4131 = vmatmul.mubr.bf16.gmra.mxu1 %v8446_v9 }
 0x184   : > { %8343 = vrot.lane.b32.xlu1 %v9458_v63, %s11423_s20  ;;  %v9727_v63 = vld [vmem:[%s11409_s5] sm:$0xff] }
 0x187   : > { %5247 = vrot.lane.b32.xlu0 %v7400_v30, %s8631_s30 }
 0x188   : > { %8353 = vrot.lane.b32.xlu1 %v9493_v24, %s11423_s20  ;;  %v8441_v24 = vld [vmem:[%s11408_s4 + $0x4c] ss:$12 sps:$4 sm:$0xff]  }
 0x189   : > { %2504 = vmatprep.mubr.bf16.mxu0 %v8441_v24 }
 0x18a   : > { %2505 = vmatmul.mubr.bf16.gmra.mxu0 %v8443_v4 }
 0x18b   : > { %5251 = vrot.lane.b32.xlu0 %v7402_v19, %s8631_s30 }
 0x18c   : > { %8358 = vrot.lane.b32.xlu1 %v9508_v47, %s11423_s20 }
 0x18f   : > { %5239 = vrot.lane.b32.xlu0 %v7396_v23, %s8631_s30 }
 0x190   : > { %8368 = vrot.lane.b32.xlu1 %v9533_v48, %s11423_s20  ;;  %s11511_s20 = smov 121   ;;  %v9741_v48 = vld [vmem:[%s11409_s5 + $0x10] sm:$0xff] }
 0x193   : > { %5243 = vrot.lane.b32.xlu0 %v7398_v15, %s8631_s30  ;;  %s8634_s30 = smov 103  }
 0x196   : > { %v638_v14 = vpop.xlane.xlu0 %637 }
 0x197   : > { %815 = vperm.xlu0 %8310, %v9727_v63   ;;  %v9746_v10 = vmul.f32 0.00390625, %v638_v14 }
 0x199   : > { %v686_v37 = vsel %vm685_vm9, %v9746_v10, 0.0 }
 0x19a   : > { %v641_v47 = vpop.xlane.xlu0 %640 }
 0x19b   : > { %8318 = vrot.lane.b32.xlu0 %v8608_v0, %s11511_s20  ;;  %v9744_v39 = vmul.f32 0.00390625, %v641_v47 }
 0x19d   : > { %v687_v17 = vsel %vm685_vm9, %v9744_v39, 0.0 }
 0x19e   : > { %v650_v20 = vpop.xlane.xlu0 %649  ;;  %v688_v27 = vadd.f32 %v687_v17, %v686_v37  ;;  %v9817_v17 = vld [vmem:[%s11409_s5 + $0x28] sm:$0xff] }
 0x19f   : > { %825 = vperm.xlu0 %8310, %v9741_v48   ;;  %v9764_v42 = vmul.f32 0.00390625, %v650_v20 }
 0x1a1   : > { %v693_v56 = vsel %vm685_vm9, %v9764_v42, 0.0 }
 0x1a2   : > { %v656_v38 = vpop.xlane.xlu0 %655 }
 0x1a3   : > { %8333 = vrot.lane.b32.xlu0 %v8608_v0, %s11511_s20  ;;  %v9779_v18 = vmul.f32 0.00390625, %v656_v38 }
 0x1a4   : > { %v644_v60 = vpop.xlane.xlu1 %643 }
 0x1a5   : > { %v9757_v36 = vmul.f32 0.00390625, %v644_v60  ;;  %v697_v19 = vsel %vm685_vm9, %v9779_v18, 0.0 }
 0x1a6   : > { %v8192_v7 = vpop.permute.xlu0 %8191 }
 0x1a7   : > { %v689_v41 = vsel %vm685_vm9, %v9757_v36, 0.0  ;;  %830 = vperm.xlu0 %8310, %v9753_v12   ;;  %v8194_v25 = vunpack.i.h.bf16 %v8192_v7  ;;  %v8193_v29 = vunpack.i.l.bf16 %v8192_v7 }
 0x1a8   : > { %v647_v8 = vpop.xlane.xlu1 %646  ;;  %v690_v51 = vadd.f32 %v689_v41, %v688_v27  ;;  %v8447_v27 = vld [vmem:[%s11408_s4 + $0x94] ss:$12 sps:$4 sm:$0xff]  }
 0x1a9   : > { %v9766_v45 = vmul.f32 0.00390625, %v647_v8  ;;  %v3688_v59 = vsel %vm3682_vm11, %v8193_v29, %v8194_v25  ;;  %4140 = vmatprep.mubr.bf16.mxu1 %v8447_v27  ;;  %v8453_v27 = vld [vmem:[%s11408_s4 + $0x68] ss:$12 sps:$4 sm:$0xff]  }
 0x1aa   : > { %v8197_v26 = vpop.permute.xlu0 %8196 }
 0x1ab   : > { %v691_v43 = vsel %vm685_vm9, %v9766_v45, 0.0  ;;  %v8199_v53 = vunpack.i.h.bf16 %v8197_v26  ;;  %v8198_v6 = vunpack.i.l.bf16 %v8197_v26  ;;  %8348 = vrot.lane.b32.xlu0 %v9476_v22, %s11512_s16  ;;  %v9828_v26 = vld [vmem:[#allocation5] sm:$0x3] }
 0x1ac   : > { %v692_v57 = vadd.f32 %v691_v43, %v690_v51  ;;  %v653_v44 = vpop.xlane.xlu1 %652  ;;  %vm4557_vm4 = vcmp.ge.s32.totalorder %v9828_v26, 9  ;;  %vm4755_vm10 = vcmp.lt.s32.totalorder %v9828_v26, 7 }
 0x1ad   : > { %v3690_v33 = vsel %vm3682_vm11, %v8198_v6, %v8199_v53  ;;  %v9783_v11 = vmul.f32 0.00390625, %v653_v44 }
 0x1ae   : > { %v694_v22 = vadd.f32 %v693_v56, %v692_v57  ;;  %v8202_v5 = vpop.permute.xlu0 %8201  ;;  %v7602_v28 = vpack.c.bf16 %v3690_v33, %v3688_v59  ;;  %v4558_v59 = vsel %vm4557_vm4, 1, %v11425_v1  ;;  %vm5264_vm4 = vcmask 916480  }
 0x1af   : > { %v695_v54 = vsel %vm685_vm9, %v9783_v11, 0.0  ;;  %v8204_v62 = vunpack.i.h.bf16 %v8202_v5  ;;  %v8203_v2 = vunpack.i.l.bf16 %v8202_v5  ;;  %835 = vperm.xlu0 %8310, %v9777_v58  }
 0x1b0   : > { %v696_v16 = vadd.f32 %v695_v54, %v694_v22  ;;  %v659_v30 = vpop.xlane.xlu1 %658  ;;  %7603 = vmatprep.subr.msk.bf16.mxu1 %vm9420_vm2, %v7602_v28  ;;  %v4566_v54 = vrot.slane %v4558_v59, %v9071_v52 }
 0x1b1   : > { %v3687_v23 = vsel %vm3682_vm11, %v8203_v2, %v8193_v29  ;;  %v3689_v15 = vsel %vm3682_vm11, %v8204_v62, %v8198_v6  ;;  %v9805_v14 = vmul.f32 0.00390625, %v659_v30  ;;  %v8449_v29 = vld [vmem:[%s11408_s4 + $0x90] ss:$12 sps:$4 sm:$0xff]   ;;  %v8450_v62 = vld [vmem:[%s11408_s4 + $0xac] ss:$12 sps:$4 sm:$0xff]  }
 0x1b2   : > { %v7605_v24 = vpack.c.bf16 %v3689_v15, %v3687_v23  ;;  %v8207_v4 = vpop.permute.xlu0 %8206  ;;  %v698_v47 = vadd.f32 %v697_v19, %v696_v16  ;;  %4141 = vmatmul.mubr.bf16.gmra.mxu1 %v8449_v29  ;;  %vm4568_vm7 = vcmp.eq.s32.totalorder %v4566_v54, 1  ;;  %v4562_v19 = vrot.slane %v4558_v59, %v9078_v55  ;;  %v9891_v29 = vld [vmem:[%s11409_s5 + $0x38] sm:$0xff] }
 0x1b3   : > { %8363 = vrot.lane.b32.xlu0 %v8362_v13, %s11512_s16  ;;  %v699_v20 = vsel %vm685_vm9, %v9805_v14, 0.0  ;;  %v8209_v7 = vunpack.i.h.bf16 %v8207_v4  ;;  %v8208_v37 = vunpack.i.l.bf16 %v8207_v4  ;;  %v9858_v13 = vld [vmem:[%s11409_s5 + $0x30] sm:$0xff]  ;;  %4150 = vmatprep.mubr.bf16.mxu1 %v8450_v62  ;;  %vm9867_vm15 = vmpackc.low %vm4568_vm7, %vm4568_vm7  ;;  %vm5142_vm7 = vcmask 990208  }
 0x1b4   : > { %v9810_v38 = vpop.permute.xlu1 %8236  ;;  %7606 = vmatpush1.bf16.msk.msra.mxu1 %vm9436_vm12, %v7605_v24  ;;  %v700_v60 = vadd.f32 %v699_v20, %v698_v47  ;;  %vm9871_vm1 = vcmp.eq.s32.totalorder %v4562_v19, 1 }
 0x1b5   : > { %v3684_v43 = vsel %vm3682_vm11, %v8208_v37, %v8209_v7 }
 0x1b6   : > { %701 = vadd.xlane.f32.xlu1 %v700_v60  ;;  %v8212_v41 = vpop.permute.xlu0 %8211 }
 0x1b7   : > { %v8214_v8 = vunpack.i.h.bf16 %v8212_v41  ;;  %v8213_v25 = vunpack.i.l.bf16 %v8212_v41  ;;  %840 = vperm.xlu0 %8310, %v9817_v17  }
 0x1b8   : > { %v9826_v51 = vpop.permute.xlu1 %8266 }
 0x1b9   : > { %v3686_v53 = vsel %vm3682_vm11, %v8213_v25, %v8214_v8  ;;  %v711_v8 = vmul.f32 %v9744_v39, %v9744_v39 }
 0x1ba   : > { %v8217_v6 = vpop.permute.xlu0 %8216  ;;  %v7608_v56 = vpack.c.bf16 %v3686_v53, %v3684_v43  ;;  %4151 = vmatmul.mubr.bf16.gmra.mxu1 %v8452_v61  ;;  %v11427_v43 = vmov 1   ;;  %v8238_v53 = vunpack.i.l.bf16 %v9810_v38 }
 0x1bb   : > { %v8219_v57 = vunpack.i.h.bf16 %v8217_v6  ;;  %v8218_v44 = vunpack.i.l.bf16 %v8217_v6  ;;  %8373 = vrot.lane.b32.xlu0 %v8608_v0, %s8634_s30  ;;  %4193 = vmatprep.mubr.bf16.mxu1 %v11425_v1 }
 0x1bc   : > { %v9836_v33 = vpop.permute.xlu1 %4710  ;;  %7609 = vmatprep.subr.msk.bf16.mxu1 %vm9420_vm2, %v7608_v56  ;;  %vm9901_vm2 = vmpackc.low %vm9871_vm1, %vm9871_vm1 }
 0x1bd   : > { %v3683_v22 = vsel %vm3682_vm11, %v8218_v44, %v8208_v37  ;;  %v3685_v5 = vsel %vm3682_vm11, %v8219_v57, %v8213_v25  ;;  %vm4605_vm11 = vcmask 203776  }
 0x1be   : > { %v7611_v28 = vpack.c.bf16 %v3685_v5, %v3683_v22  ;;  %v8222_v21 = vpop.permute.xlu0 %8221  ;;  %v8397_v22 = vpack.i.bf16 %v9792_v46, %v9496_v49  ;;  %v712_v5 = vmul.f32 %v9757_v36, %v9757_v36  ;;  %v719_v49 = vsel %vm685_vm9, %v711_v8, 0.0 }
 0x1bf   : > { %8378 = vrot.lane.b32.xlu0 %v8608_v0, %s8634_s30  ;;  %v8224_v9 = vunpack.i.h.bf16 %v8222_v21  ;;  %v8223_v16 = vunpack.i.l.bf16 %v8222_v21  ;;  %v713_v46 = vmul.f32 %v9766_v45, %v9766_v45 }
 0x1c0   : > { %v9851_v2 = vpop.permute.xlu1 %4714  ;;  %7612 = vmatpush1.bf16.msk.msra.mxu1 %vm9436_vm12, %v7611_v28  ;;  %v721_v19 = vsel %vm685_vm9, %v712_v5, 0.0 }
 0x1c1   : > { %v4910_v24 = vsel %vm4904_vm14, %v8223_v16, %v8224_v9 }
 0x1c2   : > { %v8227_v30 = vpop.permute.xlu0 %8226 }
 0x1c3   : > { %v8229_v23 = vunpack.i.h.bf16 %v8227_v30  ;;  %v8228_v15 = vunpack.i.l.bf16 %v8227_v30  ;;  %845 = vperm.xlu0 %8310, %v9858_v13   ;;  %7074 = vmatmul.mubr.msk.bf16.vlgmr.msra.gmra.mxu1 %vm498_vm0, %v8453_v27 }
 0x1c4   : > { %v9863_v50 = vpop.permute.xlu1 %8276  ;;  %4203 = vmatprep.mubr.bf16.mxu1 %v11425_v1 }
 0x1c5   : > { %v4912_v4 = vsel %vm4904_vm14, %v8228_v15, %v8229_v23 }
 0x1c6   : > { %v8232_v20 = vpop.permute.xlu0 %8231  ;;  %v7638_v60 = vpack.c.bf16 %v4912_v4, %v4910_v24 }
 0x1c7   : > { %v8234_v37 = vunpack.i.h.bf16 %v8232_v20  ;;  %v8233_v41 = vunpack.i.l.bf16 %v8232_v20  ;;  %8388 = vrot.lane.b32.xlu1 %v8608_v0, %s8634_s30  ;;  %8383 = vrot.lane.b32.xlu0 %v9681_v3, %s8634_s30  ;;  %v8239_v3 = vunpack.i.h.bf16 %v9810_v38  ;;  %v710_v38 = vmul.f32 %v9746_v10, %v9746_v10 }
 0x1c8   : > { %v9884_v25 = vpop.permute.xlu1 %4704  ;;  %7639 = vmatprep.subr.msk.bf16.mxu0 %vm9867_vm15, %v7638_v60  ;;  %8403 = vset.pattern.permute.xlu0 %v11427_v43  ;;  %v723_v20 = vsel %vm685_vm9, %v713_v46, 0.0 }
 0x1c9   : > { %v4909_v6 = vsel %vm4904_vm14, %v8233_v41, %v8223_v16  ;;  %v4911_v56 = vsel %vm4904_vm14, %v8234_v37, %v8228_v15  ;;  %v4906_v26 = vsel %vm4904_vm14, %v8238_v53, %v8239_v3  ;;  %v4756_v16 = vsel %vm4755_vm10, 1, %v11425_v1 }
 0x1ca   : > { %v7641_v44 = vpack.c.bf16 %v4911_v56, %v4909_v6  ;;  %v8242_v59 = vpop.permute.xlu0 %8241  ;;  %v718_v30 = vsel %vm685_vm9, %v710_v38, 0.0  ;;  %v4764_v8 = vrot.slane %v4756_v16, %v9071_v52  ;;  %v714_v3 = vmul.f32 %v9764_v42, %v9764_v42 }
 0x1cb   : > { %v8244_v28 = vunpack.i.h.bf16 %v8242_v59  ;;  %v8243_v21 = vunpack.i.l.bf16 %v8242_v59  ;;  %850 = vperm.xlu1 %8311, %v9891_v29   ;;  %v720_v24 = vadd.f32 %v719_v49, %v718_v30  ;;  %v715_v56 = vmul.f32 %v9783_v11, %v9783_v11 }
 0x1cc   : > { %v9915_v54 = vpop.permute.xlu1 %4708  ;;  %7642 = vmatpush1.bf16.msk.msra.mxu0 %vm9901_vm2, %v7641_v44  ;;  %vm4766_vm12 = vcmp.eq.s32.totalorder %v4764_v8, 1  ;;  %v4760_v52 = vrot.slane %v4756_v16, %v9078_v55  ;;  %v725_v38 = vsel %vm685_vm9, %v714_v3, 0.0  ;;  %v717_v30 = vmul.f32 %v9805_v14, %v9805_v14 }
 0x1cd   : > { %v4908_v62 = vsel %vm4904_vm14, %v8243_v21, %v8244_v28  ;;  %v722_v37 = vadd.f32 %v721_v19, %v720_v24  ;;  %vm9952_vm5 = vmpackc.low %vm4766_vm12, %vm4766_vm12  ;;  %v8269_v19 = vunpack.i.h.bf16 %v9826_v51  ;;  %v8278_v24 = vunpack.i.l.bf16 %v9863_v50 }
 0x1ce   : > { %v8247_v61 = vpop.permute.xlu0 %8246  ;;  %v7644_v9 = vpack.c.bf16 %v4908_v62, %v4906_v26  ;;  %vm4765_vm6 = vcmp.eq.s32.totalorder %v4760_v52, 1  ;;  %v8461_v26 = vld [vmem:[%s11408_s4 + $0xdc] ss:$12 sps:$4 sm:$0xff]  }
 0x1cf   : > { %v8249_v23 = vunpack.i.h.bf16 %v8247_v61  ;;  %v8248_v15 = vunpack.i.l.bf16 %v8247_v61  ;;  %8398 = vrot.lane.b32.xlu1 %v8397_v22, %s8634_s30  ;;  %v724_v6 = vadd.f32 %v723_v20, %v722_v37  ;;  %v716_v61 = vmul.f32 %v9779_v18, %v9779_v18  ;;  %vm9970_vm8 = vmpackc.low %vm4765_vm6, %vm4765_vm6 }
 0x1d0   : > { %v9928_v4 = vpop.permute.xlu1 %8286  ;;  %7645 = vmatprep.subr.msk.bf16.mxu0 %vm9867_vm15, %v7644_v9  ;;  %8402 = vset.pattern.permute.xlu1 %v11427_v43 }
 0x1d1   : > { %v4905_v60 = vsel %vm4904_vm14, %v8248_v15, %v8238_v53  ;;  %v4907_v7 = vsel %vm4904_vm14, %v8249_v23, %v8243_v21  ;;  %v727_v21 = vsel %vm685_vm9, %v715_v56, 0.0  ;;  %v8268_v15 = vunpack.i.l.bf16 %v9826_v51 }
 0x1d2   : > { %v7647_v41 = vpack.c.bf16 %v4907_v7, %v4905_v60  ;;  %v8252_v27 = vpop.permute.xlu0 %8251  ;;  %v729_v3 = vsel %vm685_vm9, %v716_v61, 0.0  ;;  %vm5328_vm14 = vcmask 842752   ;;  %v8463_v7 = vld [vmem:[%s11408_s4 + $0xd8] ss:$12 sps:$4 sm:$0xff]  }
 0x1d3   : > { %2152 = vperm.xlu1 %8402, %v9727_v63   ;;  %v8254_v53 = vunpack.i.h.bf16 %v8252_v27  ;;  %v8253_v44 = vunpack.i.l.bf16 %v8252_v27  ;;  %v726_v63 = vadd.f32 %v725_v38, %v724_v6  ;;  %v731_v6 = vsel %vm685_vm9, %v717_v30, 0.0 }
 0x1d4   : > { %7648 = vmatpush1.bf16.msk.msra.mxu0 %vm9901_vm2, %v7647_v41  ;;  %v9944_v59 = vpop.permute.xlu1 %8296  ;;  %v8279_v41 = vunpack.i.h.bf16 %v9863_v50  ;;  %v4805_v56 = vsel %vm4803_vm3, %v8268_v15, %v8269_v19  ;;  %vm4727_vm9 = vcmask 130048  }
 0x1d5   : > { %v4809_v49 = vsel %vm4803_vm3, %v8253_v44, %v8254_v53  ;;  %v728_v23 = vadd.f32 %v727_v21, %v726_v63  ;;  %v4804_v53 = vsel %vm4803_vm3, %v8278_v24, %v8268_v15  ;;  %v4722_v63 = vrot.slane %v9836_v33, 4 }
 0x1d6   : > { %v8257_v22 = vpop.permute.xlu0 %8256  ;;  %v4719_v15 = vrot.slane %v9884_v25, 4 }
 0x1d7   : > { %v8259_v5 = vunpack.i.h.bf16 %v8257_v22  ;;  %v8258_v28 = vunpack.i.l.bf16 %v8257_v22  ;;  %2157 = vperm.xlu1 %8402, %v9666_v40   ;;  %v730_v51 = vadd.f32 %v729_v3, %v728_v23 }
 0x1d8   : > { %v9958_v9 = vpop.permute.xlu1 %8306 }
 0x1d9   : > { %v4811_v46 = vsel %vm4803_vm3, %v8258_v28, %v8259_v5 }
 0x1da   : > { %v8262_v62 = vpop.permute.xlu0 %8261  ;;  %v7650_v55 = vpack.c.bf16 %v4811_v46, %v4809_v49  ;;  %v4724_v49 = vrot.slane %v9851_v2, 4 }
 0x1db   : > { %v8264_v40 = vunpack.i.h.bf16 %v8262_v62  ;;  %v8263_v16 = vunpack.i.l.bf16 %v8262_v62  ;;  %2162 = vperm.xlu1 %8402, %v9741_v48  }
 0x1dc   : > { %7651 = vmatprep.subr.msk.bf16.mxu0 %vm9952_vm5, %v7650_v55 }
 0x1dd   : > { %v4808_v20 = vsel %vm4803_vm3, %v8263_v16, %v8253_v44  ;;  %v4810_v60 = vsel %vm4803_vm3, %v8264_v40, %v8258_v28  ;;  %v9982_v44 = vpop.permute.xlu1 %5249  ;;  %v732_v28 = vadd.f32 %v731_v6, %v730_v51 }
 0x1de   : > { %v7653_v48 = vpack.c.bf16 %v4810_v60, %v4808_v20  ;;  %v8272_v37 = vpop.permute.xlu0 %8271  ;;  %v4721_v60 = vrot.slane %v9915_v54, 4 }
 0x1df   : > { %v8274_v27 = vunpack.i.h.bf16 %v8272_v37  ;;  %v8273_v8 = vunpack.i.l.bf16 %v8272_v37  ;;  %2172 = vperm.xlu1 %8402, %v9777_v58  }
 0x1e0   : > { %7654 = vmatpush1.bf16.msk.msra.mxu0 %vm9970_vm8, %v7653_v48 }
 0x1e1   : > { %v4806_v50 = vsel %vm4803_vm3, %v8279_v41, %v8273_v8  ;;  %v4807_v22 = vsel %vm4803_vm3, %v8273_v8, %v8274_v27  ;;  %v9993_v46 = vpop.permute.xlu1 %5253  ;;  %v8288_v41 = vunpack.i.l.bf16 %v9928_v4 }
 0x1e2   : > { %v7659_v52 = vpack.c.bf16 %v4806_v50, %v4804_v53  ;;  %v4713_v38 = vpop.permute.xlu0 %4712  ;;  %v7656_v5 = vpack.c.bf16 %v4807_v22, %v4805_v56 }
 0x1e3   : > { %v4723_v58 = vrot.slane %v4713_v38, 4  ;;  %2177 = vperm.xlu1 %8402, %v9817_v17  }
 0x1e4   : > { %7657 = vmatprep.subr.msk.bf16.mxu0 %vm9952_vm5, %v7656_v5  ;;  %v8454_v5 = vld [vmem:[%s11408_s4 + $0x80] ss:$12 sps:$4 sm:$0xff]  }
 0x1e5   : > { %7660 = vmatpush1.bf16.msk.msra.mxu0 %vm9970_vm8, %v7659_v52  ;;  %v4731_v62 = vsel %vm1434_vm13, %v4722_v63, %v4723_v58  ;;  %v10002_v24 = vpop.permute.xlu1 %5241  ;;  %v8299_v58 = vunpack.i.h.bf16 %v9944_v59  ;;  %v8308_v63 = vunpack.i.l.bf16 %v9958_v9  ;;  %7075 = vmatmul.mubr.msk.bf16.gmra.mxu1 %vm498_vm0, %v8454_v5 }
 0x1e6   : > { %v4717_v21 = vpop.permute.xlu0 %4716  ;;  %733 = vadd.xlane.f32.xlu0 %v732_v28  ;;  %v4732_v40 = vsel %vm4727_vm9, %v9836_v33, %v4731_v62  ;;  %v8289_v33 = vunpack.i.h.bf16 %v9928_v4  ;;  %v8298_v28 = vunpack.i.l.bf16 %v9944_v59  ;;  %4213 = vmatprep.mubr.bf16.mxu1 %v11425_v1 }
 0x1e7   : > { %v4725_v55 = vrot.slane %v4717_v21, 4 }
 0x1e8   : > { %v4613_v53 = vsel %vm4605_vm11, %v8288_v41, %v8289_v33  ;;  %v4607_v59 = vsel %vm4605_vm11, %v8298_v28, %v8299_v58 }
 0x1e9   : > { %v4733_v17 = vsel %vm1434_vm13, %v4724_v49, %v4725_v55  ;;  %v10011_v3 = vpop.permute.xlu1 %5245 }
 0x1ea   : > { %v4703_v61 = vpop.permute.xlu0 %4702  ;;  %v4734_v16 = vsel %vm4727_vm9, %v9851_v2, %v4733_v17 }
 0x1eb   : > { %v4718_v30 = vrot.slane %v4703_v61, 4  ;;  %v7164_v19 = vcombine.low %v4732_v40, %v4734_v16  ;;  %v7165_v23 = vcombine.high %v4732_v40, %v4734_v16 }
 0x1ed   : > { %5742 = vmatprep.subr.bf16.mxu0 %v7165_v23  ;;  %v4726_v48 = vsel %vm1434_vm13, %v4718_v30, %v4719_v15  ;;  %v10023_v21 = vpop.permute.xlu1 %820  ;;  %v4606_v30 = vsel %vm4605_vm11, %v8308_v63, %v8298_v28 }
 0x1ee   : > { %v4707_v20 = vpop.permute.xlu0 %4706  ;;  %5743 = vmatpush1.bf16.msra.mxu0 %v7164_v19  ;;  %v4728_v27 = vsel %vm4727_vm9, %v4703_v61, %v4726_v48  ;;  %v8309_v61 = vunpack.i.h.bf16 %v9958_v9 }
 0x1ef   : > { %v4720_v37 = vrot.slane %v4707_v20, 4 }
 0x1f1   : > { %v4729_v2 = vsel %vm1434_vm13, %v4720_v37, %v4721_v60  ;;  %v8314_v9 = vpop.permute.xlu1 %8313  ;;  %v5260_v37 = vrot.slane %v9982_v44, 4 }
 0x1f2   : > { %v4730_v25 = vsel %vm4727_vm9, %v4707_v20, %v4729_v2  ;;  %v8282_v8 = vpop.permute.xlu0 %8281 }
 0x1f3   : > { %v7162_v51 = vcombine.low %v4728_v27, %v4730_v25  ;;  %v8284_v6 = vunpack.i.h.bf16 %v8282_v8  ;;  %v8283_v54 = vunpack.i.l.bf16 %v8282_v8  ;;  %v7163_v56 = vcombine.high %v4728_v27, %v4730_v25 }
 0x1f5   : > { %v4611_v50 = vsel %vm4605_vm11, %v8283_v54, %v8284_v6  ;;  %5744 = vmatprep.subr.bf16.mxu0 %v7163_v56  ;;  %v8456_v6 = vld [vmem:[%s11408_s4 + $0xb0] ss:$12 sps:$4 sm:$0xff]  }
 0x1f6   : > { %v8292_v4 = vpop.permute.xlu0 %8291  ;;  %v7662_v22 = vpack.c.bf16 %v4613_v53, %v4611_v50  ;;  %5745 = vmatpush1.bf16.msra.mxu0 %v7162_v51  ;;  %v5256_v53 = vrot.slane %v10002_v24, 4 }
 0x1f7   : > { %v8294_v52 = vunpack.i.h.bf16 %v8292_v4  ;;  %v8293_v38 = vunpack.i.l.bf16 %v8292_v4  ;;  %v5258_v4 = vrot.slane %v10011_v3, 4  ;;  %v8316_v3 = vunpack.i.h.bf16 %v8314_v9 }
 0x1f8   : > { %7663 = vmatprep.subr.msk.bf16.mxu0 %vm9867_vm15, %v7662_v22 }
 0x1f9   : > { %v4610_v49 = vsel %vm4605_vm11, %v8293_v38, %v8283_v54  ;;  %v4612_v62 = vsel %vm4605_vm11, %v8294_v52, %v8288_v41  ;;  %v5262_v41 = vrot.slane %v9993_v46, 4 }
 0x1fa   : > { %v7665_v55 = vpack.c.bf16 %v4612_v62, %v4610_v49  ;;  %v8302_v17 = vpop.permute.xlu0 %8301 }
 0x1fb   : > { %v8304_v40 = vunpack.i.h.bf16 %v8302_v17  ;;  %v8303_v16 = vunpack.i.l.bf16 %v8302_v17  ;;  %v8315_v17 = vunpack.i.l.bf16 %v8314_v9 }
 0x1fc   : > { %7666 = vmatpush1.bf16.msk.msra.mxu0 %vm9901_vm2, %v7665_v55  ;;  %8393 = vrot.lane.b32.xlu0 %v8608_v0, %s8634_s30  ;;  %v8455_v0 = vld [vmem:[%s11408_s4 + $0x98] ss:$12 sps:$4 sm:$0xff]   ;;  %v919_v55 = vpop.f32.mrf.mxu1 }
 0x1fd   : > { %v4608_v19 = vsel %vm4605_vm11, %v8309_v61, %v8303_v16  ;;  %v4609_v23 = vsel %vm4605_vm11, %v8303_v16, %v8304_v40  ;;  %7076 = vmatmul.mubr.msk.bf16.gmra.mxu1 %vm498_vm0, %v8455_v0 }
 0x1fe   : > { %v7671_v15 = vpack.c.bf16 %v4608_v19, %v4606_v30  ;;  %v5248_v20 = vpop.permute.xlu0 %5247  ;;  %v7668_v60 = vpack.c.bf16 %v4609_v23, %v4607_v59  ;;  %4223 = vmatprep.mubr.bf16.mxu1 %v11425_v1  ;;  %v921_v23 = vpop.f32.mrf.mxu1 }
 0x1ff   : > { %v5259_v48 = vrot.slane %v5248_v20, 4 }
 0x200   : > { %7669 = vmatprep.subr.msk.bf16.mxu0 %vm9867_vm15, %v7668_v60  ;;  %2167 = vperm.xlu0 %8403, %v9753_v12   ;;  %v8324_v12 = vpop.permute.xlu1 %8323 }
 0x201   : > { %7672 = vmatpush1.bf16.msk.msra.mxu0 %vm9901_vm2, %v7671_v15  ;;  %v5268_v2 = vsel %vm1434_vm13, %v5259_v48, %v5260_v37  ;;  %v8325_v61 = vunpack.i.l.bf16 %v8324_v12  ;;  %v8326_v16 = vunpack.i.h.bf16 %v8324_v12  ;;  %v5148_v15 = vsel %vm5142_vm7, %v8315_v17, %v8316_v3 }
 0x202   : > { %v5252_v33 = vpop.permute.xlu0 %5251  ;;  %v5269_v8 = vsel %vm5264_vm4, %v5248_v20, %v5268_v2  ;;  %v923_v2 = vpop.f32.mrf.mxu1 }
 0x203   : > { %v5261_v27 = vrot.slane %v5252_v33, 4  ;;  %v5147_v20 = vsel %vm5142_vm7, %v8325_v61, %v8315_v17 }
 0x204   : > { %v8329_v22 = vpop.permute.xlu1 %8328 }
 0x205   : > { %v5270_v25 = vsel %vm1434_vm13, %v5261_v27, %v5262_v41  ;;  %7077 = vmatmul.mubr.msk.bf16.gmra.mxu1 %vm498_vm0, %v8456_v6  ;;  %v8331_v27 = vunpack.i.h.bf16 %v8329_v22  ;;  %v8330_v12 = vunpack.i.l.bf16 %v8329_v22 }
 0x206   : > { %v5271_v44 = vsel %vm5264_vm4, %v5252_v33, %v5270_v25  ;;  %v5240_v51 = vpop.permute.xlu0 %5239  ;;  %5839 = vmatprep.mubr.bf16.mxu1 %v11425_v1 }
 0x207   : > { %v7188_v54 = vcombine.low %v5269_v8, %v5271_v44  ;;  %v5255_v46 = vrot.slane %v5240_v51, 4  ;;  %v7189_v56 = vcombine.high %v5269_v8, %v5271_v44 }
 0x208   : > { %v8339_v49 = vpop.permute.xlu1 %8338 }
 0x209   : > { %5750 = vmatprep.subr.bf16.mxu0 %v7189_v56  ;;  %v5263_v52 = vsel %vm1434_vm13, %v5255_v46, %v5256_v53  ;;  %v8340_v25 = vunpack.i.l.bf16 %v8339_v49  ;;  %v8341_v44 = vunpack.i.h.bf16 %v8339_v49  ;;  %v10082_v53 = vadd.f32 %v923_v2, %v10023_v21 }
 0x20a   : > { %v5244_v50 = vpop.permute.xlu0 %5243  ;;  %5751 = vmatpush2.bf16.msra.mxu0 %v7188_v54  ;;  %v5265_v58 = vsel %vm5264_vm4, %v5240_v51, %v5263_v52 }
 0x20b   : > { %v5257_v38 = vrot.slane %v5244_v50, 4  ;;  %11525 = vst [vmem:[#allocation13_spill] sm:$0xff] %v10082_v53  ;;  %v5143_v22 = vsel %vm5142_vm7, %v8340_v25, %v8330_v12  ;;  %v984_v61 = vmul.f32 %v10082_v53, %v10082_v53 }
 0x20c   : > { %v8344_v59 = vpop.permute.xlu1 %8343 }
 0x20d   : > { %v5266_v5 = vsel %vm1434_vm13, %v5257_v38, %v5258_v4  ;;  %v5144_v4 = vsel %vm5142_vm7, %v8330_v12, %v8331_v27  ;;  %v8346_v3 = vunpack.i.h.bf16 %v8344_v59  ;;  %v8345_v17 = vunpack.i.l.bf16 %v8344_v59 }
 0x20e   : > { %v5267_v28 = vsel %vm5264_vm4, %v5244_v50, %v5266_v5  ;;  %v925_v50 = vpop.f32.mrf.mxu1  ;;  %vm5041_vm13 = vcmask 973824  }
 0x20f   : > { %v7186_v24 = vcombine.low %v5265_v58, %v5267_v28  ;;  %v7187_v63 = vcombine.high %v5265_v58, %v5267_v28 }
 0x210   : > { %v8354_v8 = vpop.permute.xlu1 %8353 }
 0x211   : > { %5752 = vmatprep.subr.bf16.mxu0 %v7187_v63 }
 0x212   : > { %v816_v62 = vpop.permute.xlu0 %815  ;;  %5753 = vmatpush2.bf16.msra.mxu0 %v7186_v24 }
 0x213   : > { %v10069_v9 = vadd.f32 %v919_v55, %v816_v62  ;;  %v10071_v41 = vadd.f32 %v921_v23, %v816_v62  ;;  %v929_v62 = vpop.f32.mrf.mxu1  ;;  %v10091_v55 = vadd.f32 %v925_v50, %v10023_v21  ;;  %v8356_v21 = vunpack.i.h.bf16 %v8354_v8 }
 0x214   : > { %v8359_v63 = vpop.permute.xlu1 %8358 }
 0x215   : > { %11523 = vst [vmem:[#allocation11_spill] sm:$0xff] %v10069_v9  ;;  %11524 = vst [vmem:[#allocation12_spill] sm:$0xff] %v10071_v41  ;;  %v982_v6 = vmul.f32 %v10069_v9, %v10069_v9  ;;  %v983_v54 = vmul.f32 %v10071_v41, %v10071_v41  ;;  %v958_v5 = vadd.f32 %v10071_v41, %v10069_v9 }
 0x216   : > { %v8319_v40 = vpop.permute.xlu0 %8318  ;;  %11526 = vst [vmem:[#allocation14_spill] sm:$0xff] %v10091_v55  ;;  %v985_v47 = vmul.f32 %v10091_v55, %v10091_v55 }
 0x217   : > { %v8321_v30 = vunpack.i.h.bf16 %v8319_v40  ;;  %v8320_v19 = vunpack.i.l.bf16 %v8319_v40  ;;  %v998_v49 = vadd.f32 %v983_v54, %v982_v6  ;;  %v8355_v40 = vunpack.i.l.bf16 %v8354_v8 }
 0x219   : > { %v5149_v60 = vsel %vm5142_vm7, %v8326_v16, %v8320_v19  ;;  %v5150_v48 = vsel %vm5142_vm7, %v8320_v19, %v8321_v30  ;;  %v959_v30 = vadd.f32 %v958_v5, %v10082_v53  ;;  %v999_v23 = vadd.f32 %v998_v49, %v984_v61 }
 0x21a   : > { %v7677_v0 = vpack.c.bf16 %v5149_v60, %v5147_v20  ;;  %v826_v37 = vpop.permute.xlu0 %825  ;;  %v7674_v33 = vpack.c.bf16 %v5150_v48, %v5148_v15  ;;  %v931_v15 = vpop.f32.mrf.mxu1  ;;  %v5047_v60 = vsel %vm5041_vm13, %v8345_v17, %v8346_v3  ;;  %v5046_v48 = vsel %vm5041_vm13, %v8355_v40, %v8345_v17 }
 0x21b   : > { %v10097_v16 = vadd.f32 %v929_v62, %v826_v37  ;;  %v960_v12 = vadd.f32 %v959_v30, %v10091_v55  ;;  %v10111_v6 = vadd.f32 %v931_v15, %v826_v37  ;;  %v1000_v54 = vadd.f32 %v999_v23, %v985_v47 }
 0x21c   : > { %7675 = vmatprep.subr.msk.bf16.mxu0 %vm9867_vm15, %v7674_v33  ;;  %v933_v33 = vpop.f32.mrf.mxu1 }
 0x21d   : > { %7678 = vmatpush2.bf16.msk.msra.mxu0 %vm9901_vm2, %v7677_v0  ;;  %11527 = vst [vmem:[#allocation15_spill] sm:$0xff] %v10097_v16  ;;  %v8369_v0 = vpop.permute.xlu1 %8368  ;;  %v986_v57 = vmul.f32 %v10097_v16, %v10097_v16  ;;  %11528 = vst [vmem:[#allocation16_spill] sm:$0xff] %v10111_v6  ;;  %v961_v50 = vadd.f32 %v960_v12, %v10097_v16  ;;  %v987_v37 = vmul.f32 %v10111_v6, %v10111_v6 }
 0x21e   : > { %v8334_v51 = vpop.permute.xlu0 %8333  ;;  %v8371_v5 = vunpack.i.h.bf16 %v8369_v0 }
 0x21f   : > { %v8336_v46 = vunpack.i.h.bf16 %v8334_v51  ;;  %v8335_v56 = vunpack.i.l.bf16 %v8334_v51  ;;  %v8361_v51 = vunpack.i.h.bf16 %v8359_v63  ;;  %v962_v3 = vadd.f32 %v961_v50, %v10111_v6 }
 0x221   : > { %v5145_v52 = vsel %vm5142_vm7, %v8341_v44, %v8335_v56  ;;  %v5146_v38 = vsel %vm5142_vm7, %v8335_v56, %v8336_v46  ;;  %v8360_v46 = vunpack.i.l.bf16 %v8359_v63  ;;  %v8370_v56 = vunpack.i.l.bf16 %v8369_v0 }
 0x222   : > { %v7683_v58 = vpack.c.bf16 %v5145_v52, %v5143_v22  ;;  %v831_v28 = vpop.permute.xlu0 %830  ;;  %v7680_v24 = vpack.c.bf16 %v5146_v38, %v5144_v4  ;;  %v1001_v22 = vadd.f32 %v1000_v54, %v986_v57  ;;  %v935_v52 = vpop.f32.mrf.mxu1 }
 0x223   : > { %v10114_v4 = vadd.f32 %v933_v33, %v831_v28  ;;  %v5043_v49 = vsel %vm5041_vm13, %v8360_v46, %v8361_v51  ;;  %v5042_v62 = vsel %vm5041_vm13, %v8370_v56, %v8360_v46  ;;  %v10127_v40 = vadd.f32 %v935_v52, %v831_v28 }
 0x224   : > { %7681 = vmatprep.subr.msk.bf16.mxu0 %vm9867_vm15, %v7680_v24  ;;  %v1002_v61 = vadd.f32 %v1001_v22, %v987_v37 }
 0x225   : > { %7684 = vmatpush2.bf16.msk.msra.mxu0 %vm9901_vm2, %v7683_v58  ;;  %11529 = vst [vmem:[#allocation17_spill] sm:$0xff] %v10114_v4  ;;  %v939_v58 = vpop.f32.mrf.mxu1  ;;  %v988_v17 = vmul.f32 %v10114_v4, %v10114_v4  ;;  %11530 = vst [vmem:[#allocation18_spill] sm:$0xff] %v10127_v40  ;;  %v989_v57 = vmul.f32 %v10127_v40, %v10127_v40 }
 0x226   : > { %v8349_v19 = vpop.permute.xlu0 %8348 }
 0x227   : > { %v8351_v59 = vunpack.i.h.bf16 %v8349_v19  ;;  %v8350_v20 = vunpack.i.l.bf16 %v8349_v19  ;;  %v941_v47 = vpop.f32.mrf.mxu1 }
 0x229   : > { %v5048_v2 = vsel %vm5041_vm13, %v8356_v21, %v8350_v20  ;;  %v5049_v27 = vsel %vm5041_vm13, %v8350_v20, %v8351_v59  ;;  %v963_v21 = vadd.f32 %v962_v3, %v10114_v4  ;;  %v943_v28 = vpop.f32.mrf.mxu1 }
 0x22a   : > { %v7689_v25 = vpack.c.bf16 %v5048_v2, %v5046_v48  ;;  %v836_v8 = vpop.permute.xlu0 %835  ;;  %v7686_v44 = vpack.c.bf16 %v5049_v27, %v5047_v60  ;;  %v1003_v60 = vadd.f32 %v1002_v61, %v988_v17  ;;  %v11429_v48 = vmov 2  }
 0x22b   : > { %v10132_v23 = vadd.f32 %v939_v58, %v836_v8  ;;  %8404 = vset.pattern.permute.xlu1 %v11429_v48  ;;  %v964_v0 = vadd.f32 %v963_v21, %v10127_v40  ;;  %v10145_v12 = vadd.f32 %v941_v47, %v836_v8  ;;  %v945_v51 = vpop.f32.mrf.mxu1 }
 0x22c   : > { %7687 = vmatprep.subr.msk.bf16.mxu0 %vm9952_vm5, %v7686_v44  ;;  %v1004_v27 = vadd.f32 %v1003_v60, %v989_v57 }
 0x22d   : > { %7690 = vmatpush2.bf16.msk.msra.mxu0 %vm9970_vm8, %v7689_v25  ;;  %11531 = vst [vmem:[#allocation19_spill] sm:$0xff] %v10132_v23  ;;  %v990_v33 = vmul.f32 %v10132_v23, %v10132_v23  ;;  %11532 = vst [vmem:[#allocation20_spill] sm:$0xff] %v10145_v12  ;;  %v965_v25 = vadd.f32 %v964_v0, %v10132_v23 }
 0x22e   : > { %v8364_v38 = vpop.permute.xlu0 %8363 }
 0x22f   : > { %v8366_v24 = vunpack.i.h.bf16 %v8364_v38  ;;  %v8365_v63 = vunpack.i.l.bf16 %v8364_v38  ;;  %v1005_v56 = vadd.f32 %v1004_v27, %v990_v33  ;;  %v966_v8 = vadd.f32 %v965_v25, %v10145_v12 }
 0x230   : > { %v991_v38 = vmul.f32 %v10145_v12, %v10145_v12 }
 0x231   : > { %v5044_v30 = vsel %vm5041_vm13, %v8371_v5, %v8365_v63  ;;  %v5045_v19 = vsel %vm5041_vm13, %v8365_v63, %v8366_v24 }
 0x232   : > { %v7695_v15 = vpack.c.bf16 %v5044_v30, %v5042_v62  ;;  %v841_v59 = vpop.permute.xlu0 %840  ;;  %v7692_v20 = vpack.c.bf16 %v5045_v19, %v5043_v49  ;;  %v1006_v58 = vadd.f32 %v1005_v56, %v991_v38 }
 0x233   : > { %v10148_v44 = vadd.f32 %v943_v28, %v841_v59  ;;  %v10160_v24 = vadd.f32 %v945_v51, %v841_v59 }
 0x234   : > { %7693 = vmatprep.subr.msk.bf16.mxu0 %vm9952_vm5, %v7692_v20 }
 0x235   : > { %7696 = vmatpush2.bf16.msk.msra.mxu0 %vm9970_vm8, %v7695_v15  ;;  %11533 = vst [vmem:[#allocation21_spill] sm:$0xff] %v10148_v44  ;;  %v992_v5 = vmul.f32 %v10148_v44, %v10148_v44  ;;  %11534 = vst [vmem:[#allocation22_spill] sm:$0xff] %v10160_v24 }
 0x236   : > { %v8374_v2 = vpop.permute.xlu0 %8373  ;;  %5762 = vmatprep.subr.bf16.mxu0 %v8945_v31  ;;  %v949_v31 = vpop.f32.mrf.mxu1 }
 0x237   : > { %v8376_v54 = vunpack.i.h.bf16 %v8374_v2  ;;  %v8375_v46 = vunpack.i.l.bf16 %v8374_v2  ;;  %v1007_v61 = vadd.f32 %v1006_v58, %v992_v5 }
 0x238   : > { %v951_v17 = vpop.f32.mrf.mxu1 }
 0x239   : > { %5763 = vmatpush2.bf16.msra.mxu0 %v8951_v32  ;;  %v5334_v37 = vsel %vm5328_vm14, %v8375_v46, %v8376_v54 }
 0x23a   : > { %v8379_v50 = vpop.permute.xlu0 %8378  ;;  %5764 = vmatprep.subr.bf16.mxu0 %v8962_v34  ;;  %v967_v34 = vadd.f32 %v966_v8, %v10148_v44  ;;  %v953_v47 = vpop.f32.mrf.mxu1 }
 0x23b   : > { %v8381_v22 = vunpack.i.h.bf16 %v8379_v50  ;;  %v8380_v52 = vunpack.i.l.bf16 %v8379_v50 }
 0x23c   : > { %v968_v19 = vadd.f32 %v967_v34, %v10160_v24 }
 0x23d   : > { %v5336_v32 = vsel %vm5328_vm14, %v8380_v52, %v8381_v22  ;;  %5765 = vmatpush2.bf16.msra.mxu0 %v8968_v35  ;;  %v993_v35 = vmul.f32 %v10160_v24, %v10160_v24  ;;  %v955_v22 = vpop.f32.mrf.mxu1 }
 0x23e   : > { %v846_v63 = vpop.permute.xlu0 %845  ;;  %v7698_v49 = vpack.c.bf16 %v5336_v32, %v5334_v37 }
 0x23f   : > { %v10163_v62 = vadd.f32 %v949_v31, %v846_v63  ;;  %v702_v3 = vpop.xlane.xlu1 %701  ;;  %v10172_v20 = vadd.f32 %v951_v17, %v846_v63  ;;  %v1008_v57 = vadd.f32 %v1007_v61, %v993_v35  ;;  %v10195_v17 = vld [vmem:[%s11409_s5] sm:$0xff]  ;;  %v10201_v61 = vld [vmem:[%s11409_s5 + $0x8] sm:$0xff]  ;;  %v10221_v35 = vld [vmem:[%s11409_s5 + $0x10] sm:$0xff] }
 0x240   : > { %v703_v30 = vrot.slane %v702_v3, 4  ;;  %7699 = vmatprep.subr.msk.bf16.mxu1 %vm9952_vm5, %v7698_v49 }
 0x241   : > { %11535 = vst [vmem:[#allocation23_spill] sm:$0xff] %v10163_v62  ;;  %v994_v21 = vmul.f32 %v10163_v62, %v10163_v62  ;;  %11536 = vst [vmem:[#allocation24_spill] sm:$0xff] %v10172_v20  ;;  %v969_v33 = vadd.f32 %v968_v19, %v10163_v62  ;;  %v995_v50 = vmul.f32 %v10172_v20, %v10172_v20  ;;  %v10214_v19 = vld [vmem:[%s11409_s5 + $0x20] sm:$0xff] }
 0x242   : > { %v704_v15 = vadd.f32 %v703_v30, %v702_v3  ;;  %v8384_v59 = vpop.permute.xlu0 %8383  ;;  %v10207_v30 = vld [vmem:[%s11409_s5 + $0x18] sm:$0xff] }
 0x243   : > { %v8386_v60 = vunpack.i.h.bf16 %v8384_v59  ;;  %v8385_v28 = vunpack.i.l.bf16 %v8384_v59  ;;  %v8389_v0 = vpop.permute.xlu1 %8388  ;;  %v1009_v51 = vadd.f32 %v1008_v57, %v994_v21  ;;  %v970_v8 = vadd.f32 %v969_v33, %v10172_v20  ;;  %v10234_v59 = vld [vmem:[%s11409_s5 + $0x28] sm:$0xff] }
 0x244   : > { %v705_v2 = vrot.slane %v704_v15, 2 }
 0x245   : > { %v5333_v27 = vsel %vm5328_vm14, %v8385_v28, %v8375_v46  ;;  %v5335_v25 = vsel %vm5328_vm14, %v8386_v60, %v8380_v52  ;;  %v1010_v37 = vadd.f32 %v1009_v51, %v995_v50  ;;  %v8390_v60 = vunpack.i.l.bf16 %v8389_v0 }
 0x246   : > { %v7701_v54 = vpack.c.bf16 %v5335_v25, %v5333_v27  ;;  %v706_v56 = vadd.f32 %v705_v2, %v704_v15 }
 0x247   : > { %v851_v31 = vpop.permute.xlu1 %850 }
 0x248   : > { %v10180_v38 = vadd.f32 %v953_v47, %v851_v31  ;;  %v10182_v5 = vadd.f32 %v955_v22, %v851_v31  ;;  %7702 = vmatpush1.bf16.msk.msra.mxu1 %vm9970_vm8, %v7701_v54  ;;  %v707_v46 = vrot.slane %v706_v56, 1  ;;  %v8391_v47 = vunpack.i.h.bf16 %v8389_v0 }
 0x24a   : > { %11537 = vst [vmem:[#allocation25_spill] sm:$0xff] %v10182_v5  ;;  %v708_v52 = vadd.f32 %v707_v46, %v706_v56  ;;  %v971_v32 = vadd.f32 %v970_v8, %v10180_v38  ;;  %v996_v58 = vmul.f32 %v10180_v38, %v10180_v38  ;;  %v997_v63 = vmul.f32 %v10182_v5, %v10182_v5 }
 0x24b   : > { %v8399_v21 = vpop.permute.xlu1 %8398  ;;  %v5330_v54 = vsel %vm5328_vm14, %v8390_v60, %v8391_v47  ;;  %v2549_v47 = vpop.f32.mrf.mxu1 }
 0x24c   : > { %7741 = vpush %v708_v52  ;;  %v972_v34 = vadd.f32 %v971_v32, %v10182_v5  ;;  %v1011_v49 = vadd.f32 %v1010_v37, %v996_v58  ;;  %v8401_v28 = vunpack.i.h.bf16 %v8399_v21  ;;  %v8400_v57 = vunpack.i.l.bf16 %v8399_v21  ;;  %v8457_v52 = vld [vmem:[%s11408_s4 + $0xc0] ss:$12 sps:$4 sm:$0xff]   ;;  %v8459_v32 = vld [vmem:[%s11408_s4 + $0xc4] ss:$12 sps:$4 sm:$0xff]   ;;  %v8460_v58 = vld [vmem:[%s11408_s4 + $0xc8] ss:$12 sps:$4 sm:$0xff]   ;;  %v2476_v21 = vpop.f32.mrf.mxu0 }
 0x24d   : > { %5766 = vmatprep.mubr.bf16.mxu0 %v8459_v32 }
 0x24e   : > { %973 = vadd.xlane.f32.xlu1 %v972_v34  ;;  %v1012_v3 = vadd.f32 %v1011_v49, %v997_v63  ;;  %v5329_v56 = vsel %vm5328_vm14, %v8400_v57, %v8390_v60  ;;  %5767 = vmatmul.mubr.bf16.vlgmr.msra.gmra.mxu0 %v8457_v52  ;;  %v8464_v34 = vld [vmem:[%s11408_s4 + $0xe0] ss:$12 sps:$4 sm:$0xff]   ;;  %v8467_v49 = vld [vmem:[%s11408_s4 + $0xf0] ss:$12 sps:$4 sm:$0xff]   ;;  %v11431_v57 = vmov 3  }
 0x24f   : > { %5776 = vmatprep.mubr.bf16.mxu0 %v8461_v26  ;;  %v8465_v63 = vld [vmem:[%s11408_s4 + $0xf4] ss:$12 sps:$4 sm:$0xff]   ;;  %v8469_v60 = vld [vmem:[%s11408_s4 + $0x10c] ss:$12 sps:$4 sm:$0xff]  }
 0x250   : > { %1013 = vadd.xlane.f32.xlu0 %v1012_v3  ;;  %v8468_v3 = vld [vmem:[%s11408_s4 + $0xf8] ss:$12 sps:$4 sm:$0xff]  }
 0x256   : > { %5777 = vmatmul.mubr.bf16.gmra.mxu0 %v8463_v7 }
 0x257   : > { %5786 = vmatprep.mubr.bf16.mxu0 %v8465_v63 }
 0x25e   : > { %5787 = vmatmul.mubr.bf16.gmra.mxu0 %v8467_v49 }
 0x25f   : > { %3798 = vperm.xlu1 %8404, %v10195_v17   ;;  %5796 = vmatprep.mubr.bf16.mxu0 %v8469_v60 }
 0x263   : > { %3803 = vperm.xlu1 %8404, %v10201_v61  }
 0x266   : > { %2182 = vperm.xlu0 %8403, %v9858_v13   ;;  %v10226_v13 = vld [vmem:[%s11409_s5 + $0x30] sm:$0xff] }
 0x267   : > { %3813 = vperm.xlu1 %8404, %v10207_v30  }
 0x26a   : > { %2187 = vperm.xlu0 %8403, %v9891_v29  }
 0x26b   : > { %3818 = vperm.xlu1 %8404, %v10214_v19  }
 0x26e   : > { %8405 = vset.pattern.permute.xlu0 %v11429_v48 }
 0x26f   : > { %v734_v15 = vpop.xlane.xlu0 %733  ;;  %3808 = vperm.xlu0 %8405, %v10221_v35   ;;  %3828 = vperm.xlu1 %8404, %v10226_v13  }
 0x270   : > { %v735_v29 = vrot.slane %v734_v15, 4 }
 0x272   : > { %v736_v33 = vadd.f32 %v735_v29, %v734_v15  ;;  %v2153_v15 = vpop.permute.xlu1 %2152  ;;  %v2478_v29 = vpop.f32.mrf.mxu0 }
 0x273   : > { %v8394_v2 = vpop.permute.xlu0 %8393  ;;  %3823 = vperm.xlu0 %8405, %v10234_v59   ;;  %8406 = vset.pattern.permute.xlu1 %v11431_v57 }
 0x274   : > { %v8396_v27 = vunpack.i.h.bf16 %v8394_v2  ;;  %v8395_v25 = vunpack.i.l.bf16 %v8394_v2  ;;  %v737_v51 = vrot.slane %v736_v33, 2  ;;  %v2477_v2 = vadd.f32 %v2476_v21, %v2153_v15 }
 0x276   : > { %v5331_v50 = vsel %vm5328_vm14, %v8401_v28, %v8395_v25  ;;  %v5332_v22 = vsel %vm5328_vm14, %v8395_v25, %v8396_v27  ;;  %v738_v31 = vadd.f32 %v737_v51, %v736_v33  ;;  %v8471_v28 = vld [vmem:[%s11408_s4 + $0x108] ss:$12 sps:$4 sm:$0xff]   ;;  %v8472_v33 = vld [vmem:[%s11408_s4 + $0x110] ss:$12 sps:$4 sm:$0xff]   ;;  %v2479_v27 = vadd.f32 %v2478_v29, %v2153_v15  ;;  %v2480_v25 = vpop.f32.mrf.mxu0  ;;  %v2158_v51 = vpop.permute.xlu1 %2157 }
 0x277   : > { %v7707_v8 = vpack.c.bf16 %v5331_v50, %v5329_v56  ;;  %v7704_v0 = vpack.c.bf16 %v5332_v22, %v5330_v54  ;;  %v2551_v54 = vpop.f32.mrf.mxu1  ;;  %5797 = vmatmul.mubr.bf16.gmra.mxu0 %v8471_v28  ;;  %v10295_v56 = vadd.f32 %v2549_v47, %v2477_v2  ;;  %v2481_v50 = vadd.f32 %v2480_v25, %v2158_v51 }
 0x278   : > { %v739_v46 = vrot.slane %v738_v31, 1  ;;  %v10297_v22 = vadd.f32 %v2551_v54, %v2479_v27 }
 0x279   : > { %7705 = vmatprep.subr.msk.bf16.mxu1 %vm9952_vm5, %v7704_v0  ;;  %11538 = vst [vmem:[#allocation26_spill] sm:$0xff] %v10295_v56  ;;  %v2553_v0 = vpop.f32.mrf.mxu1 }
 0x27a   : > { %7708 = vmatpush1.bf16.msk.msra.mxu1 %vm9970_vm8, %v7707_v8  ;;  %v740_v37 = vadd.f32 %v739_v46, %v738_v31  ;;  %11539 = vst [vmem:[#allocation27_spill] sm:$0xff] %v10297_v22  ;;  %v2482_v31 = vpop.f32.mrf.mxu0  ;;  %v2628_v46 = vmul.f32 %v10295_v56, %v10295_v56  ;;  %v10303_v32 = vadd.f32 %v2553_v0, %v2481_v50  ;;  %v2163_v26 = vpop.permute.xlu1 %2162 }
 0x27b   : > { %v2483_v52 = vadd.f32 %v2482_v31, %v2158_v51  ;;  %v2555_v7 = vpop.f32.mrf.mxu1  ;;  %v2168_v25 = vpop.permute.xlu0 %2167 }
 0x27c   : > { %7743 = vpush %v740_v37  ;;  %v2629_v37 = vmul.f32 %v10297_v22, %v10297_v22  ;;  %v2630_v49 = vmul.f32 %v10303_v32, %v10303_v32 }
 0x27d   : > { %7194 = vmatmul.mubr.msk.bf16.vlgmr.msra.gmra.mxu1 %vm498_vm0, %v8460_v58  ;;  %s7742_s20 = spop %7741  ;;  %v2486_v58 = vpop.f32.mrf.mxu0  ;;  %v10309_v21 = vadd.f32 %v2555_v7, %v2483_v52  ;;  %v2559_v29 = vpop.f32.mrf.mxu1 }
 0x27e   : > { %5849 = vmatprep.mubr.bf16.mxu1 %v11425_v1  ;;  %s10278_s30 = smul.f32 0.015625, %s7742_s20  ;;  %v2644_v63 = vadd.f32 %v2629_v37, %v2628_v46 }
 0x27f   : > { %v2488_v15 = vpop.f32.mrf.mxu0  ;;  %v2631_v28 = vmul.f32 %v10309_v21, %v10309_v21  ;;  %v2561_v51 = vpop.f32.mrf.mxu1 }
 0x280   : > { %s748_s16 = smul.f32 %s10278_s30, %s10278_s30  ;;  %v2645_v60 = vadd.f32 %v2644_v63, %v2630_v49 }
 0x281   : > { %v2490_v27 = vpop.f32.mrf.mxu0  ;;  %v2563_v52 = vpop.f32.mrf.mxu1 }
 0x282   : > { %v2646_v31 = vadd.f32 %v2645_v60, %v2631_v28  ;;  %v2491_v0 = vadd.f32 %v2490_v27, %v2168_v25 }
 0x283   : > { %v2492_v37 = vpop.f32.mrf.mxu0 }
 0x284   : > { %v10324_v63 = vadd.f32 %v2563_v52, %v2491_v0 }
 0x285   : > { %7195 = vmatmul.mubr.msk.bf16.gmra.mxu1 %vm498_vm0, %v8464_v34  ;;  %v2604_v34 = vadd.f32 %v10297_v22, %v10295_v56  ;;  %v2496_v49 = vpop.f32.mrf.mxu0  ;;  %v11548_v22 = vmov 3  }
 0x286   : > { %5859 = vmatprep.mubr.bf16.mxu1 %v11425_v1  ;;  %v2634_v60 = vmul.f32 %v10324_v63, %v10324_v63 }
 0x287   : > { %v2605_v47 = vadd.f32 %v2604_v34, %v10303_v32  ;;  %v2493_v34 = vadd.f32 %v2492_v37, %v2168_v25  ;;  %v2498_v27 = vpop.f32.mrf.mxu0 }
 0x289   : > { %v2606_v50 = vadd.f32 %v2605_v47, %v10309_v21  ;;  %v2500_v0 = vpop.f32.mrf.mxu0 }
 0x28d   : > { %7196 = vmatmul.mubr.msk.bf16.gmra.mxu1 %vm498_vm0, %v8468_v3  ;;  %v2487_v3 = vadd.f32 %v2486_v58, %v2163_v26 }
 0x28e   : > { %5869 = vmatprep.mubr.bf16.mxu1 %v11425_v1 }
 0x28f   : > { %v10314_v2 = vadd.f32 %v2559_v29, %v2487_v3  ;;  %v2173_v3 = vpop.permute.xlu1 %2172 }
 0x290   : > { %v2497_v28 = vadd.f32 %v2496_v49, %v2173_v3 }
 0x291   : > { %11540 = vst [vmem:[#allocation28_spill] sm:$0xff] %v10314_v2  ;;  %v2607_v58 = vadd.f32 %v2606_v50, %v10314_v2 }
 0x293   : > { %v2178_v37 = vpop.permute.xlu1 %2177 }
 0x295   : > { %7197 = vmatmul.mubr.msk.bf16.gmra.mxu1 %vm498_vm0, %v8472_v33  ;;  %v2489_v33 = vadd.f32 %v2488_v15, %v2163_v26  ;;  %v2565_v15 = vpop.f32.mrf.mxu1  ;;  %vm6265_vm0 = vcmask 523264  }
 0x296   : > { %6304 = vmatprep.mubr.bf16.mxu1 %v11425_v1 }
 0x297   : > { %v10319_v46 = vadd.f32 %v2561_v51, %v2489_v33  ;;  %v10329_v33 = vadd.f32 %v2565_v15, %v2493_v34  ;;  %v2569_v51 = vpop.f32.mrf.mxu1  ;;  %v2501_v34 = vadd.f32 %v2500_v0, %v2178_v37  ;;  %v2502_v15 = vpop.f32.mrf.mxu0 }
 0x299   : > { %11541 = vst [vmem:[#allocation29_spill] sm:$0xff] %v10319_v46  ;;  %v2633_v7 = vmul.f32 %v10319_v46, %v10319_v46  ;;  %v2608_v29 = vadd.f32 %v2607_v58, %v10319_v46  ;;  %v2635_v25 = vmul.f32 %v10329_v33, %v10329_v33  ;;  %v2571_v52 = vpop.f32.mrf.mxu1  ;;  %v2506_v0 = vpop.f32.mrf.mxu0 }
 0x2ad   : > { %s7744_s24 = spop %7743 }
 0x2ae   : > { %s747_s15 = smul.f32 0.015625, %s7744_s24  ;;  %s8638_s24 = smov 0.0  }
 0x2b0   : > { %s749_s1 = ssub.f32 %s747_s15, %s748_s16 }
 0x2b2   : > { %s750_s23 = smax.f32 %s8638_s24, %s749_s1 }
 0x2b3   : > { %s760_s16 = sadd.f32 1e-05, %s750_s23 }
 0x2b5   : > { %v761_v8 = vstv %s760_s16 }
 0x2b6   : > { %8481 = vrsqrt.f32 %v761_v8  ;;  %v2632_v8 = vmul.f32 %v10314_v2, %v10314_v2 }
 0x2b8   : > { %v2647_v26 = vadd.f32 %v2646_v31, %v2632_v8  ;;  %v2499_v31 = vadd.f32 %v2498_v27, %v2173_v3  ;;  %v10334_v8 = vadd.f32 %v2569_v51, %v2497_v28  ;;  %v2503_v51 = vadd.f32 %v2502_v15, %v2178_v37 }
 0x2ba   : > { %v2648_v47 = vadd.f32 %v2647_v26, %v2633_v7  ;;  %11542 = vst [vmem:[#allocation30_spill] sm:$0xff] %v10334_v8  ;;  %v2636_v7 = vmul.f32 %v10334_v8, %v10334_v8  ;;  %v10339_v49 = vadd.f32 %v2571_v52, %v2499_v31 }
 0x2bc   : > { %v2649_v50 = vadd.f32 %v2648_v47, %v2634_v60  ;;  %11543 = vst [vmem:[#allocation31_spill] sm:$0xff] %v10339_v49  ;;  %v2637_v27 = vmul.f32 %v10339_v49, %v10339_v49 }
 0x2be   : > { %v2650_v26 = vadd.f32 %v2649_v50, %v2635_v25 }
 0x2c0   : > { %v2651_v28 = vadd.f32 %v2650_v26, %v2636_v7  ;;  %v2508_v7 = vpop.f32.mrf.mxu0 }
 0x2c2   : > { %v2652_v55 = vadd.f32 %v2651_v28, %v2637_v27 }
 0x2c3   : > { %v8482_v54 = vpop.eup %8481 }
 0x2c4   : > { %7745 = vpush %v8482_v54  ;;  %v2609_v54 = vadd.f32 %v2608_v29, %v10324_v63  ;;  %v2573_v29 = vpop.f32.mrf.mxu1 }
 0x2c5   : > { %v10344_v1 = vadd.f32 %v2573_v29, %v2501_v34 }
 0x2c6   : > { %v2610_v58 = vadd.f32 %v2609_v54, %v10329_v33  ;;  %v2575_v50 = vpop.f32.mrf.mxu1 }
 0x2c7   : > { %v10349_v26 = vadd.f32 %v2575_v50, %v2503_v51 }
 0x2c8   : > { %v2611_v60 = vadd.f32 %v2610_v58, %v10334_v8  ;;  %v2579_v48 = vpop.f32.mrf.mxu1  ;;  %v2638_v58 = vmul.f32 %v10344_v1, %v10344_v1 }
 0x2ca   : > { %v2612_v31 = vadd.f32 %v2611_v60, %v10339_v49  ;;  %v2581_v29 = vpop.f32.mrf.mxu1  ;;  %v2653_v53 = vadd.f32 %v2652_v55, %v2638_v58 }
 0x2cc   : > { %v2613_v15 = vadd.f32 %v2612_v31, %v10344_v1  ;;  %v2583_v50 = vpop.f32.mrf.mxu1 }
 0x2ce   : > { %v2614_v51 = vadd.f32 %v2613_v15, %v10349_v26  ;;  %v2585_v15 = vpop.f32.mrf.mxu1 }
 0x2d7   : > { %v974_v47 = vpop.xlane.xlu1 %973 }
 0x2d8   : > { %v975_v3 = vrot.slane %v974_v47, 4 }
 0x2d9   : > { %v1014_v54 = vpop.xlane.xlu0 %1013 }
 0x2da   : > { %v976_v25 = vadd.f32 %v975_v3, %v974_v47  ;;  %v1015_v43 = vrot.slane %v1014_v54, 4 }
 0x2db   : > { %v3799_v56 = vpop.permute.xlu1 %3798 }
 0x2dc   : > { %v1016_v52 = vadd.f32 %v1015_v43, %v1014_v54  ;;  %v977_v57 = vrot.slane %v976_v25, 2  ;;  %v2639_v43 = vmul.f32 %v10349_v26, %v10349_v26  ;;  %v2510_v54 = vpop.f32.mrf.mxu0 }
 0x2de   : > { %v978_v37 = vadd.f32 %v977_v57, %v976_v25  ;;  %v1017_v34 = vrot.slane %v1016_v52, 2  ;;  %v2654_v55 = vadd.f32 %v2653_v53, %v2639_v43  ;;  %v2512_v58 = vpop.f32.mrf.mxu0 }
 0x2df   : > { %v3804_v49 = vpop.permute.xlu1 %3803 }
 0x2e0   : > { %v979_v47 = vrot.slane %v978_v37, 1  ;;  %v1018_v3 = vadd.f32 %v1017_v34, %v1016_v52 }
 0x2e1   : > { %v2183_v60 = vpop.permute.xlu0 %2182 }
 0x2e2   : > { %v2507_v28 = vadd.f32 %v2506_v0, %v2183_v60  ;;  %v2509_v27 = vadd.f32 %v2508_v7, %v2183_v60  ;;  %v980_v40 = vadd.f32 %v979_v47, %v978_v37  ;;  %v1019_v4 = vrot.slane %v1018_v3, 1 }
 0x2e3   : > { %v3814_v5 = vpop.permute.xlu1 %3813 }
 0x2e4   : > { %v10355_v57 = vadd.f32 %v2579_v48, %v2507_v28  ;;  %v10357_v25 = vadd.f32 %v2581_v29, %v2509_v27  ;;  %7747 = vpush %v980_v40  ;;  %v1020_v31 = vadd.f32 %v1019_v4, %v1018_v3 }
 0x2e5   : > { %v2188_v52 = vpop.permute.xlu0 %2187 }
 0x2e6   : > { %11544 = vst [vmem:[#allocation32_spill] sm:$0xff] %v10355_v57  ;;  %11545 = vst [vmem:[#allocation33_spill] sm:$0xff] %v10357_v25  ;;  %v2615_v34 = vadd.f32 %v2614_v51, %v10355_v57  ;;  %v2640_v0 = vmul.f32 %v10355_v57, %v10355_v57  ;;  %v2511_v7 = vadd.f32 %v2510_v54, %v2188_v52  ;;  %v751_v51 = vstv %s10278_s30 }
 0x2e7   : > { %7749 = vpush %v1020_v31  ;;  %v2513_v37 = vadd.f32 %v2512_v58, %v2188_v52  ;;  %v2641_v48 = vmul.f32 %v10357_v25, %v10357_v25  ;;  %v756_v31 = vsub.f32 %v9764_v42, %v751_v51  ;;  %v754_v52 = vsub.f32 %v9757_v36, %v751_v51  ;;  %v10382_v58 = vld [vmem:[%s11410_s6 + $0x38] sm:$0xff]  ;;  %v10395_v36 = vld [vmem:[%s11410_s6 + $0x10] sm:$0xff] }
 0x2e8   : > { %v10364_v29 = vadd.f32 %v2583_v50, %v2511_v7  ;;  %v2616_v4 = vadd.f32 %v2615_v34, %v10357_v25  ;;  %v2655_v40 = vadd.f32 %v2654_v55, %v2640_v0  ;;  %v759_v50 = vsub.f32 %v9805_v14, %v751_v51  ;;  %v10390_v14 = vld [vmem:[%s11410_s6 + $0x18] sm:$0xff] }
 0x2e9   : > { %v10367_v53 = vadd.f32 %v2585_v15, %v2513_v37  ;;  %v755_v34 = vsub.f32 %v9766_v45, %v751_v51  ;;  %v752_v0 = vsub.f32 %v9746_v10, %v751_v51  ;;  %v758_v7 = vsub.f32 %v9779_v18, %v751_v51  ;;  %v10400_v45 = vld [vmem:[%s11410_s6 + $0x30] sm:$0xff]  ;;  %v10405_v10 = vld [vmem:[%s11411_s7 + $0x38] sm:$0xff]  ;;  %v10410_v18 = vld [vmem:[%s11410_s6 + $0x20] sm:$0xff] }
 0x2ea   : > { %v2617_v47 = vadd.f32 %v2616_v4, %v10364_v29  ;;  %v2642_v3 = vmul.f32 %v10364_v29, %v10364_v29  ;;  %v2656_v43 = vadd.f32 %v2655_v40, %v2641_v48  ;;  %v10415_v4 = vld [vmem:[%s11410_s6] sm:$0xff] }
 0x2eb   : > { %v2643_v54 = vmul.f32 %v10367_v53, %v10367_v53 }
 0x2ec   : > { %v2618_v60 = vadd.f32 %v2617_v47, %v10367_v53  ;;  %v2657_v28 = vadd.f32 %v2656_v43, %v2642_v3  ;;  %v10420_v3 = vld [vmem:[%s11411_s7 + $0x18] sm:$0xff] }
 0x2ee   : > { %2619 = vadd.xlane.f32.xlu0 %v2618_v60  ;;  %v2658_v27 = vadd.f32 %v2657_v28, %v2643_v54  ;;  %v10426_v60 = vld [vmem:[%s11411_s7 + $0x10] sm:$0xff] }
 0x2ef   : > { %v10431_v54 = vld [vmem:[%s11411_s7 + $0x30] sm:$0xff] }
 0x2f0   : > { %2659 = vadd.xlane.f32.xlu1 %v2658_v27 }
 0x2f5   : > { %s7746_s1 = spop %7745 }
 0x2f6   : > { %v764_v55 = vstv %s7746_s1 }
 0x2f7   : > { %v772_v42 = vmul.f32 %v764_v55, %v759_v50  ;;  %v769_v37 = vmul.f32 %v764_v55, %v756_v31  ;;  %v767_v48 = vmul.f32 %v764_v55, %v754_v52  ;;  %v768_v15 = vmul.f32 %v764_v55, %v755_v34 }
 0x2f8   : > { %v765_v40 = vmul.f32 %v764_v55, %v752_v0  ;;  %v771_v47 = vmul.f32 %v764_v55, %v758_v7  ;;  %v10442_v0 = vld [vmem:[%s11411_s7 + $0x20] sm:$0xff] }
 0x2f9   : > { %v780_v43 = vmul.f32 %v10382_v58, %v772_v42  ;;  %v775_v28 = vmul.f32 %v767_v48, %v10395_v36  ;;  %v776_v27 = vmul.f32 %v10390_v14, %v768_v15  ;;  %v777_v52 = vmul.f32 %v769_v37, %v10410_v18  ;;  %v10449_v48 = vld [vmem:[%s11411_s7] sm:$0xff] }
 0x2fa   : > { %v779_v50 = vmul.f32 %v10400_v45, %v771_v47  ;;  %v773_v34 = vmul.f32 %v765_v40, %v10415_v4  ;;  %v757_v37 = vsub.f32 %v9783_v11, %v751_v51  ;;  %v753_v40 = vsub.f32 %v9744_v39, %v751_v51  ;;  %v10469_v39 = vld [vmem:[%s11411_s7 + $0x28] sm:$0xff] }
 0x2fb   : > { %v788_v31 = vadd.f32 %v10405_v10, %v780_v43  ;;  %v783_v7 = vadd.f32 %v775_v28, %v10426_v60  ;;  %v784_v42 = vadd.f32 %v10420_v3, %v776_v27  ;;  %v10457_v43 = vld [vmem:[%s11410_s6 + $0x28] sm:$0xff] }
 0x2fc   : > { %v787_v15 = vadd.f32 %v779_v50, %v10431_v54  ;;  %v10462_v28 = vld [vmem:[%s11410_s6 + $0x8] sm:$0xff]  ;;  %v785_v50 = vadd.f32 %v777_v52, %v10442_v0  ;;  %v770_v11 = vmul.f32 %v764_v55, %v757_v37  ;;  %v766_v20 = vmul.f32 %v764_v55, %v753_v40  ;;  %v10483_v52 = vld [vmem:[%s11409_s5 + $0x38] sm:$0xff] }
 0x2fd   : > { %v796_v47 = vmax.f32 %v788_v31, 0.0  ;;  %v791_v27 = vmax.f32 %v783_v7, 0.0  ;;  %v792_v24 = vmax.f32 %v784_v42, 0.0  ;;  %v781_v31 = vadd.f32 %v773_v34, %v10449_v48  ;;  %v10474_v51 = vld [vmem:[%s11411_s7 + $0x8] sm:$0xff] }
 0x2fe   : > { %v795_v44 = vmax.f32 %v787_v15, 0.0  ;;  %v778_v55 = vmul.f32 %v10457_v43, %v770_v11  ;;  %v774_v34 = vmul.f32 %v10462_v28, %v766_v20  ;;  %v793_v42 = vmax.f32 %v785_v50, 0.0 }
 0x2ff   : > { %v10476_v62 = vpack.c.bf16 %v792_v24, %v791_v27  ;;  %v789_v15 = vmax.f32 %v781_v31, 0.0 }
 0x300   : > { %v10478_v7 = vpack.c.bf16 %v796_v47, %v795_v44  ;;  %v786_v37 = vadd.f32 %v10469_v39, %v778_v55  ;;  %v782_v24 = vadd.f32 %v10474_v51, %v774_v34  ;;  %v4122_v44 = vpop.f32.mrf.mxu1 }
 0x301   : > { %5444 = vperm.xlu1 %8406, %v10195_v17   ;;  %v4123_v46 = vadd.f32 %v4122_v44, %v3799_v56  ;;  %v3809_v44 = vpop.permute.xlu0 %3808 }
 0x302   : > { %v794_v47 = vmax.f32 %v786_v37, 0.0  ;;  %v790_v40 = vmax.f32 %v782_v24, 0.0  ;;  %v4124_v11 = vpop.f32.mrf.mxu1 }
 0x304   : > { %3833 = vperm.xlu0 %8405, %v10483_v52   ;;  %v10492_v27 = vpack.c.bf16 %v794_v47, %v793_v42  ;;  %v10494_v17 = vpack.c.bf16 %v790_v40, %v789_v15  ;;  %v4126_v20 = vpop.f32.mrf.mxu1 }
 0x305   : > { %5454 = vperm.xlu1 %8406, %v10221_v35   ;;  %v11549_v35 = vmov 2  }
 0x306   : > { %11546 = vst [vmem:[#allocation34_spill] sm:$0xff] %v10492_v27  ;;  %11547 = vst [vmem:[#allocation35_spill] sm:$0xff] %v10494_v17  ;;  %v4128_v50 = vpop.f32.mrf.mxu1 }
 0x307   : > { %v4129_v16 = vadd.f32 %v4128_v50, %v3804_v49 }
 0x308   : > { %8407 = vset.pattern.permute.xlu0 %v11548_v22  ;;  %v4132_v31 = vpop.f32.mrf.mxu1 }
 0x309   : > { %5449 = vperm.xlu0 %8407, %v10201_v61   ;;  %5459 = vperm.xlu1 %8406, %v10207_v30  }
 0x30a   : > { %v4134_v55 = vpop.f32.mrf.mxu1 }
 0x30c   : > { %v4136_v61 = vpop.f32.mrf.mxu1 }
 0x30d   : > { %5469 = vperm.xlu1 %8406, %v10234_v59   ;;  %5464 = vperm.xlu0 %8407, %v10214_v19  }
 0x30e   : > { %v4138_v19 = vpop.f32.mrf.mxu1 }
 0x310   : > { %v4142_v59 = vpop.f32.mrf.mxu1 }
 0x311   : > { %8408 = vset.pattern.permute.xlu1 %v11549_v35 }
 0x312   : > { %v4144_v34 = vpop.f32.mrf.mxu1 }
 0x314   : > { %v10507_v42 = vpop.f32.mrf.mxu1 }
 0x315   : > { %s7748_s22 = spop %7747 }
 0x316   : > { %s10502_s21 = smul.f32 6.1035156e-05, %s7748_s22  ;;  %v10509_v37 = vpop.f32.mrf.mxu1 }
 0x318   : > { %s7750_s20 = spop %7749  ;;  %s1028_s23 = smul.f32 %s10502_s21, %s10502_s21  ;;  %v10511_v24 = vpop.f32.mrf.mxu1 }
 0x319   : > { %s1027_s16 = smul.f32 6.1035156e-05, %s7750_s20 }
 0x31a   : > { %v10513_v47 = vpop.f32.mrf.mxu1 }
 0x31b   : > { %s1029_s1 = ssub.f32 %s1027_s16, %s1028_s23 }
 0x31c   : > { %v10515_v40 = vpop.f32.mrf.mxu1 }
 0x31d   : > { %s1030_s2 = smax.f32 %s8638_s24, %s1029_s1 }
 0x31e   : > { %s1048_s15 = sadd.f32 1e-05, %s1030_s2  ;;  %v10517_v17 = vpop.f32.mrf.mxu1 }
 0x320   : > { %v1049_v30 = vstv %s1048_s15  ;;  %v4195_v27 = vpop.f32.mrf.mxu1 }
 0x321   : > { %8483 = vrsqrt.f32 %v1049_v30  ;;  %v4125_v30 = vadd.f32 %v4124_v11, %v3799_v56  ;;  %v10519_v8 = vadd.f32 %v4195_v27, %v4123_v46  ;;  %v4133_v11 = vadd.f32 %v4132_v31, %v3809_v44 }
 0x322   : > { %v4197_v2 = vpop.f32.mrf.mxu1  ;;  %v4137_v31 = vadd.f32 %v4136_v61, %v3814_v5 }
 0x323   : > { %v10521_v25 = vadd.f32 %v4197_v2, %v4125_v30  ;;  %v4274_v41 = vmul.f32 %v10519_v8, %v10519_v8 }
 0x324   : > { %v4199_v57 = vpop.f32.mrf.mxu1 }
 0x325   : > { %11550 = vst [vmem:[#allocation36_spill] sm:$0xff] %v10521_v25  ;;  %v4275_v9 = vmul.f32 %v10521_v25, %v10521_v25  ;;  %v4250_v56 = vadd.f32 %v10521_v25, %v10519_v8 }
 0x326   : > { %v4201_v12 = vpop.f32.mrf.mxu1 }
 0x327   : > { %v4290_v46 = vadd.f32 %v4275_v9, %v4274_v41  ;;  %v10533_v27 = vadd.f32 %v4201_v12, %v4129_v16 }
 0x329   : > { %11552 = vst [vmem:[#allocation38_spill] sm:$0xff] %v10533_v27 }
 0x32e   : > { %v8484_v15 = vpop.eup %8483 }
 0x32f   : > { %7751 = vpush %v8484_v15  ;;  %v4127_v15 = vadd.f32 %v4126_v20, %v3804_v49  ;;  %v4205_v20 = vpop.f32.mrf.mxu1  ;;  %v4135_v49 = vadd.f32 %v4134_v55, %v3809_v44 }
 0x330   : > { %v10538_v50 = vadd.f32 %v4205_v20, %v4133_v11  ;;  %v3819_v20 = vpop.permute.xlu1 %3818 }
 0x331   : > { %v10527_v6 = vadd.f32 %v4199_v57, %v4127_v15  ;;  %v4277_v57 = vmul.f32 %v10533_v27, %v10533_v27  ;;  %v4207_v15 = vpop.f32.mrf.mxu1  ;;  %v4143_v61 = vadd.f32 %v4142_v59, %v3819_v20 }
 0x332   : > { %v4278_v16 = vmul.f32 %v10538_v50, %v10538_v50  ;;  %v10543_v12 = vadd.f32 %v4207_v15, %v4135_v49 }
 0x333   : > { %11551 = vst [vmem:[#allocation37_spill] sm:$0xff] %v10527_v6  ;;  %v4276_v2 = vmul.f32 %v10527_v6, %v10527_v6  ;;  %v4251_v30 = vadd.f32 %v4250_v56, %v10527_v6  ;;  %v4209_v25 = vpop.f32.mrf.mxu1 }
 0x334   : > { %v4279_v55 = vmul.f32 %v10543_v12, %v10543_v12  ;;  %v10548_v44 = vadd.f32 %v4209_v25, %v4137_v31  ;;  %v3824_v31 = vpop.permute.xlu0 %3823 }
 0x335   : > { %v4291_v23 = vadd.f32 %v4290_v46, %v4276_v2  ;;  %v4252_v9 = vadd.f32 %v4251_v30, %v10533_v27  ;;  %v4139_v2 = vadd.f32 %v4138_v19, %v3814_v5  ;;  %v4211_v11 = vpop.f32.mrf.mxu1  ;;  %v4145_v5 = vadd.f32 %v4144_v34, %v3819_v20 }
 0x336   : > { %v4147_v59 = vadd.f32 %v10507_v42, %v3824_v31  ;;  %v4149_v34 = vadd.f32 %v10509_v37, %v3824_v31 }
 0x337   : > { %v4292_v41 = vadd.f32 %v4291_v23, %v4277_v57  ;;  %v4253_v56 = vadd.f32 %v4252_v9, %v10538_v50  ;;  %v4280_v57 = vmul.f32 %v10548_v44, %v10548_v44  ;;  %v10553_v49 = vadd.f32 %v4211_v11, %v4139_v2  ;;  %v4215_v15 = vpop.f32.mrf.mxu1 }
 0x339   : > { %v4293_v46 = vadd.f32 %v4292_v41, %v4278_v16  ;;  %v4254_v23 = vadd.f32 %v4253_v56, %v10543_v12  ;;  %v4281_v25 = vmul.f32 %v10553_v49, %v10553_v49  ;;  %v10558_v16 = vadd.f32 %v4215_v15, %v4143_v61  ;;  %v4217_v19 = vpop.f32.mrf.mxu1  ;;  %v3829_v15 = vpop.permute.xlu1 %3828 }
 0x33a   : > { %v10563_v2 = vadd.f32 %v4217_v19, %v4145_v5  ;;  %v4153_v5 = vadd.f32 %v10511_v24, %v3829_v15 }
 0x33b   : > { %v4294_v30 = vadd.f32 %v4293_v46, %v4279_v55  ;;  %v4255_v9 = vadd.f32 %v4254_v23, %v10548_v44  ;;  %v4282_v55 = vmul.f32 %v10558_v16, %v10558_v16  ;;  %v4219_v11 = vpop.f32.mrf.mxu1 }
 0x33c   : > { %11553 = vst [vmem:[#allocation39_spill] sm:$0xff] %v10563_v2  ;;  %v10570_v20 = vadd.f32 %v4219_v11, %v4147_v59 }
 0x33d   : > { %v4295_v41 = vadd.f32 %v4294_v30, %v4280_v57  ;;  %v4256_v56 = vadd.f32 %v4255_v9, %v10553_v49  ;;  %v4283_v57 = vmul.f32 %v10563_v2, %v10563_v2  ;;  %v4221_v61 = vpop.f32.mrf.mxu1 }
 0x33e   : > { %v10575_v42 = vadd.f32 %v4221_v61, %v4149_v34 }
 0x33f   : > { %v4296_v46 = vadd.f32 %v4295_v41, %v4281_v25  ;;  %v4257_v23 = vadd.f32 %v4256_v56, %v10558_v16  ;;  %v4284_v25 = vmul.f32 %v10570_v20, %v10570_v20  ;;  %v4225_v19 = vpop.f32.mrf.mxu1 }
 0x340   : > { %v4285_v37 = vmul.f32 %v10575_v42, %v10575_v42  ;;  %v10581_v31 = vadd.f32 %v4225_v19, %v4153_v5 }
 0x341   : > { %v4297_v30 = vadd.f32 %v4296_v46, %v4282_v55  ;;  %v4258_v9 = vadd.f32 %v4257_v23, %v10563_v2  ;;  %v4155_v55 = vadd.f32 %v10513_v47, %v3829_v15  ;;  %v4227_v11 = vpop.f32.mrf.mxu1 }
 0x343   : > { %v4298_v41 = vadd.f32 %v4297_v30, %v4283_v57  ;;  %v4259_v56 = vadd.f32 %v4258_v9, %v10570_v20  ;;  %v4286_v9 = vmul.f32 %v10581_v31, %v10581_v31  ;;  %v4229_v19 = vpop.f32.mrf.mxu1 }
 0x345   : > { %v4299_v46 = vadd.f32 %v4298_v41, %v4284_v25  ;;  %v4260_v30 = vadd.f32 %v4259_v56, %v10575_v42  ;;  %v10587_v41 = vadd.f32 %v4227_v11, %v4155_v55  ;;  %v4231_v11 = vpop.f32.mrf.mxu1 }
 0x347   : > { %v4300_v24 = vadd.f32 %v4299_v46, %v4285_v37  ;;  %v4261_v5 = vadd.f32 %v4260_v30, %v10581_v31  ;;  %v4287_v56 = vmul.f32 %v10587_v41, %v10587_v41 }
 0x349   : > { %v4301_v27 = vadd.f32 %v4300_v24, %v4286_v9  ;;  %v4262_v55 = vadd.f32 %v4261_v5, %v10587_v41 }
 0x34b   : > { %v4302_v24 = vadd.f32 %v4301_v27, %v4287_v56  ;;  %v5768_v27 = vpop.f32.mrf.mxu0 }
 0x360   : > { %s10611_s30 = spop %7751 }
 0x377   : > { %v2620_v59 = vpop.xlane.xlu0 %2619 }
 0x378   : > { %v2621_v23 = vrot.slane %v2620_v59, 4 }
 0x379   : > { %v2660_v57 = vpop.xlane.xlu1 %2659 }
 0x37a   : > { %v2622_v34 = vadd.f32 %v2621_v23, %v2620_v59  ;;  %v2661_v61 = vrot.slane %v2660_v57, 4 }
 0x37c   : > { %v2623_v25 = vrot.slane %v2622_v34, 2  ;;  %v2662_v2 = vadd.f32 %v2661_v61, %v2660_v57 }
 0x37d   : > { %v5445_v56 = vpop.permute.xlu1 %5444 }
 0x37e   : > { %v2624_v47 = vadd.f32 %v2623_v25, %v2622_v34  ;;  %v2663_v15 = vrot.slane %v2662_v2, 2 }
 0x37f   : > { %v3834_v6 = vpop.permute.xlu0 %3833 }
 0x380   : > { %v4157_v59 = vadd.f32 %v10515_v40, %v3834_v6  ;;  %v4159_v46 = vadd.f32 %v10517_v17, %v3834_v6  ;;  %v2625_v37 = vrot.slane %v2624_v47, 1  ;;  %v2664_v23 = vadd.f32 %v2663_v15, %v2662_v2  ;;  %v5841_v15 = vpop.f32.mrf.mxu1 }
 0x382   : > { %v10595_v57 = vadd.f32 %v4229_v19, %v4157_v59  ;;  %v10597_v30 = vadd.f32 %v4231_v11, %v4159_v46  ;;  %v2626_v34 = vadd.f32 %v2625_v37, %v2624_v47  ;;  %v2665_v61 = vrot.slane %v2664_v23, 1  ;;  %v5770_v47 = vpop.f32.mrf.mxu0 }
 0x383   : > { %v11463_v19 = vmov 4   ;;  %v5769_v59 = vadd.f32 %v5768_v27, %v5445_v56  ;;  %v5771_v37 = vadd.f32 %v5770_v47, %v5445_v56 }
 0x384   : > { %7753 = vpush %v2626_v34  ;;  %v2666_v9 = vadd.f32 %v2665_v61, %v2664_v23  ;;  %v4263_v25 = vadd.f32 %v4262_v55, %v10595_v57  ;;  %v4288_v40 = vmul.f32 %v10595_v57, %v10595_v57  ;;  %v4289_v17 = vmul.f32 %v10597_v30, %v10597_v30  ;;  %v5772_v46 = vpop.f32.mrf.mxu0  ;;  %v5843_v23 = vpop.f32.mrf.mxu1 }
 0x385   : > { %v5450_v55 = vpop.permute.xlu0 %5449  ;;  %v10634_v11 = vadd.f32 %v5841_v15, %v5769_v59  ;;  %v10636_v34 = vadd.f32 %v5843_v23, %v5771_v37 }
 0x386   : > { %7755 = vpush %v2666_v9  ;;  %v4264_v6 = vadd.f32 %v4263_v25, %v10597_v30  ;;  %v4303_v2 = vadd.f32 %v4302_v24, %v4288_v40  ;;  %v5773_v61 = vadd.f32 %v5772_v46, %v5450_v55  ;;  %v5774_v24 = vpop.f32.mrf.mxu0  ;;  %v5845_v9 = vpop.f32.mrf.mxu1 }
 0x387   : > { %11555 = vst [vmem:[#allocation40_spill] sm:$0xff] %v10634_v11  ;;  %11556 = vst [vmem:[#allocation41_spill] sm:$0xff] %v10636_v34  ;;  %v5920_v25 = vmul.f32 %v10634_v11, %v10634_v11  ;;  %v5921_v40 = vmul.f32 %v10636_v34, %v10636_v34 }
 0x388   : > { %4265 = vadd.xlane.f32.xlu1 %v4264_v6  ;;  %v4304_v5 = vadd.f32 %v4303_v2, %v4289_v17  ;;  %v5775_v6 = vadd.f32 %v5774_v24, %v5450_v55  ;;  %v10643_v17 = vadd.f32 %v5845_v9, %v5773_v61  ;;  %v5778_v2 = vpop.f32.mrf.mxu0 }
 0x389   : > { %v5936_v27 = vadd.f32 %v5921_v40, %v5920_v25 }
 0x38a   : > { %4305 = vadd.xlane.f32.xlu0 %v4304_v5  ;;  %11557 = vst [vmem:[#allocation42_spill] sm:$0xff] %v10643_v17  ;;  %v5847_v5 = vpop.f32.mrf.mxu1  ;;  %v5922_v47 = vmul.f32 %v10643_v17, %v10643_v17  ;;  %v5780_v56 = vpop.f32.mrf.mxu0 }
 0x38b   : > { %v10650_v15 = vadd.f32 %v5847_v5, %v5775_v6 }
 0x38c   : > { %v5851_v46 = vpop.f32.mrf.mxu1  ;;  %v5937_v23 = vadd.f32 %v5936_v27, %v5922_v47  ;;  %v5782_v9 = vpop.f32.mrf.mxu0 }
 0x38d   : > { %11558 = vst [vmem:[#allocation43_spill] sm:$0xff] %v10650_v15  ;;  %v5923_v55 = vmul.f32 %v10650_v15, %v10650_v15 }
 0x38e   : > { %v5853_v25 = vpop.f32.mrf.mxu1  ;;  %v5784_v27 = vpop.f32.mrf.mxu0 }
 0x3a0   : > { %5474 = vperm.xlu0 %8407, %v10226_v13  }
 0x3a4   : > { %5479 = vperm.xlu0 %8407, %v10483_v52   ;;  %v11554_v52 = vmov 1  }
 0x3a8   : > { %8409 = vset.pattern.permute.xlu0 %v11549_v35 }
 0x3a9   : > { %2752 = vperm.xlu0 %8409, %v10382_v58  }
 0x3ad   : > { %2808 = vperm.xlu0 %8409, %v10405_v10  }
 0x3b1   : > { %2742 = vperm.xlu0 %8409, %v10457_v43  }
 0x3b5   : > { %s7754_s0 = spop %7753  ;;  %2798 = vperm.xlu0 %8409, %v10469_v39  }
 0x3b6   : > { %s10614_s22 = smul.f32 6.1035156e-05, %s7754_s0 }
 0x3b7   : > { %s7756_s20 = spop %7755 }
 0x3b8   : > { %s2674_s23 = smul.f32 %s10614_s22, %s10614_s22 }
 0x3b9   : > { %s2673_s16 = smul.f32 6.1035156e-05, %s7756_s20  ;;  %2732 = vperm.xlu0 %8409, %v10390_v14  }
 0x3bb   : > { %s2675_s1 = ssub.f32 %s2673_s16, %s2674_s23 }
 0x3bd   : > { %s2676_s2 = smax.f32 %s8638_s24, %s2675_s1  ;;  %2788 = vperm.xlu0 %8409, %v10420_v3  }
 0x3be   : > { %s2694_s15 = sadd.f32 1e-05, %s2676_s2 }
 0x3c0   : > { %v2695_v13 = vstv %s2694_s15 }
 0x3c1   : > { %8485 = vrsqrt.f32 %v2695_v13  ;;  %2722 = vperm.xlu0 %8409, %v10462_v28   ;;  %v5455_v13 = vpop.permute.xlu1 %5454 }
 0x3c2   : > { %v5779_v59 = vadd.f32 %v5778_v2, %v5455_v13  ;;  %v5781_v61 = vadd.f32 %v5780_v56, %v5455_v13  ;;  %v5938_v2 = vadd.f32 %v5937_v23, %v5923_v55  ;;  %v5855_v13 = vpop.f32.mrf.mxu1  ;;  %v5465_v55 = vpop.permute.xlu0 %5464 }
 0x3c4   : > { %v10656_v24 = vadd.f32 %v5851_v46, %v5779_v59  ;;  %v10662_v5 = vadd.f32 %v5853_v25, %v5781_v61  ;;  %v5857_v23 = vpop.f32.mrf.mxu1 }
 0x3c5   : > { %2778 = vperm.xlu0 %8409, %v10474_v51   ;;  %v5460_v40 = vpop.permute.xlu1 %5459 }
 0x3c6   : > { %11559 = vst [vmem:[#allocation44_spill] sm:$0xff] %v10656_v24  ;;  %11560 = vst [vmem:[#allocation45_spill] sm:$0xff] %v10662_v5  ;;  %v5925_v59 = vmul.f32 %v10662_v5, %v10662_v5  ;;  %v5785_v46 = vadd.f32 %v5784_v27, %v5460_v40 }
 0x3c9   : > { %8411 = vset.pattern.permute.xlu0 %v11554_v52 }
 0x3ca   : > { %1106 = vperm.xlu0 %8411, %v10382_v58  }
 0x3ce   : > { %v8486_v35 = vpop.eup %8485  ;;  %1091 = vperm.xlu0 %8411, %v10410_v18  }
 0x3cf   : > { %7757 = vpush %v8486_v35  ;;  %v5896_v35 = vadd.f32 %v10636_v34, %v10634_v11 }
 0x3d1   : > { %v5897_v37 = vadd.f32 %v5896_v35, %v10643_v17  ;;  %v5783_v35 = vadd.f32 %v5782_v9, %v5460_v40  ;;  %v10674_v17 = vadd.f32 %v5857_v23, %v5785_v46  ;;  %v5861_v40 = vpop.f32.mrf.mxu1  ;;  %v5470_v46 = vpop.permute.xlu1 %5469 }
 0x3d2   : > { %1147 = vperm.xlu0 %8411, %v10442_v0  }
 0x3d3   : > { %v5898_v6 = vadd.f32 %v5897_v37, %v10650_v15  ;;  %v5788_v37 = vpop.f32.mrf.mxu0  ;;  %11562 = vst [vmem:[#allocation47_spill] sm:$0xff] %v10674_v17  ;;  %v5863_v11 = vpop.f32.mrf.mxu1 }
 0x3d5   : > { %v5899_v47 = vadd.f32 %v5898_v6, %v10656_v24  ;;  %v5789_v6 = vadd.f32 %v5788_v37, %v5465_v55 }
 0x3d6   : > { %1081 = vperm.xlu0 %8411, %v10395_v36  }
 0x3d7   : > { %v5900_v61 = vadd.f32 %v5899_v47, %v10662_v5 }
 0x3da   : > { %1137 = vperm.xlu0 %8411, %v10426_v60  }
 0x3de   : > { %1071 = vperm.xlu0 %8411, %v10415_v4  }
 0x3e2   : > { %1127 = vperm.xlu0 %8411, %v10449_v48  }
 0x3e6   : > { %8412 = vset.pattern.permute.xlu0 %v11463_v19  ;;  %v10668_v19 = vadd.f32 %v5855_v13, %v5783_v35  ;;  %v5927_v13 = vmul.f32 %v10674_v17, %v10674_v17 }
 0x3e7   : > { %6039 = vperm.xlu0 %8412, %v10400_v45  }
 0x3e8   : > { %11561 = vst [vmem:[#allocation46_spill] sm:$0xff] %v10668_v19  ;;  %v5926_v25 = vmul.f32 %v10668_v19, %v10668_v19  ;;  %v5901_v35 = vadd.f32 %v5900_v61, %v10668_v19 }
 0x3ea   : > { %v5902_v37 = vadd.f32 %v5901_v35, %v10674_v17 }
 0x3eb   : > { %6100 = vperm.xlu0 %8412, %v10405_v10  }
 0x3ef   : > { %6034 = vperm.xlu0 %8412, %v10457_v43  }
 0x3f3   : > { %6090 = vperm.xlu0 %8412, %v10469_v39  }
 0x3f7   : > { %6024 = vperm.xlu0 %8412, %v10390_v14   ;;  %v5924_v14 = vmul.f32 %v10656_v24, %v10656_v24 }
 0x3f9   : > { %v5939_v56 = vadd.f32 %v5938_v2, %v5924_v14  ;;  %v5790_v2 = vpop.f32.mrf.mxu0  ;;  %v11563_v14 = vmov 0  }
 0x3fa   : > { %v5791_v47 = vadd.f32 %v5790_v2, %v5465_v55  ;;  %v5865_v55 = vpop.f32.mrf.mxu1 }
 0x3fb   : > { %6080 = vperm.xlu0 %8412, %v10420_v3   ;;  %v5940_v9 = vadd.f32 %v5939_v56, %v5925_v59  ;;  %v10681_v56 = vadd.f32 %v5861_v40, %v5789_v6  ;;  %v5792_v59 = vpop.f32.mrf.mxu0 }
 0x3fc   : > { %v10688_v61 = vadd.f32 %v5863_v11, %v5791_v47  ;;  %v5867_v34 = vpop.f32.mrf.mxu1 }
 0x3fd   : > { %v5941_v27 = vadd.f32 %v5940_v9, %v5926_v25  ;;  %11564 = vst [vmem:[#allocation48_spill] sm:$0xff] %v10681_v56  ;;  %v5793_v9 = vadd.f32 %v5792_v59, %v5470_v46  ;;  %v5794_v25 = vpop.f32.mrf.mxu0  ;;  %v5903_v6 = vadd.f32 %v5902_v37, %v10681_v56 }
 0x3fe   : > { %11565 = vst [vmem:[#allocation49_spill] sm:$0xff] %v10688_v61  ;;  %v5929_v35 = vmul.f32 %v10688_v61, %v10688_v61 }
 0x3ff   : > { %6014 = vperm.xlu0 %8412, %v10462_v28   ;;  %v5942_v23 = vadd.f32 %v5941_v27, %v5927_v13  ;;  %v10694_v27 = vadd.f32 %v5865_v55, %v5793_v9  ;;  %v5798_v59 = vpop.f32.mrf.mxu0  ;;  %v5904_v19 = vadd.f32 %v5903_v6, %v10688_v61 }
 0x400   : > { %s7758_s0 = spop %7757 }
 0x401   : > { %11566 = vst [vmem:[#allocation50_spill] sm:$0xff] %v10694_v27 }
 0x403   : > { %6070 = vperm.xlu0 %8412, %v10474_v51  }
 0x407   : > { %8415 = vset.pattern.permute.xlu0 %v11563_v14 }
 0x408   : > { %6212 = vperm.xlu0 %8415, %v10478_v7   ;;  %v5928_v7 = vmul.f32 %v10681_v56, %v10681_v56 }
 0x40a   : > { %v5943_v15 = vadd.f32 %v5942_v23, %v5928_v7  ;;  %v5930_v23 = vmul.f32 %v10694_v27, %v10694_v27 }
 0x40c   : > { %8416 = vset.pattern.permute.xlu0 %v11548_v22  ;;  %v5944_v17 = vadd.f32 %v5943_v15, %v5929_v35 }
 0x40d   : > { %4398 = vperm.xlu0 %8416, %v10382_v58   ;;  %v5795_v58 = vadd.f32 %v5794_v25, %v5470_v46  ;;  %v5871_v46 = vpop.f32.mrf.mxu1  ;;  %v5800_v25 = vpop.f32.mrf.mxu0 }
 0x40e   : > { %v5945_v5 = vadd.f32 %v5944_v17, %v5930_v23 }
 0x40f   : > { %v10700_v7 = vadd.f32 %v5867_v34, %v5795_v58  ;;  %v5873_v35 = vpop.f32.mrf.mxu1 }
 0x411   : > { %4383 = vperm.xlu0 %8416, %v10410_v18   ;;  %v4266_v2 = vpop.xlane.xlu1 %4265  ;;  %v5931_v15 = vmul.f32 %v10700_v7, %v10700_v7 }
 0x412   : > { %v4267_v40 = vrot.slane %v4266_v2, 4 }
 0x413   : > { %v4306_v13 = vpop.xlane.xlu0 %4305  ;;  %v5946_v23 = vadd.f32 %v5945_v5, %v5931_v15 }
 0x414   : > { %v4268_v11 = vadd.f32 %v4267_v40, %v4266_v2  ;;  %v4307_v47 = vrot.slane %v4306_v13, 4  ;;  %v5905_v2 = vadd.f32 %v5904_v19, %v10694_v27  ;;  %v10709_v19 = vstv %s10614_s22 }
 0x415   : > { %4439 = vperm.xlu0 %8416, %v10442_v0   ;;  %v2693_v5 = vsub.f32 %v10367_v53, %v10709_v19 }
 0x416   : > { %v4269_v37 = vrot.slane %v4268_v11, 2  ;;  %v4308_v24 = vadd.f32 %v4307_v47, %v4306_v13  ;;  %v5802_v47 = vpop.f32.mrf.mxu0 }
 0x418   : > { %v4309_v9 = vrot.slane %v4308_v24, 2  ;;  %v4270_v55 = vadd.f32 %v4269_v37, %v4268_v11  ;;  %v5906_v11 = vadd.f32 %v5905_v2, %v10700_v7 }
 0x419   : > { %4373 = vperm.xlu0 %8416, %v10395_v36  }
 0x41a   : > { %v4271_v6 = vrot.slane %v4270_v55, 1  ;;  %v4310_v40 = vadd.f32 %v4309_v9, %v4308_v24  ;;  %v5875_v9 = vpop.f32.mrf.mxu1 }
 0x41b   : > { %v5475_v13 = vpop.permute.xlu0 %5474 }
 0x41c   : > { %v5799_v34 = vadd.f32 %v5798_v59, %v5475_v13  ;;  %v5801_v58 = vadd.f32 %v5800_v25, %v5475_v13  ;;  %v4272_v56 = vadd.f32 %v4271_v6, %v4270_v55  ;;  %v4311_v61 = vrot.slane %v4310_v40, 1  ;;  %v5804_v25 = vpop.f32.mrf.mxu0 }
 0x41d   : > { %4363 = vperm.xlu0 %8416, %v10415_v4   ;;  %v10715_v59 = vstv %s7758_s0 }
 0x41e   : > { %v10711_v37 = vadd.f32 %v5871_v46, %v5799_v34  ;;  %v10713_v17 = vadd.f32 %v5873_v35, %v5801_v58  ;;  %7759 = vpush %v4272_v56  ;;  %v4312_v24 = vadd.f32 %v4311_v61, %v4310_v40  ;;  %v2692_v56 = vsub.f32 %v10364_v29, %v10709_v19  ;;  %v5877_v35 = vpop.f32.mrf.mxu1 }
 0x41f   : > { %v5480_v27 = vpop.permute.xlu0 %5479 }
 0x420   : > { %v5907_v55 = vadd.f32 %v5906_v11, %v10711_v37  ;;  %v5932_v2 = vmul.f32 %v10711_v37, %v10711_v37  ;;  %v5803_v6 = vadd.f32 %v5802_v47, %v5480_v27  ;;  %7761 = vpush %v4312_v24  ;;  %v5805_v13 = vadd.f32 %v5804_v25, %v5480_v27 }
 0x421   : > { %4419 = vperm.xlu0 %8416, %v10449_v48   ;;  %v5933_v61 = vmul.f32 %v10713_v17, %v10713_v17  ;;  %v2713_v47 = vmul.f32 %v10715_v59, %v2692_v56  ;;  %v2714_v27 = vmul.f32 %v10715_v59, %v2693_v5  ;;  %v2688_v56 = vsub.f32 %v10344_v1, %v10709_v19 }
 0x422   : > { %v10727_v46 = vadd.f32 %v5875_v9, %v5803_v6  ;;  %v5908_v40 = vadd.f32 %v5907_v55, %v10713_v17  ;;  %v5947_v15 = vadd.f32 %v5946_v23, %v5932_v2  ;;  %v10732_v34 = vadd.f32 %v5877_v35, %v5805_v13 }
 0x423   : > { %v2689_v5 = vsub.f32 %v10349_v26, %v10709_v19  ;;  %v2684_v1 = vsub.f32 %v10324_v63, %v10709_v19  ;;  %v2685_v26 = vsub.f32 %v10329_v33, %v10709_v19  ;;  %v2680_v63 = vsub.f32 %v10303_v32, %v10709_v19 }
 0x424   : > { %v2753_v58 = vpop.permute.xlu0 %2752  ;;  %v5909_v29 = vadd.f32 %v5908_v40, %v10727_v46  ;;  %v5934_v53 = vmul.f32 %v10727_v46, %v10727_v46  ;;  %v5948_v11 = vadd.f32 %v5947_v15, %v5933_v61  ;;  %v5935_v2 = vmul.f32 %v10732_v34, %v10732_v34 }
 0x425   : > { %v2769_v24 = vmul.f32 %v2753_v58, %v2713_v47  ;;  %v2770_v9 = vmul.f32 %v2753_v58, %v2714_v27  ;;  %8419 = vset.pattern.permute.xlu0 %v11563_v14  ;;  %v2710_v40 = vmul.f32 %v10715_v59, %v2689_v5  ;;  %v2681_v33 = vsub.f32 %v10309_v21, %v10709_v19 }
 0x426   : > { %6202 = vperm.xlu0 %8419, %v10476_v62   ;;  %v5910_v23 = vadd.f32 %v5909_v29, %v10732_v34  ;;  %v5949_v25 = vadd.f32 %v5948_v11, %v5934_v53  ;;  %v2709_v62 = vmul.f32 %v10715_v59, %v2688_v56  ;;  %v2705_v53 = vmul.f32 %v10715_v59, %v2684_v1  ;;  %v11567_v1 = vld [vmem:[#allocation25_spill] sm:$0xff] }
 0x427   : > { %v2706_v11 = vmul.f32 %v10715_v59, %v2685_v26  ;;  %v2701_v56 = vmul.f32 %v10715_v59, %v2680_v63  ;;  %v2702_v5 = vmul.f32 %v10715_v59, %v2681_v33  ;;  %v11569_v33 = vld [vmem:[#allocation20_spill] sm:$0xff] }
 0x428   : > { %v2809_v55 = vpop.permute.xlu0 %2808  ;;  %5911 = vadd.xlane.f32.xlu1 %v5910_v23  ;;  %v5950_v61 = vadd.f32 %v5949_v25, %v5935_v2 }
 0x429   : > { %v10742_v6 = vadd.f32 %v2809_v55, %v2769_v24  ;;  %v10744_v13 = vadd.f32 %v2809_v55, %v2770_v9 }
 0x42c   : > { %v2743_v15 = vpop.permute.xlu0 %2742  ;;  %5951 = vadd.xlane.f32.xlu1 %v5950_v61 }
 0x42d   : > { %v2765_v35 = vmul.f32 %v2743_v15, %v2709_v62  ;;  %v2766_v47 = vmul.f32 %v2743_v15, %v2710_v40  ;;  %v10774_v15 = vstv %s10502_s21 }
 0x42e   : > { %v1046_v21 = vsub.f32 %v10180_v38, %v10774_v15  ;;  %v1047_v26 = vsub.f32 %v11567_v1, %v10774_v15  ;;  %v1041_v38 = vsub.f32 %v11569_v33, %v10774_v15  ;;  %v11570_v1 = vld [vmem:[#allocation15_spill] sm:$0xff] }
 0x430   : > { %v2799_v27 = vpop.permute.xlu0 %2798 }
 0x431   : > { %v10752_v58 = vadd.f32 %v2799_v27, %v2765_v35  ;;  %v10754_v29 = vadd.f32 %v2799_v27, %v2766_v47  ;;  %v10777_v47 = vstv %s10611_s30 }
 0x434   : > { %v2733_v24 = vpop.permute.xlu0 %2732 }
 0x435   : > { %v2761_v9 = vmul.f32 %v2733_v24, %v2705_v53  ;;  %v2762_v23 = vmul.f32 %v2733_v24, %v2706_v11  ;;  %v1067_v53 = vmul.f32 %v10777_v47, %v1046_v21  ;;  %v1068_v11 = vmul.f32 %v10777_v47, %v1047_v26 }
 0x436   : > { %v1036_v26 = vsub.f32 %v11570_v1, %v10774_v15 }
 0x438   : > { %v2789_v25 = vpop.permute.xlu0 %2788 }
 0x439   : > { %v10762_v55 = vadd.f32 %v2789_v25, %v2761_v9  ;;  %v10764_v2 = vadd.f32 %v2789_v25, %v2762_v23  ;;  %v11568_v25 = vld [vmem:[#allocation19_spill] sm:$0xff] }
 0x43a   : > { %v1040_v63 = vsub.f32 %v11568_v25, %v10774_v15 }
 0x43c   : > { %v2723_v61 = vpop.permute.xlu0 %2722 }
 0x43d   : > { %v2757_v62 = vmul.f32 %v2723_v61, %v2701_v56  ;;  %v2758_v40 = vmul.f32 %v2723_v61, %v2702_v5  ;;  %2747 = vperm.xlu1 %8408, %v10400_v45   ;;  %v1061_v56 = vmul.f32 %v10777_v47, %v1040_v63  ;;  %v1062_v5 = vmul.f32 %v10777_v47, %v1041_v38 }
 0x440   : > { %v2779_v35 = vpop.permute.xlu0 %2778 }
 0x441   : > { %v10779_v27 = vadd.f32 %v2779_v35, %v2757_v62  ;;  %v10781_v32 = vadd.f32 %v2779_v35, %v2758_v40  ;;  %2803 = vperm.xlu1 %8408, %v10431_v54  }
 0x445   : > { %v1107_v24 = vpop.permute.xlu0 %1106  ;;  %2737 = vperm.xlu1 %8408, %v10410_v18  }
 0x446   : > { %v10791_v9 = vmul.f32 %v1107_v24, %v1067_v53  ;;  %v10793_v23 = vmul.f32 %v1107_v24, %v1068_v11  ;;  %v11571_v53 = vld [vmem:[#allocation16_spill] sm:$0xff]  ;;  %v1057_v24 = vmul.f32 %v10777_v47, %v1036_v26 }
 0x447   : > { %v1037_v11 = vsub.f32 %v11571_v53, %v10774_v15 }
 0x449   : > { %v1092_v61 = vpop.permute.xlu0 %1091  ;;  %2793 = vperm.xlu1 %8408, %v10442_v0   ;;  %v1058_v25 = vmul.f32 %v10777_v47, %v1037_v11 }
 0x44a   : > { %v1117_v62 = vmul.f32 %v1092_v61, %v1061_v56  ;;  %v1118_v40 = vmul.f32 %v1092_v61, %v1062_v5  ;;  %v11572_v61 = vld [vmem:[#allocation11_spill] sm:$0xff] }
 0x44d   : > { %v1148_v18 = vpop.permute.xlu0 %1147  ;;  %2727 = vperm.xlu1 %8408, %v10395_v36  }
 0x44e   : > { %v10803_v35 = vadd.f32 %v1148_v18, %v1117_v62  ;;  %v10805_v21 = vadd.f32 %v1148_v18, %v1118_v40  ;;  %v1032_v62 = vsub.f32 %v11572_v61, %v10774_v15  ;;  %v11573_v40 = vld [vmem:[#allocation12_spill] sm:$0xff] }
 0x44f   : > { %s7760_s21 = spop %7759 }
 0x450   : > { %s10811_s30 = smul.f32 6.1035156e-05, %s7760_s21  ;;  %v1053_v18 = vmul.f32 %v10777_v47, %v1032_v62 }
 0x451   : > { %v1082_v63 = vpop.permute.xlu0 %1081  ;;  %2783 = vperm.xlu1 %8408, %v10426_v60   ;;  %s7762_s22 = spop %7761  ;;  %v1033_v60 = vsub.f32 %v11573_v40, %v10774_v15 }
 0x452   : > { %s4320_s20 = smul.f32 %s10811_s30, %s10811_s30  ;;  %v1113_v36 = vmul.f32 %v1082_v63, %v1057_v24  ;;  %v1114_v33 = vmul.f32 %v1082_v63, %v1058_v25  ;;  %v6559_v24 = vld [vmem:[%s11414_s10 + $0x8] sm:$0xff]  ;;  %v6561_v25 = vld [vmem:[%s11414_s10 + $0x18] sm:$0xff] }
 0x453   : > { %s4319_s23 = smul.f32 6.1035156e-05, %s7762_s22  ;;  %v1054_v1 = vmul.f32 %v10777_v47, %v1033_v60  ;;  %6569 = vperm.xlu0 %8419, %v6559_v24   ;;  %v8511_v24 = vld [vmem:[%s11411_s7 + $0x38] sm:$0xff] }
 0x455   : > { %s4321_s16 = ssub.f32 %s4319_s23, %s4320_s20  ;;  %v1138_v38 = vpop.permute.xlu0 %1137  ;;  %2717 = vperm.xlu1 %8408, %v10415_v4  }
 0x456   : > { %v10819_v56 = vadd.f32 %v1138_v38, %v1113_v36  ;;  %v10821_v5 = vadd.f32 %v1138_v38, %v1114_v33 }
 0x457   : > { %s4322_s1 = smax.f32 %s8638_s24, %s4321_s16  ;;  %6579 = vperm.xlu0 %8419, %v6561_v25  }
 0x458   : > { %s4340_s2 = sadd.f32 1e-05, %s4322_s1 }
 0x459   : > { %v1072_v26 = vpop.permute.xlu0 %1071  ;;  %2773 = vperm.xlu1 %8408, %v10449_v48  }
 0x45a   : > { %v4341_v4 = vstv %s4340_s2  ;;  %v1109_v53 = vmul.f32 %v1072_v26, %v1053_v18  ;;  %v1110_v11 = vmul.f32 %v1072_v26, %v1054_v1  ;;  %v11579_v1 = vmov 4  }
 0x45b   : > { %8487 = vrsqrt.f32 %v4341_v4  ;;  %v8504_v4 = vld [vmem:[%s11410_s6 + $0x38] sm:$0xff] }
 0x45d   : > { %v1128_v63 = vpop.permute.xlu0 %1127  ;;  %8410 = vset.pattern.permute.xlu1 %v11554_v52 }
 0x45e   : > { %v10838_v36 = vadd.f32 %v1128_v63, %v1109_v53  ;;  %v10840_v33 = vadd.f32 %v1128_v63, %v1110_v11  ;;  %1101 = vperm.xlu1 %8410, %v10400_v45   ;;  %v8503_v45 = vld [vmem:[%s11410_s6 + $0x18] sm:$0xff]  ;;  %v8508_v53 = vld [vmem:[%s11411_s7 + $0x10] sm:$0xff]  ;;  %v8509_v11 = vld [vmem:[%s11410_s6] sm:$0xff] }
 0x462   : > { %1157 = vperm.xlu1 %8410, %v10431_v54   ;;  %v10844_v38 = vpop.permute.xlu0 %6039 }
 0x466   : > { %1162 = vperm.xlu1 %8410, %v10405_v10   ;;  %v10847_v61 = vpop.permute.xlu0 %6100 }
 0x468   : > { %v8488_v62 = vpop.eup %8487 }
 0x469   : > { %7763 = vpush %v8488_v62 }
 0x46a   : > { %1096 = vperm.xlu1 %8410, %v10457_v43   ;;  %v10850_v52 = vpop.permute.xlu0 %6034 }
 0x46e   : > { %1152 = vperm.xlu1 %8410, %v10469_v39   ;;  %v10853_v40 = vpop.permute.xlu0 %6090 }
 0x46f   : > { %11574 = vst [vmem:[#allocation25_spill] sm:$0xff] %v10853_v40 }
 0x472   : > { %1086 = vperm.xlu1 %8410, %v8503_v45   ;;  %v10858_v54 = vpop.permute.xlu0 %6024 }
 0x473   : > { %11575 = vst [vmem:[#allocation19_spill] sm:$0xff] %v10858_v54 }
 0x476   : > { %1142 = vperm.xlu1 %8410, %v10420_v3   ;;  %v10861_v10 = vpop.permute.xlu0 %6080  ;;  %v8505_v3 = vld [vmem:[%s11411_s7 + $0x30] sm:$0xff] }
 0x477   : > { %11576 = vst [vmem:[#allocation20_spill] sm:$0xff] %v10861_v10 }
 0x47a   : > { %1076 = vperm.xlu1 %8410, %v10462_v28   ;;  %v10864_v60 = vpop.permute.xlu0 %6014  ;;  %v8506_v28 = vld [vmem:[%s11410_s6 + $0x20] sm:$0xff] }
 0x47b   : > { %11577 = vst [vmem:[#allocation15_spill] sm:$0xff] %v10864_v60 }
 0x47e   : > { %1132 = vperm.xlu1 %8410, %v10474_v51   ;;  %v10867_v18 = vpop.permute.xlu0 %6070  ;;  %v8507_v51 = vld [vmem:[%s11410_s6 + $0x10] sm:$0xff] }
 0x47f   : > { %11578 = vst [vmem:[#allocation16_spill] sm:$0xff] %v10867_v18 }
 0x482   : > { %8413 = vset.pattern.permute.xlu1 %v11579_v1 }
 0x483   : > { %v6213_v26 = vpop.permute.xlu0 %6212  ;;  %6044 = vperm.xlu1 %8413, %v8504_v4  }
 0x484   : > { %6280 = vmatprep.subr.bf16.mxu1 %v6213_v26 }
 0x485   : > { %6281 = vmatpush1.bf16.msra.mxu1 %v6213_v26 }
 0x487   : > { %6095 = vperm.xlu1 %8413, %v8505_v3  }
 0x48b   : > { %6029 = vperm.xlu1 %8413, %v8506_v28   ;;  %v11580_v28 = vld [vmem:[#allocation32_spill] sm:$0xff] }
 0x48f   : > { %6085 = vperm.xlu1 %8413, %v10442_v0   ;;  %v8510_v0 = vld [vmem:[%s11410_s6 + $0x30] sm:$0xff] }
 0x493   : > { %6019 = vperm.xlu1 %8413, %v8507_v51   ;;  %v11581_v51 = vld [vmem:[#allocation33_spill] sm:$0xff] }
 0x497   : > { %6075 = vperm.xlu1 %8413, %v8508_v53  }
 0x49a   : > { %s10974_s1 = spop %7763 }
 0x49b   : > { %6009 = vperm.xlu1 %8413, %v8509_v11   ;;  %v2691_v11 = vsub.f32 %v11581_v51, %v10709_v19  ;;  %v2841_v51 = vmax.f32 %v10742_v6, 0.0 }
 0x49f   : > { %6065 = vperm.xlu1 %8413, %v10449_v48  }
 0x4a3   : > { %8414 = vset.pattern.permute.xlu1 %v11548_v22 }
 0x4a4   : > { %4393 = vperm.xlu1 %8414, %v8510_v0  }
 0x4a8   : > { %4449 = vperm.xlu1 %8414, %v8505_v3   ;;  %v2690_v3 = vsub.f32 %v11580_v28, %v10709_v19 }
 0x4ac   : > { %4454 = vperm.xlu1 %8414, %v8511_v24  }
 0x4b0   : > { %4388 = vperm.xlu1 %8414, %v10457_v43   ;;  %v2711_v43 = vmul.f32 %v10715_v59, %v2690_v3  ;;  %v11583_v3 = vld [vmem:[#allocation31_spill] sm:$0xff] }
 0x4b1   : > { %v5912_v25 = vpop.xlane.xlu1 %5911  ;;  %v2687_v40 = vsub.f32 %v11583_v3, %v10709_v19 }
 0x4b2   : > { %v5913_v63 = vrot.slane %v5912_v25, 4 }
 0x4b4   : > { %v5914_v62 = vadd.f32 %v5913_v63, %v5912_v25  ;;  %4444 = vperm.xlu1 %8414, %v10469_v39   ;;  %v2712_v25 = vmul.f32 %v10715_v59, %v2691_v11  ;;  %v2842_v11 = vmax.f32 %v10744_v13, 0.0  ;;  %v8513_v13 = vld [vmem:[%s11410_s6 + $0x8] sm:$0xff] }
 0x4b5   : > { %v5952_v48 = vpop.xlane.xlu1 %5951 }
 0x4b6   : > { %v5915_v1 = vrot.slane %v5914_v62, 2  ;;  %v5953_v26 = vrot.slane %v5952_v48, 4 }
 0x4b8   : > { %v5954_v4 = vadd.f32 %v5953_v26, %v5952_v48  ;;  %4378 = vperm.xlu1 %8414, %v8503_v45   ;;  %v5916_v0 = vadd.f32 %v5915_v1, %v5914_v62  ;;  %v11582_v62 = vld [vmem:[#allocation30_spill] sm:$0xff] }
 0x4b9   : > { %v2748_v24 = vpop.permute.xlu1 %2747  ;;  %v2686_v1 = vsub.f32 %v11582_v62, %v10709_v19  ;;  %v2838_v62 = vmax.f32 %v10754_v29, 0.0 }
 0x4ba   : > { %v5955_v18 = vrot.slane %v5954_v4, 2  ;;  %v5917_v63 = vrot.slane %v5916_v0, 1  ;;  %v2767_v39 = vmul.f32 %v2748_v24, %v2711_v43  ;;  %v2768_v60 = vmul.f32 %v2748_v24, %v2712_v25 }
 0x4bb   : > { %v2707_v6 = vmul.f32 %v10715_v59, %v2686_v1 }
 0x4bc   : > { %4429 = vperm.xlu1 %8414, %v8508_v53   ;;  %v5918_v10 = vadd.f32 %v5917_v63, %v5916_v0  ;;  %v5956_v48 = vadd.f32 %v5955_v18, %v5954_v4  ;;  %v8512_v18 = vld [vmem:[%s11411_s7 + $0x18] sm:$0xff]  ;;  %v2708_v4 = vmul.f32 %v10715_v59, %v2687_v40 }
 0x4bd   : > { %v2804_v45 = vpop.permute.xlu1 %2803 }
 0x4be   : > { %v2823_v26 = vadd.f32 %v2804_v45, %v2767_v39  ;;  %v2824_v54 = vadd.f32 %v2804_v45, %v2768_v60  ;;  %7765 = vpush %v5918_v10  ;;  %v5957_v28 = vrot.slane %v5956_v48, 1  ;;  %v11584_v45 = vld [vmem:[#allocation28_spill] sm:$0xff] }
 0x4c0   : > { %v2839_v43 = vmax.f32 %v2823_v26, 0.0  ;;  %v2840_v24 = vmax.f32 %v2824_v54, 0.0  ;;  %4434 = vperm.xlu1 %8414, %v8512_v18   ;;  %v5958_v60 = vadd.f32 %v5957_v28, %v5956_v48  ;;  %v2682_v26 = vsub.f32 %v11584_v45, %v10709_v19  ;;  %v11585_v28 = vld [vmem:[#allocation29_spill] sm:$0xff] }
 0x4c1   : > { %v2738_v10 = vpop.permute.xlu1 %2737  ;;  %v2683_v40 = vsub.f32 %v11585_v28, %v10709_v19 }
 0x4c2   : > { %v7723_v53 = vpack.c.bf16 %v2841_v51, %v2839_v43  ;;  %7767 = vpush %v5958_v60  ;;  %v7724_v0 = vpack.c.bf16 %v2842_v11, %v2840_v24  ;;  %v2763_v25 = vmul.f32 %v2738_v10, %v2707_v6  ;;  %v2764_v63 = vmul.f32 %v2738_v10, %v2708_v4  ;;  %v11586_v11 = vld [vmem:[#allocation34_spill] sm:$0xff] }
 0x4c3   : > { %v2837_v51 = vmax.f32 %v10752_v58, 0.0  ;;  %v2703_v18 = vmul.f32 %v10715_v59, %v2682_v26  ;;  %v2704_v60 = vmul.f32 %v10715_v59, %v2683_v40 }
 0x4c4   : > { %4368 = vperm.xlu1 %8414, %v8513_v13   ;;  %6505 = vmatprep.subr.bf16.mxu0 %v7724_v0  ;;  %v8514_v0 = vld [vmem:[%s11411_s7 + $0x8] sm:$0xff] }
 0x4c5   : > { %6506 = vmatpush1.bf16.msra.mxu0 %v7723_v53  ;;  %v2794_v54 = vpop.permute.xlu1 %2793  ;;  %v11588_v13 = vld [vmem:[#allocation27_spill] sm:$0xff] }
 0x4c6   : > { %v2819_v39 = vadd.f32 %v2794_v54, %v2763_v25  ;;  %v2820_v48 = vadd.f32 %v2794_v54, %v2764_v63  ;;  %v11587_v25 = vld [vmem:[#allocation26_spill] sm:$0xff]  ;;  %v2679_v54 = vsub.f32 %v11588_v13, %v10709_v19 }
 0x4c7   : > { %v2678_v63 = vsub.f32 %v11587_v25, %v10709_v19  ;;  %v6558_v19 = vld [vmem:[%s11414_s10] sm:$0xff] }
 0x4c8   : > { %v2835_v1 = vmax.f32 %v2819_v39, 0.0  ;;  %v2836_v3 = vmax.f32 %v2820_v48, 0.0  ;;  %8417 = vset.pattern.permute.xlu1 %v11563_v14  ;;  %v2833_v39 = vmax.f32 %v10762_v55, 0.0  ;;  %v2834_v48 = vmax.f32 %v10764_v2, 0.0 }
 0x4c9   : > { %6207 = vperm.xlu1 %8417, %v11586_v11   ;;  %v2728_v43 = vpop.permute.xlu1 %2727  ;;  %v2699_v40 = vmul.f32 %v10715_v59, %v2678_v63 }
 0x4ca   : > { %v7721_v24 = vpack.c.bf16 %v2837_v51, %v2835_v1  ;;  %v7722_v10 = vpack.c.bf16 %v2838_v62, %v2836_v3  ;;  %v2759_v53 = vmul.f32 %v2728_v43, %v2703_v18  ;;  %v2760_v6 = vmul.f32 %v2728_v43, %v2704_v60  ;;  %v11589_v1 = vld [vmem:[#allocation35_spill] sm:$0xff] }
 0x4cb   : > { %v2700_v51 = vmul.f32 %v10715_v59, %v2679_v54  ;;  %v2830_v59 = vmax.f32 %v10781_v32, 0.0 }
 0x4cc   : > { %6507 = vmatprep.subr.bf16.mxu0 %v7722_v10  ;;  %v6560_v10 = vld [vmem:[%s11414_s10 + $0x10] sm:$0xff] }
 0x4cd   : > { %8418 = vset.pattern.permute.xlu1 %v11548_v22  ;;  %6508 = vmatpush1.bf16.msra.mxu0 %v7721_v24  ;;  %v2784_v58 = vpop.permute.xlu1 %2783  ;;  %v2829_v24 = vmax.f32 %v10779_v27, 0.0 }
 0x4ce   : > { %v2815_v29 = vadd.f32 %v2784_v58, %v2759_v53  ;;  %v2816_v4 = vadd.f32 %v2784_v58, %v2760_v6  ;;  %4424 = vperm.xlu1 %8418, %v8514_v0   ;;  %v11590_v58 = vld [vmem:[#allocation23_spill] sm:$0xff] }
 0x4d0   : > { %v2831_v22 = vmax.f32 %v2815_v29, 0.0  ;;  %v2832_v45 = vmax.f32 %v2816_v4, 0.0  ;;  %v1044_v29 = vsub.f32 %v11590_v58, %v10774_v15  ;;  %v11591_v4 = vld [vmem:[#allocation24_spill] sm:$0xff] }
 0x4d1   : > { %v2718_v26 = vpop.permute.xlu1 %2717  ;;  %v1045_v0 = vsub.f32 %v11591_v4, %v10774_v15 }
 0x4d2   : > { %v7719_v28 = vpack.c.bf16 %v2833_v39, %v2831_v22  ;;  %8420 = vset.pattern.permute.xlu1 %v11563_v14  ;;  %v7720_v62 = vpack.c.bf16 %v2834_v48, %v2832_v45  ;;  %v2755_v3 = vmul.f32 %v2718_v26, %v2699_v40  ;;  %v2756_v11 = vmul.f32 %v2718_v26, %v2700_v51  ;;  %v11593_v51 = vld [vmem:[#allocation22_spill] sm:$0xff] }
 0x4d3   : > { %6197 = vperm.xlu1 %8420, %v11589_v1   ;;  %v1065_v27 = vmul.f32 %v10777_v47, %v1044_v29  ;;  %v1066_v32 = vmul.f32 %v10777_v47, %v1045_v0  ;;  %v11595_v29 = vld [vmem:[#allocation18_spill] sm:$0xff]  ;;  %v1189_v0 = vmax.f32 %v10803_v35, 0.0 }
 0x4d4   : > { %6509 = vmatprep.subr.bf16.mxu0 %v7720_v62  ;;  %v1043_v62 = vsub.f32 %v11593_v51, %v10774_v15  ;;  %v1039_v4 = vsub.f32 %v11595_v29, %v10774_v15  ;;  %v11597_v51 = vld [vmem:[#allocation14_spill] sm:$0xff] }
 0x4d5   : > { %6510 = vmatpush1.bf16.msra.mxu0 %v7719_v28  ;;  %v2774_v55 = vpop.permute.xlu1 %2773  ;;  %v11592_v28 = vld [vmem:[#allocation21_spill] sm:$0xff] }
 0x4d6   : > { %v2811_v2 = vadd.f32 %v2774_v55, %v2755_v3  ;;  %v2812_v43 = vadd.f32 %v2774_v55, %v2756_v11  ;;  %v1042_v40 = vsub.f32 %v11592_v28, %v10774_v15  ;;  %v11596_v28 = vld [vmem:[#allocation13_spill] sm:$0xff] }
 0x4d7   : > { %6564 = vperm.xlu1 %8420, %v6558_v19  }
 0x4d8   : > { %v2827_v18 = vmax.f32 %v2811_v2, 0.0  ;;  %v2828_v60 = vmax.f32 %v2812_v43, 0.0  ;;  %v1063_v43 = vmul.f32 %v10777_v47, %v1042_v40  ;;  %v1034_v40 = vsub.f32 %v11596_v28, %v10774_v15 }
 0x4d9   : > { %v1102_v53 = vpop.permute.xlu1 %1101  ;;  %v11027_v28 = vstv %s10974_s1 }
 0x4da   : > { %v7717_v6 = vpack.c.bf16 %v2829_v24, %v2827_v18  ;;  %v7718_v25 = vpack.c.bf16 %v2830_v59, %v2828_v60  ;;  %v1121_v13 = vmul.f32 %v1102_v53, %v1065_v27  ;;  %v1122_v54 = vmul.f32 %v1102_v53, %v1066_v32 }
 0x4db   : > { %6574 = vperm.xlu1 %8420, %v6560_v10   ;;  %v1064_v24 = vmul.f32 %v10777_v47, %v1043_v62  ;;  %v1035_v62 = vsub.f32 %v11597_v51, %v10774_v15  ;;  %v11598_v51 = vld [vmem:[#allocation36_spill] sm:$0xff] }
 0x4dc   : > { %6511 = vmatprep.subr.bf16.mxu0 %v7718_v25  ;;  %v1190_v25 = vmax.f32 %v10805_v21, 0.0 }
 0x4dd   : > { %6512 = vmatpush1.bf16.msra.mxu0 %v7717_v6  ;;  %v1158_v63 = vpop.permute.xlu1 %1157  ;;  %v11594_v6 = vld [vmem:[#allocation17_spill] sm:$0xff] }
 0x4de   : > { %v1177_v39 = vadd.f32 %v1158_v63, %v1121_v13  ;;  %v1178_v48 = vadd.f32 %v1158_v63, %v1122_v54  ;;  %v1038_v58 = vsub.f32 %v11594_v6, %v10774_v15 }
 0x4e0   : > { %v1193_v1 = vmax.f32 %v1177_v39, 0.0  ;;  %v1194_v3 = vmax.f32 %v1178_v48, 0.0  ;;  %v1059_v54 = vmul.f32 %v10777_v47, %v1038_v58  ;;  %v1060_v39 = vmul.f32 %v10777_v47, %v1039_v4 }
 0x4e1   : > { %v1163_v22 = vpop.permute.xlu1 %1162 }
 0x4e2   : > { %v1179_v45 = vadd.f32 %v1163_v22, %v10791_v9  ;;  %v1180_v26 = vadd.f32 %v1163_v22, %v10793_v23  ;;  %v8476_v23 = vld [vmem:[%s11413_s9 + $0x4] ss:$8 sps:$4 sm:$0xff]  }
 0x4e3   : > { %6537 = vmatprep.mubr.bf16.mxu0 %v8476_v23  ;;  %v1181_v23 = vmax.f32 %v10838_v36, 0.0 }
 0x4e4   : > { %v1195_v11 = vmax.f32 %v1179_v45, 0.0  ;;  %v1196_v19 = vmax.f32 %v1180_v26, 0.0 }
 0x4e5   : > { %v1097_v55 = vpop.permute.xlu1 %1096 }
 0x4e6   : > { %v7715_v2 = vpack.c.bf16 %v1195_v11, %v1193_v1  ;;  %v7716_v59 = vpack.c.bf16 %v1196_v19, %v1194_v3  ;;  %v1119_v9 = vmul.f32 %v1097_v55, %v1063_v43  ;;  %v1120_v18 = vmul.f32 %v1097_v55, %v1064_v24 }
 0x4e7   : > { %v1185_v1 = vmax.f32 %v10819_v56, 0.0  ;;  %v1186_v3 = vmax.f32 %v10821_v5, 0.0  ;;  %v1055_v43 = vmul.f32 %v10777_v47, %v1034_v40  ;;  %v1056_v24 = vmul.f32 %v10777_v47, %v1035_v62 }
 0x4e8   : > { %6513 = vmatprep.subr.bf16.mxu0 %v7716_v59 }
 0x4e9   : > { %6514 = vmatpush1.bf16.msra.mxu0 %v7715_v2  ;;  %v1153_v60 = vpop.permute.xlu1 %1152 }
 0x4ea   : > { %v1175_v10 = vadd.f32 %v1153_v60, %v1119_v9  ;;  %v1176_v53 = vadd.f32 %v1153_v60, %v1120_v18 }
 0x4ec   : > { %v1191_v27 = vmax.f32 %v1175_v10, 0.0  ;;  %v1192_v32 = vmax.f32 %v1176_v53, 0.0  ;;  %v1182_v10 = vmax.f32 %v10840_v33, 0.0 }
 0x4ed   : > { %v1087_v63 = vpop.permute.xlu1 %1086 }
 0x4ee   : > { %v7713_v13 = vpack.c.bf16 %v1191_v27, %v1189_v0  ;;  %v7714_v48 = vpack.c.bf16 %v1192_v32, %v1190_v25  ;;  %v1115_v22 = vmul.f32 %v1087_v63, %v1059_v54  ;;  %v1116_v45 = vmul.f32 %v1087_v63, %v1060_v39  ;;  %v4399_v54 = vpop.permute.xlu0 %4398 }
 0x4ef   : > { %s7766_s2 = spop %7765 }
 0x4f0   : > { %s10978_s15 = smul.f32 6.1035156e-05, %s7766_s2  ;;  %6515 = vmatprep.subr.bf16.mxu0 %v7714_v48 }
 0x4f1   : > { %6516 = vmatpush1.bf16.msra.mxu0 %v7713_v13  ;;  %v1143_v35 = vpop.permute.xlu1 %1142 }
 0x4f2   : > { %v1171_v21 = vadd.f32 %v1143_v35, %v1115_v22  ;;  %v1172_v26 = vadd.f32 %v1143_v35, %v1116_v45  ;;  %s5966_s0 = smul.f32 %s10978_s15, %s10978_s15  ;;  %v11015_v22 = vpop.permute.xlu0 %4383 }
 0x4f3   : > { %s7768_s21 = spop %7767 }
 0x4f4   : > { %v1187_v11 = vmax.f32 %v1171_v21, 0.0  ;;  %v1188_v19 = vmax.f32 %v1172_v26, 0.0  ;;  %s5965_s22 = smul.f32 6.1035156e-05, %s7768_s21  ;;  %v11024_v26 = vstv %s10811_s30  ;;  %s444_s21 = sand.u32 1, %s8597_s26  }
 0x4f5   : > { %v1077_v55 = vpop.permute.xlu1 %1076  ;;  %v4324_v40 = vsub.f32 %v10519_v8, %v11024_v26  ;;  %v4325_v62 = vsub.f32 %v11598_v51, %v11024_v26  ;;  %v4339_v8 = vsub.f32 %v10597_v30, %v11024_v26 }
 0x4f6   : > { %v7711_v2 = vpack.c.bf16 %v1187_v11, %v1185_v1  ;;  %s5967_s20 = ssub.f32 %s5965_s22, %s5966_s0  ;;  %v7712_v59 = vpack.c.bf16 %v1188_v19, %v1186_v3  ;;  %v1111_v9 = vmul.f32 %v1077_v55, %v1055_v43  ;;  %v1112_v18 = vmul.f32 %v1077_v55, %v1056_v24  ;;  %v11019_v35 = vpop.permute.xlu0 %4439  ;;  %s11343_s22 = sshll.u32 %s444_s21, 6 }
 0x4f7   : > { %v4336_v1 = vsub.f32 %v10581_v31, %v11024_v26  ;;  %v4338_v3 = vsub.f32 %v10595_v57, %v11024_v26  ;;  %v4337_v55 = vsub.f32 %v10587_v41, %v11024_v26  ;;  %v4332_v31 = vsub.f32 %v10558_v16, %v11024_v26 }
 0x4f8   : > { %s5968_s23 = smax.f32 %s8638_s24, %s5967_s20  ;;  %6517 = vmatprep.subr.bf16.mxu0 %v7712_v59  ;;  %v4335_v57 = vsub.f32 %v10575_v42, %v11024_v26  ;;  %v4330_v24 = vsub.f32 %v10548_v44, %v11024_v26  ;;  %v4331_v41 = vsub.f32 %v10553_v49, %v11024_v26  ;;  %v4360_v59 = vmul.f32 %v11027_v28, %v4339_v8  ;;  %v11615_v42 = vld [vmem:[#allocation41_spill] sm:$0xff] }
 0x4f9   : > { %s5986_s16 = sadd.f32 1e-05, %s5968_s23  ;;  %6518 = vmatpush1.bf16.msra.mxu0 %v7711_v2  ;;  %v1133_v15 = vpop.permute.xlu1 %1132  ;;  %v4334_v2 = vsub.f32 %v10570_v20, %v11024_v26  ;;  %v4359_v43 = vmul.f32 %v11027_v28, %v4338_v3  ;;  %v4353_v30 = vmul.f32 %v11027_v28, %v4332_v31  ;;  %v11606_v31 = vld [vmem:[#allocation49_spill] sm:$0xff] }
 0x4fa   : > { %v1167_v56 = vadd.f32 %v1133_v15, %v1111_v9  ;;  %v1168_v5 = vadd.f32 %v1133_v15, %v1112_v18  ;;  %v11039_v19 = vpop.permute.xlu0 %4373  ;;  %v11063_v9 = vstv %s10978_s15  ;;  %v11601_v15 = vld [vmem:[#allocation38_spill] sm:$0xff]  ;;  %v11098_v51 = vmul.f32 %v4399_v54, %v4360_v59 }
 0x4fb   : > { %v5987_v60 = vstv %s5986_s16  ;;  %v5983_v3 = vsub.f32 %v10713_v17, %v11063_v9  ;;  %v5985_v8 = vsub.f32 %v10732_v34, %v11063_v9  ;;  %v5981_v17 = vsub.f32 %v10700_v7, %v11063_v9  ;;  %v11608_v59 = vld [vmem:[#allocation50_spill] sm:$0xff]  ;;  %v11609_v7 = vld [vmem:[#allocation45_spill] sm:$0xff] }
 0x4fc   : > { %8489 = vrsqrt.f32 %v5987_v60  ;;  %v1183_v53 = vmax.f32 %v1167_v56, 0.0  ;;  %v1184_v6 = vmax.f32 %v1168_v5, 0.0  ;;  %v11602_v56 = vld [vmem:[#allocation39_spill] sm:$0xff]  ;;  %v11077_v60 = vmul.f32 %v11027_v28, %v4325_v62 }
 0x4fd   : > { %v11101_v62 = vmul.f32 %v11015_v22, %v4353_v30  ;;  %v5980_v34 = vsub.f32 %v11608_v59, %v11063_v9  ;;  %v5975_v20 = vsub.f32 %v11609_v7, %v11063_v9 }
 0x4fe   : > { %v7709_v47 = vpack.c.bf16 %v1183_v53, %v1181_v23  ;;  %v10993_v58 = vpop.permute.xlu1 %6044  ;;  %v7710_v29 = vpack.c.bf16 %v1184_v6, %v1182_v10  ;;  %v11074_v23 = vmul.f32 %v11027_v28, %v4324_v40  ;;  %v11080_v10 = vmul.f32 %v11027_v28, %v4336_v1  ;;  %v11096_v40 = vpop.permute.xlu0 %4363 }
 0x4ff   : > { %v11083_v53 = vmul.f32 %v11027_v28, %v4337_v55  ;;  %v11085_v6 = vmul.f32 %v4399_v54, %v4359_v43  ;;  %11605 = vst [vmem:[#allocation33_spill] sm:$0xff] %v11101_v62  ;;  %v11104_v1 = vmul.f32 %v11027_v28, %v4331_v41  ;;  %v5984_v54 = vsub.f32 %v10727_v46, %v11063_v9 }
 0x500   : > { %6519 = vmatprep.subr.bf16.mxu0 %v7710_v29  ;;  %11603 = vst [vmem:[#allocation12_spill] sm:$0xff] %v11074_v23  ;;  %v11091_v29 = vmul.f32 %v11027_v28, %v4335_v57  ;;  %v5979_v43 = vsub.f32 %v11606_v31, %v11063_v9  ;;  %v11614_v23 = vld [vmem:[#allocation46_spill] sm:$0xff] }
 0x501   : > { %6520 = vmatpush1.bf16.msra.mxu0 %v7709_v47  ;;  %v11088_v47 = vmul.f32 %v11027_v28, %v4334_v2  ;;  %v5982_v2 = vsub.f32 %v10711_v37, %v11063_v9 }
 0x502   : > { %v10995_v4 = vpop.permute.xlu1 %6095  ;;  %v11142_v59 = vpop.permute.xlu0 %4419 }
 0x503   : > { %11612 = vst [vmem:[#allocation31_spill] sm:$0xff] %v11142_v59 }
 0x506   : > { %v10997_v0 = vpop.permute.xlu1 %6029 }
 0x509   : > { %v8490_v25 = vpop.eup %8489 }
 0x50a   : > { %7769 = vpush %v8490_v25  ;;  %v10999_v36 = vpop.permute.xlu1 %6085  ;;  %v11094_v25 = vmul.f32 %v11027_v28, %v4330_v24  ;;  %v11607_v24 = vld [vmem:[#allocation48_spill] sm:$0xff] }
 0x50b   : > { %v5978_v41 = vsub.f32 %v11607_v24, %v11063_v9  ;;  %v11610_v24 = vld [vmem:[#allocation47_spill] sm:$0xff] }
 0x50c   : > { %11604 = vst [vmem:[#allocation32_spill] sm:$0xff] %v11094_v25  ;;  %v5977_v16 = vsub.f32 %v11610_v24, %v11063_v9  ;;  %v5976_v24 = vsub.f32 %v11614_v23, %v11063_v9 }
 0x50e   : > { %v11001_v33 = vpop.permute.xlu1 %6019 }
 0x512   : > { %v11003_v27 = vpop.permute.xlu1 %6075 }
 0x516   : > { %v11005_v32 = vpop.permute.xlu1 %6009 }
 0x51a   : > { %v11007_v63 = vpop.permute.xlu1 %6065 }
 0x51f   : > { %v11009_v13 = vpop.permute.xlu1 %4393 }
 0x523   : > { %v11011_v39 = vpop.permute.xlu1 %4449 }
 0x527   : > { %v11013_v48 = vpop.permute.xlu1 %4454 }
 0x52b   : > { %v11017_v45 = vpop.permute.xlu1 %4388 }
 0x52f   : > { %v11021_v21 = vpop.permute.xlu1 %4444 }
 0x533   : > { %v11037_v11 = vpop.permute.xlu1 %4378 }
 0x537   : > { %v11065_v18 = vpop.permute.xlu1 %4429 }
 0x538   : > { %11599 = vst [vmem:[#allocation11_spill] sm:$0xff] %v11065_v18 }
 0x53b   : > { %s7770_s30 = spop %7769  ;;  %v11108_v55 = vpop.permute.xlu1 %4434 }
 0x53c   : > { %v11118_v57 = vstv %s7770_s30 }
 0x53d   : > { %v6004_v30 = vmul.f32 %v11118_v57, %v5983_v3  ;;  %v6006_v37 = vmul.f32 %v11118_v57, %v5985_v8  ;;  %v6003_v46 = vmul.f32 %v11118_v57, %v5982_v2  ;;  %v6005_v44 = vmul.f32 %v11118_v57, %v5984_v54 }
 0x53e   : > { %v6000_v31 = vmul.f32 %v11118_v57, %v5979_v43  ;;  %v6002_v49 = vmul.f32 %v11118_v57, %v5981_v17  ;;  %v11613_v17 = vld [vmem:[#allocation44_spill] sm:$0xff] }
 0x53f   : > { %v11136_v5 = vpop.permute.xlu1 %4368  ;;  %v6060_v3 = vmul.f32 %v10844_v38, %v6004_v30  ;;  %v6062_v8 = vmul.f32 %v10993_v58, %v6006_v37  ;;  %v6059_v2 = vmul.f32 %v10844_v38, %v6003_v46  ;;  %v6061_v54 = vmul.f32 %v10993_v58, %v6005_v44 }
 0x540   : > { %11611 = vst [vmem:[#allocation30_spill] sm:$0xff] %v11136_v5  ;;  %v6056_v43 = vmul.f32 %v10997_v0, %v6000_v31  ;;  %v5974_v7 = vsub.f32 %v11613_v17, %v11063_v9  ;;  %v5971_v5 = vsub.f32 %v11615_v42, %v11063_v9  ;;  %v6058_v44 = vmul.f32 %v10850_v52, %v6002_v49 }
 0x541   : > { %v6116_v30 = vadd.f32 %v10995_v4, %v6060_v3  ;;  %v6118_v37 = vadd.f32 %v10847_v61, %v6062_v8  ;;  %v6115_v38 = vadd.f32 %v10995_v4, %v6059_v2  ;;  %v6117_v58 = vadd.f32 %v10847_v61, %v6061_v54  ;;  %v11616_v3 = vld [vmem:[#allocation25_spill] sm:$0xff] }
 0x542   : > { %v6112_v46 = vadd.f32 %v10999_v36, %v6056_v43  ;;  %v5999_v31 = vmul.f32 %v11118_v57, %v5978_v41  ;;  %v6001_v17 = vmul.f32 %v11118_v57, %v5980_v34  ;;  %v6114_v62 = vadd.f32 %v11616_v3, %v6058_v44  ;;  %v6203_v34 = vpop.permute.xlu0 %6202  ;;  %v11618_v44 = vld [vmem:[#allocation20_spill] sm:$0xff] }
 0x543   : > { %v6132_v23 = vmax.f32 %v6116_v30, 0.0  ;;  %v6134_v59 = vmax.f32 %v6118_v37, 0.0  ;;  %v6131_v18 = vmax.f32 %v6115_v38, 0.0  ;;  %v6133_v42 = vmax.f32 %v6117_v58, 0.0 }
 0x544   : > { %v6208_v25 = vpop.permute.xlu1 %6207  ;;  %v6128_v8 = vmax.f32 %v6112_v46, 0.0  ;;  %v6055_v4 = vmul.f32 %v10997_v0, %v5999_v31  ;;  %v6057_v61 = vmul.f32 %v10850_v52, %v6001_v17  ;;  %v5996_v54 = vmul.f32 %v11118_v57, %v5975_v20  ;;  %v11617_v0 = vld [vmem:[#allocation19_spill] sm:$0xff] }
 0x545   : > { %6282 = vmatprep.subr.bf16.mxu1 %v6208_v25  ;;  %v7740_v49 = vpack.c.bf16 %v6134_v59, %v6132_v23  ;;  %v7739_v2 = vpack.c.bf16 %v6133_v42, %v6131_v18  ;;  %v5998_v41 = vmul.f32 %v11118_v57, %v5977_v16  ;;  %v6130_v43 = vmax.f32 %v6114_v62, 0.0  ;;  %v11620_v42 = vld [vmem:[#allocation40_spill] sm:$0xff] }
 0x546   : > { %6283 = vmatpush1.bf16.msra.mxu1 %v6208_v25  ;;  %v6111_v30 = vadd.f32 %v10999_v36, %v6055_v4  ;;  %v6113_v37 = vadd.f32 %v11616_v3, %v6057_v61  ;;  %v5995_v38 = vmul.f32 %v11118_v57, %v5974_v7  ;;  %v6052_v52 = vmul.f32 %v11001_v33, %v5996_v54 }
 0x547   : > { %6284 = vmatprep.subr.bf16.mxu1 %v6203_v34  ;;  %6521 = vmatprep.subr.bf16.mxu0 %v7740_v49  ;;  %v6054_v59 = vmul.f32 %v11617_v0, %v5998_v41  ;;  %v5997_v18 = vmul.f32 %v11118_v57, %v5976_v24  ;;  %v7738_v20 = vpack.c.bf16 %v6130_v43, %v6128_v8  ;;  %v11619_v24 = vld [vmem:[#allocation43_spill] sm:$0xff] }
 0x548   : > { %6522 = vmatpush2.bf16.msra.mxu0 %v7739_v2  ;;  %v6127_v16 = vmax.f32 %v6111_v30, 0.0  ;;  %v6129_v58 = vmax.f32 %v6113_v37, 0.0  ;;  %v6051_v25 = vmul.f32 %v11001_v33, %v5995_v38  ;;  %v6108_v36 = vadd.f32 %v11003_v27, %v6052_v52  ;;  %v11621_v2 = vld [vmem:[#allocation42_spill] sm:$0xff] }
 0x549   : > { %v11171_v62 = vpop.permute.xlu1 %4424  ;;  %v6110_v7 = vadd.f32 %v11618_v44, %v6054_v59  ;;  %v6053_v46 = vmul.f32 %v11617_v0, %v5997_v18  ;;  %v5992_v31 = vmul.f32 %v11118_v57, %v5971_v5  ;;  %6523 = vmatprep.subr.bf16.mxu0 %v7738_v20  ;;  %v5973_v23 = vsub.f32 %v11619_v24, %v11063_v9  ;;  %v11623_v0 = vld [vmem:[#allocation15_spill] sm:$0xff] }
 0x54a   : > { %6285 = vmatpush1.bf16.msra.mxu1 %v6203_v34  ;;  %v7737_v17 = vpack.c.bf16 %v6129_v58, %v6127_v16  ;;  %v5970_v3 = vsub.f32 %v11620_v42, %v11063_v9  ;;  %v6124_v33 = vmax.f32 %v6108_v36, 0.0  ;;  %v6107_v4 = vadd.f32 %v11003_v27, %v6051_v25  ;;  %v8473_v58 = vld [vmem:[%s11412_s8] sm:$0xff]  }
 0x54b   : > { %v6126_v8 = vmax.f32 %v6110_v7, 0.0  ;;  %v6109_v61 = vadd.f32 %v11618_v44, %v6053_v46  ;;  %v5994_v49 = vmul.f32 %v11118_v57, %v5973_v23  ;;  %v6048_v5 = vmul.f32 %v11005_v32, %v5992_v31 }
 0x54c   : > { %6524 = vmatpush2.bf16.msra.mxu0 %v7737_v17  ;;  %v5972_v54 = vsub.f32 %v11621_v2, %v11063_v9  ;;  %v11622_v41 = vsub.f32 %v11602_v56, %v11024_v26  ;;  %v6123_v30 = vmax.f32 %v6107_v4, 0.0  ;;  %v5991_v27 = vmul.f32 %v11118_v57, %v5970_v3  ;;  %v8477_v2 = vld [vmem:[%s11412_s8 + $0x8] sm:$0xff]  }
 0x54d   : > { %v7736_v43 = vpack.c.bf16 %v6126_v8, %v6124_v33  ;;  %v6125_v37 = vmax.f32 %v6109_v61, 0.0  ;;  %v4414_v38 = vmul.f32 %v11009_v13, %v11083_v53  ;;  %v6050_v59 = vmul.f32 %v11623_v0, %v5994_v49  ;;  %v11624_v53 = vld [vmem:[#allocation16_spill] sm:$0xff] }
 0x54e   : > { %v4354_v34 = vmul.f32 %v11027_v28, %v11622_v41  ;;  %v6198_v52 = vpop.permute.xlu1 %6197  ;;  %v6104_v18 = vadd.f32 %v11007_v63, %v6048_v5  ;;  %v5993_v9 = vmul.f32 %v11118_v57, %v5972_v54  ;;  %v4472_v56 = vadd.f32 %v11013_v48, %v11098_v51  ;;  %v11628_v41 = vld [vmem:[#allocation33_spill] sm:$0xff] }
 0x54f   : > { %6525 = vmatprep.subr.bf16.mxu0 %v7736_v43  ;;  %6286 = vmatprep.subr.bf16.mxu1 %v6198_v52  ;;  %v7735_v20 = vpack.c.bf16 %v6125_v37, %v6123_v30  ;;  %v6047_v16 = vmul.f32 %v11005_v32, %v5991_v27  ;;  %v6106_v25 = vadd.f32 %v11624_v53, %v6050_v59  ;;  %v11630_v37 = vld [vmem:[#allocation11_spill] sm:$0xff] }
 0x550   : > { %6287 = vmatpush1.bf16.msra.mxu1 %v6198_v52  ;;  %v6120_v36 = vmax.f32 %v6104_v18, 0.0  ;;  %v6049_v44 = vmul.f32 %v11623_v0, %v5993_v9  ;;  %v4470_v57 = vadd.f32 %v11011_v39, %v4414_v38  ;;  %v4412_v51 = vmul.f32 %v11017_v45, %v11091_v29  ;;  %v11631_v38 = vld [vmem:[#allocation30_spill] sm:$0xff]  ;;  %v11632_v9 = vld [vmem:[#allocation37_spill] sm:$0xff] }
 0x551   : > { %6526 = vmatpush2.bf16.msra.mxu0 %v7735_v20  ;;  %v6103_v7 = vadd.f32 %v11007_v63, %v6047_v16  ;;  %v4410_v32 = vmul.f32 %v11015_v22, %v4354_v34  ;;  %v4413_v46 = vmul.f32 %v11009_v13, %v11080_v10  ;;  %v4471_v31 = vadd.f32 %v11013_v48, %v11085_v6  ;;  %v11629_v34 = vld [vmem:[#allocation32_spill] sm:$0xff] }
 0x552   : > { %v6122_v17 = vmax.f32 %v6106_v25, 0.0  ;;  %v6105_v24 = vadd.f32 %v11624_v53, %v6049_v44  ;;  %v4488_v23 = vmax.f32 %v4472_v56, 0.0  ;;  %v4468_v42 = vadd.f32 %v11021_v21, %v4412_v51 }
 0x553   : > { %v11625_v29 = vsub.f32 %v10543_v12, %v11024_v26  ;;  %v6119_v63 = vmax.f32 %v6103_v7, 0.0  ;;  %7208 = vmatmul.mubr.msk.bf16.vlgmr.msra.gmra.mxu1 %vm6265_vm0, %v8473_v58  ;;  %v4469_v22 = vadd.f32 %v11011_v39, %v4413_v46  ;;  %v4411_v13 = vmul.f32 %v11017_v45, %v11088_v47 }
 0x554   : > { %v7734_v48 = vpack.c.bf16 %v6122_v17, %v6120_v36  ;;  %v6121_v10 = vmax.f32 %v6105_v24, 0.0  ;;  %6314 = vmatprep.mubr.bf16.mxu1 %v11563_v14  ;;  %v4486_v6 = vmax.f32 %v4470_v57, 0.0  ;;  %v4408_v33 = vmul.f32 %v11037_v11, %v11104_v1 }
 0x555   : > { %v4350_v3 = vmul.f32 %v11027_v28, %v11625_v29  ;;  %v11626_v12 = vsub.f32 %v10538_v50, %v11024_v26  ;;  %v4466_v4 = vadd.f32 %v11019_v35, %v4410_v32  ;;  %v4487_v61 = vmax.f32 %v4471_v31, 0.0 }
 0x556   : > { %v4467_v39 = vadd.f32 %v11021_v21, %v4411_v13  ;;  %v11627_v45 = vsub.f32 %v11601_v15, %v11024_v26  ;;  %6527 = vmatprep.subr.bf16.mxu0 %v7734_v48  ;;  %v7733_v14 = vpack.c.bf16 %v6121_v10, %v6119_v63  ;;  %v4484_v49 = vmax.f32 %v4468_v42, 0.0  ;;  %v8480_v63 = vld [vmem:[%s11413_s9 + $0x10] ss:$8 sps:$4 sm:$0xff]  }
 0x557   : > { %v4349_v8 = vmul.f32 %v11027_v28, %v11626_v12  ;;  %v4406_v1 = vmul.f32 %v11039_v19, %v4350_v3  ;;  %v4464_v5 = vadd.f32 %v11108_v55, %v4408_v33  ;;  %v7732_v50 = vpack.c.bf16 %v4488_v23, %v4486_v6  ;;  %v8474_v3 = vld [vmem:[%s11413_s9] ss:$8 sps:$4 sm:$0xff]   ;;  %v6565_v33 = vpop.permute.xlu1 %6564 }
 0x558   : > { %v4348_v47 = vmul.f32 %v11027_v28, %v11627_v45  ;;  %v4402_v21 = vmul.f32 %v11096_v40, %v11077_v60  ;;  %v4485_v54 = vmax.f32 %v4469_v22, 0.0  ;;  %v4465_v15 = vadd.f32 %v11019_v35, %v11628_v41  ;;  %6528 = vmatpush2.bf16.msra.mxu0 %v7733_v14 }
 0x559   : > { %v4407_v43 = vmul.f32 %v11037_v11, %v11629_v34  ;;  %v4405_v30 = vmul.f32 %v11039_v19, %v4349_v8  ;;  %v4462_v27 = vadd.f32 %v11630_v37, %v4406_v1  ;;  %6529 = vmatprep.subr.bf16.mxu0 %v7732_v50  ;;  %v4482_v0 = vmax.f32 %v4466_v4, 0.0  ;;  %v11634_v19 = vld [vmem:[#allocation12_spill] sm:$0xff] }
 0x55a   : > { %v4404_v52 = vmul.f32 %v11631_v38, %v4348_v47  ;;  %v7731_v59 = vpack.c.bf16 %v4487_v61, %v4485_v54  ;;  %v4483_v18 = vmax.f32 %v4467_v39, 0.0  ;;  %v11633_v56 = vsub.f32 %v11632_v9, %v11024_v26  ;;  %v6570_v47 = vpop.permute.xlu0 %6569 }
 0x55b   : > { %v4463_v60 = vadd.f32 %v11108_v55, %v4407_v43  ;;  %v4480_v20 = vmax.f32 %v4464_v5, 0.0  ;;  %v7730_v16 = vpack.c.bf16 %v4484_v49, %v4482_v0  ;;  %7209 = vmatmul.mubr.msk.bf16.gmra.mxu1 %vm6265_vm0, %v8477_v2  ;;  %v4401_v58 = vmul.f32 %v11096_v40, %v11634_v19  ;;  %v11635_v55 = vld [vmem:[#allocation31_spill] sm:$0xff]  ;;  %v6575_v0 = vpop.permute.xlu1 %6574 }
 0x55c   : > { %v4347_v35 = vmul.f32 %v11027_v28, %v11633_v56  ;;  %v4460_v11 = vadd.f32 %v11171_v62, %v4404_v52  ;;  %v4481_v53 = vmax.f32 %v4465_v15, 0.0  ;;  %v4461_v25 = vadd.f32 %v11630_v37, %v4405_v30  ;;  %6530 = vmatpush2.bf16.msra.mxu0 %v7731_v59 }
 0x55d   : > { %v4458_v44 = vadd.f32 %v11635_v55, %v4402_v21  ;;  %v4478_v26 = vmax.f32 %v4462_v27, 0.0  ;;  %6531 = vmatprep.subr.bf16.mxu0 %v7730_v16  ;;  %v4479_v57 = vmax.f32 %v4463_v60, 0.0  ;;  %v4457_v46 = vadd.f32 %v11635_v55, %v4401_v58 }
 0x55e   : > { %v4403_v36 = vmul.f32 %v11631_v38, %v4347_v35  ;;  %v7729_v28 = vpack.c.bf16 %v4483_v18, %v4481_v53  ;;  %v4476_v7 = vmax.f32 %v4460_v11, 0.0  ;;  %v4477_v31 = vmax.f32 %v4461_v25, 0.0 }
 0x55f   : > { %v7728_v32 = vpack.c.bf16 %v4480_v20, %v4478_v26  ;;  %v4474_v40 = vmax.f32 %v4458_v44, 0.0  ;;  %v4473_v42 = vmax.f32 %v4457_v46, 0.0  ;;  %v6580_v20 = vpop.permute.xlu0 %6579 }
 0x560   : > { %v4459_v51 = vadd.f32 %v11171_v62, %v4403_v36  ;;  %6532 = vmatpush2.bf16.msra.mxu0 %v7729_v28  ;;  %v7727_v17 = vpack.c.bf16 %v4479_v57, %v4477_v31  ;;  %v8478_v62 = vld [vmem:[%s11413_s9 + $0x14] ss:$8 sps:$4 sm:$0xff]  }
 0x561   : > { %6533 = vmatprep.subr.bf16.mxu0 %v7728_v32  ;;  %v7726_v23 = vpack.c.bf16 %v4476_v7, %v4474_v40 }
 0x562   : > { %v4475_v24 = vmax.f32 %v4459_v51, 0.0 }
 0x564   : > { %6534 = vmatpush2.bf16.msra.mxu0 %v7727_v17  ;;  %v7725_v29 = vpack.c.bf16 %v4475_v24, %v4473_v42  ;;  %v6592_v42 = vld [vmem:[%s11415_s11 + $0x10] sm:$0xff] }
 0x565   : > { %6535 = vmatprep.subr.bf16.mxu0 %v7726_v23  ;;  %v6591_v23 = vld [vmem:[%s11415_s11 + $0x8] sm:$0xff] }
 0x568   : > { %6536 = vmatpush2.bf16.msra.mxu0 %v7725_v29  ;;  %v6590_v29 = vld [vmem:[%s11415_s11] sm:$0xff] }
 0x56b   : > { %6538 = vmatmul.mubr.bf16.vlgmr.msra.gmra.mxu0 %v8474_v3  ;;  %v6594_v3 = vld [vmem:[%s11416_s12] sm:$0xff] }
 0x56c   : > { %6547 = vmatprep.mubr.bf16.mxu0 %v8478_v62  ;;  %v6593_v62 = vld [vmem:[%s11415_s11 + $0x18] sm:$0xff] }
 0x573   : > { %6548 = vmatmul.mubr.bf16.gmra.mxu0 %v8480_v63  ;;  %v6596_v63 = vld [vmem:[%s11416_s12 + $0x10] sm:$0xff] }
 0x613   : > { %v6306_v22 = vpop.f32.mrf.mxu1 }
 0x615   : > { %v6308_v13 = vpop.f32.mrf.mxu1 }
 0x617   : > { %v6310_v48 = vpop.f32.mrf.mxu1 }
 0x619   : > { %v6312_v10 = vpop.f32.mrf.mxu1 }
 0x61b   : > { %v6316_v8 = vpop.f32.mrf.mxu1 }
 0x61d   : > { %v6318_v5 = vpop.f32.mrf.mxu1 }
 0x61f   : > { %v6320_v27 = vpop.f32.mrf.mxu1 }
 0x621   : > { %v6322_v58 = vpop.f32.mrf.mxu1 }
 0x62b   : > { %v6539_v6 = vpop.f32.mrf.mxu0 }
 0x62c   : > { %v6540_v12 = vadd.f32 %v6539_v6, %v6306_v22  ;;  %v6595_v22 = vld [vmem:[%s11416_s12 + $0x8] sm:$0xff] }
 0x62d   : > { %v6541_v4 = vpop.f32.mrf.mxu0 }
 0x62e   : > { %v11274_v61 = vadd.f32 %v6565_v33, %v6540_v12  ;;  %v6542_v39 = vadd.f32 %v6541_v4, %v6308_v13  ;;  %v6597_v13 = vld [vmem:[%s11416_s12 + $0x18] sm:$0xff] }
 0x62f   : > { %v6543_v45 = vpop.f32.mrf.mxu0 }
 0x630   : > { %v11276_v14 = vadd.f32 %v6565_v33, %v6542_v39  ;;  %v6544_v49 = vadd.f32 %v6543_v45, %v6310_v48  ;;  %v6614_v1 = vmul.f32 %v11274_v61, %v11274_v61 }
 0x631   : > { %v6545_v50 = vpop.f32.mrf.mxu0 }
 0x632   : > { %v6598_v2 = vadd.f32 %v11276_v14, %v11274_v61  ;;  %v6615_v21 = vmul.f32 %v11276_v14, %v11276_v14  ;;  %v11284_v54 = vadd.f32 %v6570_v47, %v6544_v49  ;;  %v6546_v41 = vadd.f32 %v6545_v50, %v6312_v10 }
 0x633   : > { %v6549_v15 = vpop.f32.mrf.mxu0 }
 0x634   : > { %v6622_v34 = vadd.f32 %v6615_v21, %v6614_v1  ;;  %v6599_v43 = vadd.f32 %v6598_v2, %v11284_v54  ;;  %v6616_v30 = vmul.f32 %v11284_v54, %v11284_v54  ;;  %v11289_v37 = vadd.f32 %v6570_v47, %v6546_v41 }
 0x635   : > { %v6550_v38 = vadd.f32 %v6549_v15, %v6316_v8  ;;  %v6551_v52 = vpop.f32.mrf.mxu0 }
 0x636   : > { %v6623_v59 = vadd.f32 %v6622_v34, %v6616_v30  ;;  %v6600_v18 = vadd.f32 %v6599_v43, %v11289_v37  ;;  %v6617_v60 = vmul.f32 %v11289_v37, %v11289_v37  ;;  %v6552_v9 = vadd.f32 %v6551_v52, %v6318_v5 }
 0x637   : > { %v11294_v56 = vadd.f32 %v6575_v0, %v6550_v38  ;;  %v6553_v35 = vpop.f32.mrf.mxu0 }
 0x638   : > { %v6624_v11 = vadd.f32 %v6623_v59, %v6617_v60  ;;  %v11296_v16 = vadd.f32 %v6575_v0, %v6552_v9  ;;  %v6554_v19 = vadd.f32 %v6553_v35, %v6320_v27 }
 0x639   : > { %v6601_v53 = vadd.f32 %v6600_v18, %v11294_v56  ;;  %v6618_v25 = vmul.f32 %v11294_v56, %v11294_v56  ;;  %v6555_v36 = vpop.f32.mrf.mxu0 }
 0x63a   : > { %v6619_v55 = vmul.f32 %v11296_v16, %v11296_v16  ;;  %v11303_v44 = vadd.f32 %v6580_v20, %v6554_v19  ;;  %v6556_v26 = vadd.f32 %v6555_v36, %v6322_v58 }
 0x63b   : > { %v6625_v28 = vadd.f32 %v6624_v11, %v6618_v25  ;;  %v6602_v57 = vadd.f32 %v6601_v53, %v11296_v16 }
 0x63c   : > { %v6620_v51 = vmul.f32 %v11303_v44, %v11303_v44  ;;  %v11308_v7 = vadd.f32 %v6580_v20, %v6556_v26 }
 0x63d   : > { %v6603_v32 = vadd.f32 %v6602_v57, %v11303_v44  ;;  %v6626_v46 = vadd.f32 %v6625_v28, %v6619_v55 }
 0x63e   : > { %v6621_v31 = vmul.f32 %v11308_v7, %v11308_v7 }
 0x63f   : > { %v6604_v40 = vadd.f32 %v6603_v32, %v11308_v7  ;;  %v6627_v17 = vadd.f32 %v6626_v46, %v6620_v51 }
 0x641   : > { %6605 = vadd.xlane.f32.xlu1 %v6604_v40  ;;  %v6628_v24 = vadd.f32 %v6627_v17, %v6621_v31 }
 0x643   : > { %6629 = vadd.xlane.f32.xlu0 %v6628_v24 }
 0x652   : > { %6676 = vperm.xlu1 %8420, %v6591_v23  }
 0x656   : > { %6681 = vperm.xlu1 %8420, %v6592_v42  }
 0x659   : > { %6671 = vperm.xlu0 %8419, %v6590_v29  }
 0x65a   : > { %6699 = vperm.xlu1 %8420, %v6594_v3  }
 0x65d   : > { %6686 = vperm.xlu0 %8419, %v6593_v62  }
 0x65e   : > { %6709 = vperm.xlu1 %8420, %v6596_v63  }
 0x661   : > { %6704 = vperm.xlu0 %8419, %v6595_v22  }
 0x665   : > { %6714 = vperm.xlu0 %8419, %v6597_v13  }
 0x6ca   : > { %v6606_v48 = vpop.xlane.xlu1 %6605 }
 0x6cb   : > { %v6607_v10 = vrot.slane %v6606_v48, 4 }
 0x6cc   : > { %v6630_v6 = vpop.xlane.xlu0 %6629 }
 0x6cd   : > { %v6608_v33 = vadd.f32 %v6607_v10, %v6606_v48  ;;  %v6631_v12 = vrot.slane %v6630_v6, 4 }
 0x6ce   : > { %v6677_v41 = vpop.permute.xlu1 %6676 }
 0x6cf   : > { %v6609_v8 = vrot.slane %v6608_v33, 2  ;;  %v6632_v4 = vadd.f32 %v6631_v12, %v6630_v6 }
 0x6d1   : > { %v6633_v39 = vrot.slane %v6632_v4, 2  ;;  %v6610_v45 = vadd.f32 %v6609_v8, %v6608_v33 }
 0x6d2   : > { %v6682_v34 = vpop.permute.xlu1 %6681 }
 0x6d3   : > { %v6611_v47 = vrot.slane %v6610_v45, 1  ;;  %v6634_v49 = vadd.f32 %v6633_v39, %v6632_v4 }
 0x6d4   : > { %v6672_v15 = vpop.permute.xlu0 %6671 }
 0x6d5   : > { %v6612_v1 = vadd.f32 %v6611_v47, %v6610_v45  ;;  %v6635_v5 = vrot.slane %v6634_v49, 1 }
 0x6d6   : > { %v6700_v38 = vpop.permute.xlu1 %6699 }
 0x6d7   : > { %7771 = vpush %v6612_v1  ;;  %v6636_v50 = vadd.f32 %v6635_v5, %v6634_v49 }
 0x6d8   : > { %v6687_v43 = vpop.permute.xlu0 %6686 }
 0x6d9   : > { %7773 = vpush %v6636_v50 }
 0x6da   : > { %v6710_v51 = vpop.permute.xlu1 %6709 }
 0x6dc   : > { %v6705_v52 = vpop.permute.xlu0 %6704 }
 0x708   : > { %s7772_s20 = spop %7771 }
 0x709   : > { %s6640_s23 = smul.f32 0.00012207031, %s7772_s20  ;;  %s7416_s20 = sshll.u32 %s8733_s29, 10 }
 0x70a   : > { %s7774_s16 = spop %7773  ;;  %s11357_s29 = scalar_lea.hbm %s11417_s13, %s7416_s20 }
 0x70b   : > { %s6644_s30 = smul.f32 %s6640_s23, %s6640_s23  ;;  %v6647_v30 = vstv %s6640_s23  ;;  %s446_s23 = scalar_lea.vmem [#allocation8], %s11343_s22 }
 0x70c   : > { %s6643_s1 = smul.f32 0.00012207031, %s7774_s16  ;;  %v6648_v27 = vsub.f32 %v11274_v61, %v6647_v30  ;;  %v6649_v0 = vsub.f32 %v11276_v14, %v6647_v30  ;;  %v6650_v59 = vsub.f32 %v11284_v54, %v6647_v30  ;;  %v6651_v18 = vsub.f32 %v11289_v37, %v6647_v30  ;;  %s6755_s16 = sshll.u32 %s446_s23, 4  ;;  %s11359_s16 = int_to_ptr.vmem [resolvable:$true] %s6755_s16 }
 0x70d   : > { %v6652_v60 = vsub.f32 %v11294_v56, %v6647_v30  ;;  %v6653_v9 = vsub.f32 %v11296_v16, %v6647_v30  ;;  %v6654_v35 = vsub.f32 %v11303_v44, %v6647_v30  ;;  %v6655_v61 = vsub.f32 %v11308_v7, %v6647_v30  ;;  %v6715_v7 = vpop.permute.xlu0 %6714 }
 0x70e   : > { %s6645_s2 = ssub.f32 %s6643_s1, %s6644_s30 }
 0x710   : > { %s6646_s15 = smax.f32 %s8638_s24, %s6645_s2  ;;  %s11363_s2 = scalar_lea.sflag [#allocation7], %s444_s21 }
 0x711   : > { %s6656_s0 = sadd.f32 1e-05, %s6646_s15  ;;  %s8541_s15 = scalar_lea.vmem %s11359_s16, 1024 }
 0x712   : > { %p8542_p6 = scmp.ne.s32.totalorder %s11359_s16, %s8541_s15 }
 0x713   : > { %v6657_v2 = vstv %s6656_s0  ;;  %s8640_s0 = smov [#allocation8]  }
 0x714   : > { %8491 = vrsqrt.f32 %v6657_v2  ;;  %p8543_p9 = pnand %p8542_p6, %p8750_p5  ;;  %s8545_s22 = sshll.u32 %s8640_s0, 4  ;;  %s8546_s22 = int_to_ptr.vmem [resolvable:$false] %s8545_s22 }
 0x715   : > { %p8548_p11 = scmp.lt.s32.totalorder %s11359_s16, %s8546_s22 }
 0x716   : > { %p8544_p10 = pneg %p8543_p9 }
 0x721   : > { %v8492_v21 = vpop.eup %8491 }
 0x722   : > { %7775 = vpush %v8492_v21 }
 0x753   : > { %s7776_s24 = spop %7775 }
 0x754   : > { %v6660_v20 = vstv %s7776_s24  ;;  %s8547_s24 = scalar_lea.vmem %s8546_s22, 2048 }
 0x755   : > { %v6661_v11 = vmul.f32 %v6660_v20, %v6648_v27  ;;  %v6662_v19 = vmul.f32 %v6660_v20, %v6649_v0  ;;  %v6663_v58 = vmul.f32 %v6660_v20, %v6650_v59  ;;  %v6664_v53 = vmul.f32 %v6660_v20, %v6651_v18  ;;  %p8549_p12 = scmp.lt.s32.totalorder %s8547_s24, %s8541_s15 }
 0x756   : > { %v6665_v14 = vmul.f32 %v6660_v20, %v6652_v60  ;;  %v6666_v25 = vmul.f32 %v6660_v20, %v6653_v9  ;;  %v6667_v54 = vmul.f32 %v6660_v20, %v6654_v35  ;;  %v6668_v36 = vmul.f32 %v6660_v20, %v6655_v61 }
 0x757   : > { %v6689_v37 = vmul.f32 %v6672_v15, %v6661_v11  ;;  %v6690_v56 = vmul.f32 %v6672_v15, %v6662_v19  ;;  %v6691_v55 = vmul.f32 %v6677_v41, %v6663_v58  ;;  %v6692_v26 = vmul.f32 %v6677_v41, %v6664_v53  ;;  %p8550_p13 = por %p8549_p12, %p8548_p11 }
 0x758   : > { %v6693_v16 = vmul.f32 %v6682_v34, %v6665_v14  ;;  %v6694_v28 = vmul.f32 %v6682_v34, %v6666_v25  ;;  %v6695_v44 = vmul.f32 %v6687_v43, %v6667_v54  ;;  %v6696_v57 = vmul.f32 %v6687_v43, %v6668_v36 }
 0x759   : > { %v6717_v32 = vadd.f32 %v6700_v38, %v6689_v37  ;;  %v6718_v46 = vadd.f32 %v6700_v38, %v6690_v56  ;;  %v6719_v31 = vadd.f32 %v6705_v52, %v6691_v55  ;;  %v6720_v40 = vadd.f32 %v6705_v52, %v6692_v26  ;;  %p8551_p0 = pnand %p8550_p13, %p8544_p10 }
 0x75a   : > { %v6721_v17 = vadd.f32 %v6710_v51, %v6693_v16  ;;  %v6722_v24 = vadd.f32 %v6710_v51, %v6694_v28  ;;  %v6723_v23 = vadd.f32 %v6715_v7, %v6695_v44  ;;  %v6724_v42 = vadd.f32 %v6715_v7, %v6696_v57 }
 0x75b   : > { %v6725_v29 = vmax.f32 %v6717_v32, 0.0  ;;  %v6726_v3 = vmax.f32 %v6718_v46, 0.0  ;;  %v6727_v62 = vmax.f32 %v6719_v31, 0.0  ;;  %v6728_v63 = vmax.f32 %v6720_v40, 0.0 }
 0x75c   : > { %v6729_v22 = vmax.f32 %v6721_v17, 0.0  ;;  %v6730_v13 = vmax.f32 %v6722_v24, 0.0  ;;  %v6731_v48 = vmax.f32 %v6723_v23, 0.0  ;;  %v6732_v10 = vmax.f32 %v6724_v42, 0.0 }
 0x75d   : > { %6733 = vst [vmem:[%s446_s23] sm:$0xff] %v6725_v29  ;;  %6734 = vst [vmem:[%s446_s23 + $0x8] sm:$0xff] %v6726_v3 }
 0x75e   : > { %6735 = vst [vmem:[%s446_s23 + $0x10] sm:$0xff] %v6727_v62  ;;  %6736 = vst [vmem:[%s446_s23 + $0x18] sm:$0xff] %v6728_v63 }
 0x75f   : > { %6737 = vst [vmem:[%s446_s23 + $0x20] sm:$0xff] %v6729_v22  ;;  %6738 = vst [vmem:[%s446_s23 + $0x28] sm:$0xff] %v6730_v13 }
 0x760   : > { %6739 = vst [vmem:[%s446_s23 + $0x30] sm:$0xff] %v6731_v48  ;;  %6740 = vst [vmem:[%s446_s23 + $0x38] sm:$0xff] %v6732_v10 }
 0x761   : > { %8554 = shalt.err (!%p8551_p0)
}
 0x762   : > { %s8555_s21 = scalar_lea.hbm %s11357_s29, 1024  ;;  %s8559_s30 = scalar_lea.hbm %s11417_s13, 2048 }
 0x763   : > { %p8556_p1 = scmp.ne.s32.totalorder %s11357_s29, %s8555_s21  ;;  %p8560_p4 = scmp.lt.s32.totalorder %s11357_s29, %s11417_s13 }
 0x764   : > { %p8561_p7 = scmp.lt.s32.totalorder %s8559_s30, %s8555_s21 }
 0x765   : > { %p8557_p2 = pnand %p8556_p1, %p8750_p5 }
 0x766   : > { %p8562_p8 = por %p8561_p7, %p8560_p4 }
 0x767   : > { %p8558_p3 = pneg %p8557_p2 }
 0x769   : > { %p8563_p6 = pnand %p8562_p8, %p8558_p3 }
 0x76b   : > { %8566 = shalt.err (!%p8563_p6)
}
 0x76c   : > { %s8641_s15 = smov 256   ;;  %s11636_s22 = smov 16  }
 0x76d   : > { %7781 = dma.vmem_to_hbm [thread:$0]  (%p8750_p5), %s11359_s16, 1024, %s11357_s29, %s11363_s2, %s8641_s15, %s8641_s15, %s11636_s22  }
 0x76e PF: > { %p7793_p9 = scmp.ge.s32.totalorder %s8605_s28, 2  ;;  %s6770_s24 = sand.u32 1, %s8593_s25  }
 0x76f   : > { %p11637_p10 = scmp.ne.s32.totalorder %s11487_s19, 0  ;;  %s6771_s21 = scalar_lea.sflag [#allocation7], %s6770_s24 }
 0x771   : > { %p7788_p11 = pnand %p7793_p9, %p11637_p10 }
 0x773   : > { %p7789_p12 = pneg %p7788_p11 }
 0x775   : > { %8588 = dma.done.wait (%p7789_p12), %s6771_s21, 1024  }
 0x776   : > { %8590 = vsyncadd (%p7789_p12), %s6771_s21, 4294966272  ;;  %p24_p13 = scmp.ge.s32.totalorder %s8737_s14, 4   ;;  %s11638_s25 = smov %s8597_s26 }
 0x777   : > { %s11639_s26 = smov %s8601_s27  ;;  %s11640_s27 = smov %s8748_s17 }
 0x778   : > { %s11641_s28 = smov %s8737_s14  ;;  %26 = sbr.rel (!%p24_p13) target bundleno = 8 (0x8), region = 114 }
 0x77d   :  { %6776 = vsyncpa [#allocation6], 1 }
 0x77e   :  { %6778 = vsyncpa [#allocation6 + $0x1], 1 }
 0x77f   :  { %6779 = vsyncpa [#allocation7], 1 }
 0x780   :  { %6781 = vsyncpa [#allocation7 + $0x1], 1 }

</bundles_post_ra>
